<compile_context>
chip_gen: v6e
topology: v6e:2x2x1
jax: 0.10.0
libtpu: 0.0.40
codegen_flags: <defaults>
</compile_context>

<pallas_src>
import jax
import jax.numpy as jnp
import numpy as np
from jax import lax
from jax.experimental import pallas as pl
from jax.experimental.pallas import tpu as pltpu

EPS = 1e-5
MATMUL_DTYPE = jnp.float32   # set to jnp.bfloat16 on v6e/v7x (see header notes)


# --------------------------------------------------------------------------------------
# Kernels
# --------------------------------------------------------------------------------------
def conv1_shortcut_stats_kernel(xp_ref, w1_ref, ws_ref, y1_ref, ys_ref, st_ref):
    """3x3 convPath1 + 1x1 convShortcut on one row tile, plus per-tile BN statistics.

    xp_ref : (H+2, W+2, Cin) zero-padded image, VMEM-resident for the whole image.
    w1_ref : (9*Cin, F) folded 3x3 weights;  ws_ref: (Cin, F) 1x1 shortcut weights.
    y1_ref / ys_ref : (TH, W, F) pre-BN conv outputs for this row tile.
    st_ref : (4, F) per-tile [sum(y1), sum(y1^2), sum(ys), sum(ys^2)].
    """
    TH, W, F = y1_ref.shape
    Cin = xp_ref.shape[-1]
    j = pl.program_id(1)
    r0 = pl.multiple_of(j * TH, TH)

    rows = xp_ref[pl.ds(r0, TH + 2), :, :]                  # (TH+2, W+2, Cin)

    # Fold the 9 taps into the contraction dim -> one MXU dot with K = 9*Cin.
    taps = [rows[dy:dy + TH, dx:dx + W, :] for dy in range(3) for dx in range(3)]
    pat = jnp.concatenate(taps, axis=2).reshape(TH * W, 9 * Cin)
    y = jnp.dot(pat, w1_ref[...], preferred_element_type=jnp.float32)   # (TH*W, F)
    y1_ref[...] = y.reshape(TH, W, F)

    # Shortcut 1x1 conv reads the interior (unpadded) pixels of the same resident block.
    xin = rows[1:1 + TH, 1:1 + W, :].reshape(TH * W, Cin)
    s = jnp.dot(xin, ws_ref[...], preferred_element_type=jnp.float32)   # (TH*W, F)
    ys_ref[...] = s.reshape(TH, W, F)

    # Two-pass BatchNorm, pass 1: per-tile channel statistics (reduced in the wrapper).
    st_ref[...] = jnp.concatenate(
        [jnp.sum(y, axis=0, keepdims=True),
         jnp.sum(y * y, axis=0, keepdims=True),
         jnp.sum(s, axis=0, keepdims=True),
         jnp.sum(s * s, axis=0, keepdims=True)], axis=0)


def bn_relu_conv2_stats_kernel(y1p_ref, mask_ref, w2_ref, sc1_ref, sh1_ref,
                               y2_ref, st_ref):
    """BN1 (precomputed scale/shift) + ReLU fused into the 3x3 convPath2, plus BN2 stats.

    y1p_ref : (H+2, W+2, F) zero-padded conv1 output, VMEM-resident per image.
    mask_ref: (H+2, W+2, 1) 1.0 interior / 0.0 border - restores the zero halo after
              BN+ReLU so the 'same' convolution sees zero padding.
    """
    TH, W, F = y2_ref.shape
    j = pl.program_id(1)
    r0 = pl.multiple_of(j * TH, TH)

    rows = y1p_ref[pl.ds(r0, TH + 2), :, :]                 # (TH+2, W+2, F)
    m = mask_ref[pl.ds(r0, TH + 2), :, :]                   # (TH+2, W+2, 1)
    z = jnp.maximum(rows * sc1_ref[...] + sh1_ref[...], 0.0) * m

    taps = [z[dy:dy + TH, dx:dx + W, :] for dy in range(3) for dx in range(3)]
    pat = jnp.concatenate(taps, axis=2).reshape(TH * W, 9 * F)
    y = jnp.dot(pat.astype(w2_ref.dtype), w2_ref[...],
                preferred_element_type=jnp.float32)         # (TH*W, F)
    y2_ref[...] = y.reshape(TH, W, F)

    st_ref[...] = jnp.concatenate(
        [jnp.sum(y, axis=0, keepdims=True),
         jnp.sum(y * y, axis=0, keepdims=True)], axis=0)


def bn_concat_relu_kernel(y2_ref, ys_ref, sc2_ref, sh2_ref, scs_ref, shs_ref, o_ref):
    """BN2 / BN-shortcut + final ReLU; the channel concat is realised as two direct
    writes into disjoint lane ranges of the output block (no in-kernel concatenate)."""
    F = y2_ref.shape[-1]
    o_ref[:, :, :F] = jnp.maximum(y2_ref[...] * sc2_ref[...] + sh2_ref[...], 0.0)
    o_ref[:, :, F:] = jnp.maximum(ys_ref[...] * scs_ref[...] + shs_ref[...], 0.0)


# --------------------------------------------------------------------------------------
# Wrapper
# --------------------------------------------------------------------------------------
def _bn_scale_shift(ch_sum, ch_sqsum, count, gamma, beta):
    """Training-mode BatchNorm (biased variance, eps=1e-5) folded into y*scale + shift."""
    mean = ch_sum / count
    var = jnp.maximum(ch_sqsum / count - mean * mean, 0.0)
    scale = gamma * lax.rsqrt(var + EPS)
    shift = beta - mean * scale
    return scale.reshape(1, -1), shift.reshape(1, -1)


@jax.jit
def res_unet_encoder_block(x_nchw, params):
    x = jnp.transpose(x_nchw, (0, 2, 3, 1)).astype(jnp.float32)   # NCHW -> NHWC
    N, H, W, Cin = x.shape
    F = params["w1"].shape[-1]
    P = N * H * W
    Hp, Wp = H + 2, W + 2

    # Row-tile height: each grid step handles TH*W rows of the flattened (P, C) problem.
    # For production sizes pick TH so TH*W ~ 512-2048, subject to the per-gen VMEM budget.
    TH = 8 if H % 8 == 0 else H
    nJ = H // TH
    grid = (N, nJ)
    cparams = pltpu.CompilerParams(
        dimension_semantics=("parallel", "parallel"),     # megacore-shardable on v7x
        vmem_limit_bytes=32 * 1024 * 1024)

    xp = jnp.pad(x, ((0, 0), (1, 1), (1, 1), (0, 0))).astype(MATMUL_DTYPE)
    w1f = params["w1"].reshape(9 * Cin, F).astype(MATMUL_DTYPE)   # (dy, dx, cin) folded K
    wsf = params["ws"].astype(MATMUL_DTYPE)
    w2f = params["w2"].reshape(9 * F, F).astype(MATMUL_DTYPE)

    # ---- Stage A: conv1 + shortcut conv + BN statistics (pass 1) ----------------------
    y1, ys, st_a = pl.pallas_call(
        conv1_shortcut_stats_kernel,
        grid=grid,
        in_specs=[
            pl.BlockSpec((None, Hp, Wp, Cin), lambda n, j: (n, 0, 0, 0)),  # resident/image
            pl.BlockSpec((9 * Cin, F), lambda n, j: (0, 0)),
            pl.BlockSpec((Cin, F), lambda n, j: (0, 0)),
        ],
        out_specs=[
            pl.BlockSpec((None, TH, W, F), lambda n, j: (n, j, 0, 0)),
            pl.BlockSpec((None, TH, W, F), lambda n, j: (n, j, 0, 0)),
            pl.BlockSpec((None, None, 4, F), lambda n, j: (n, j, 0, 0)),
        ],
        out_shape=[
            jax.ShapeDtypeStruct((N, H, W, F), jnp.float32),
            jax.ShapeDtypeStruct((N, H, W, F), jnp.float32),
            jax.ShapeDtypeStruct((N, nJ, 4, F), jnp.float32),
        ],
        compiler_params=cparams,
        cost_estimate=pl.CostEstimate(
            flops=2 * P * F * (9 * Cin + Cin), transcendentals=0,
            bytes_accessed=4 * (N * Hp * Wp * Cin + 2 * P * F)),
    )(xp, w1f, wsf)

    # BN pass 2 inputs: global batch stats folded into per-channel scale/shift.
    scale1, shift1 = _bn_scale_shift(st_a[:, :, 0].sum((0, 1)), st_a[:, :, 1].sum((0, 1)),
                                     P, params["g1"], params["be1"])
    scales, shifts = _bn_scale_shift(st_a[:, :, 2].sum((0, 1)), st_a[:, :, 3].sum((0, 1)),
                                     P, params["gs"], params["bes"])

    # ---- Stage B: BN1 + ReLU + conv2 + BN2 statistics ---------------------------------
    y1p = jnp.pad(y1, ((0, 0), (1, 1), (1, 1), (0, 0)))
    border = jnp.pad(jnp.ones((H, W, 1), jnp.float32), ((1, 1), (1, 1), (0, 0)))

    y2, st_b = pl.pallas_call(
        bn_relu_conv2_stats_kernel,
        grid=grid,
        in_specs=[
            pl.BlockSpec((None, Hp, Wp, F), lambda n, j: (n, 0, 0, 0)),    # resident/image
            pl.BlockSpec((Hp, Wp, 1), lambda n, j: (0, 0, 0)),
            pl.BlockSpec((9 * F, F), lambda n, j: (0, 0)),
            pl.BlockSpec((1, F), lambda n, j: (0, 0)),
            pl.BlockSpec((1, F), lambda n, j: (0, 0)),
        ],
        out_specs=[
            pl.BlockSpec((None, TH, W, F), lambda n, j: (n, j, 0, 0)),
            pl.BlockSpec((None, None, 2, F), lambda n, j: (n, j, 0, 0)),
        ],
        out_shape=[
            jax.ShapeDtypeStruct((N, H, W, F), jnp.float32),
            jax.ShapeDtypeStruct((N, nJ, 2, F), jnp.float32),
        ],
        compiler_params=cparams,
        cost_estimate=pl.CostEstimate(
            flops=2 * P * 9 * F * F, transcendentals=0,
            bytes_accessed=4 * (N * Hp * Wp * F + P * F)),
    )(y1p, border, w2f, scale1, shift1)

    scale2, shift2 = _bn_scale_shift(st_b[:, :, 0].sum((0, 1)), st_b[:, :, 1].sum((0, 1)),
                                     P, params["g2"], params["be2"])

    # ---- Stage C: BN2 / BN-shortcut + concat-by-lane-ranges + ReLU ---------------------
    out_nhwc = pl.pallas_call(
        bn_concat_relu_kernel,
        grid=grid,
        in_specs=[
            pl.BlockSpec((None, TH, W, F), lambda n, j: (n, j, 0, 0)),
            pl.BlockSpec((None, TH, W, F), lambda n, j: (n, j, 0, 0)),
            pl.BlockSpec((1, F), lambda n, j: (0, 0)),
            pl.BlockSpec((1, F), lambda n, j: (0, 0)),
            pl.BlockSpec((1, F), lambda n, j: (0, 0)),
            pl.BlockSpec((1, F), lambda n, j: (0, 0)),
        ],
        out_specs=pl.BlockSpec((None, TH, W, 2 * F), lambda n, j: (n, j, 0, 0)),
        out_shape=jax.ShapeDtypeStruct((N, H, W, 2 * F), jnp.float32),
        compiler_params=cparams,
        cost_estimate=pl.CostEstimate(
            flops=6 * P * 2 * F, transcendentals=0, bytes_accessed=4 * (4 * P * F)),
    )(y2, ys, scale2, shift2, scales, shifts)

    # TODO(synk): BatchNorm running_mean/running_var buffer updates are a training-time
    # side effect with no influence on this forward output and are not reproduced.
    return jnp.transpose(out_nhwc, (0, 3, 1, 2))   # NHWC -> NCHW (matches PyTorch output)


# --------------------------------------------------------------------------------------
# Parameters / reference / test
# --------------------------------------------------------------------------------------
def init_params(key, in_channels, features, kernel_size=3):
    """Deterministic synthetic parameters; conv weights stored HWIO (kh, kw, Cin, F)."""
    k = kernel_size
    keys = jax.random.split(key, 12)

    def uni(kk, shape, fan_in):
        bound = 1.0 / np.sqrt(fan_in)
        return jax.random.uniform(kk, shape, jnp.float32, -bound, bound)

    p = {}
    fan1 = in_channels * k * k
    p["w1"] = uni(keys[0], (k, k, in_channels, features), fan1)
    p["b1"] = uni(keys[1], (features,), fan1)
    fan2 = features * k * k
    p["w2"] = uni(keys[2], (k, k, features, features), fan2)
    p["b2"] = uni(keys[3], (features,), fan2)
    fans = in_channels  # 1x1 conv
    p["ws"] = uni(keys[4], (in_channels, features), fans)
    p["bs"] = uni(keys[5], (features,), fans)
    p["g1"] = 1.0 + 0.1 * jax.random.normal(keys[6], (features,), jnp.float32)
    p["be1"] = 0.1 * jax.random.normal(keys[7], (features,), jnp.float32)
    p["g2"] = 1.0 + 0.1 * jax.random.normal(keys[8], (features,), jnp.float32)
    p["be2"] = 0.1 * jax.random.normal(keys[9], (features,), jnp.float32)
    p["gs"] = 1.0 + 0.1 * jax.random.normal(keys[10], (features,), jnp.float32)
    p["bes"] = 0.1 * jax.random.normal(keys[11], (features,), jnp.float32)
    return p


def reference(x_nchw, p):
    """Pure-JAX reference (XLA conv) mirroring the PyTorch forward semantics.
    Note: conv biases are included here; the Pallas kernels drop them because a bias
    added before training-mode BatchNorm is exactly cancelled by the mean subtraction."""
    x = jnp.transpose(x_nchw, (0, 2, 3, 1)).astype(jnp.float32)
    Cin = x.shape[-1]
    F = p["w1"].shape[-1]

    def conv(inp, w, b):
        return lax.conv_general_dilated(
            inp, w, window_strides=(1, 1), padding="SAME",
            dimension_numbers=("NHWC", "HWIO", "NHWC")) + b.reshape(1, 1, 1, -1)

    def bn(y, g, be):
        mean = jnp.mean(y, axis=(0, 1, 2), keepdims=True)
        var = jnp.mean((y - mean) ** 2, axis=(0, 1, 2), keepdims=True)
        return ((y - mean) / jnp.sqrt(var + EPS)) * g.reshape(1, 1, 1, -1) + be.reshape(1, 1, 1, -1)

    path = jax.nn.relu(bn(conv(x, p["w1"], p["b1"]), p["g1"], p["be1"]))
    path = bn(conv(path, p["w2"], p["b2"]), p["g2"], p["be2"])
    sc = bn(conv(x, p["ws"].reshape(1, 1, Cin, F), p["bs"]), p["gs"], p["bes"])
    out = jax.nn.relu(jnp.concatenate([path, sc], axis=-1))
    return jnp.transpose(out, (0, 3, 1, 2))


if __name__ == "__main__":
    key = jax.random.PRNGKey(0)
    kx, kp = jax.random.split(key)

    N, Cin, H, W = 2, 4, 16, 16
    features = 8

    x = jax.random.normal(kx, (N, Cin, H, W), jnp.float32)   # PyTorch-style NCHW input
    params = init_params(kp, Cin, features)

    out = res_unet_encoder_block(x, params)
    out = jax.block_until_ready(out)
    assert out.shape == (N, 2 * features, H, W), out.shape

    ref = reference(x, params)
    np.testing.assert_allclose(np.asarray(out), np.asarray(ref), rtol=2e-3, atol=2e-3)

    print("KERNEL_OK")
</pallas_src>

<mosaic_0001>
module attributes {stable_mosaic.version = 11 : i64} {
  func.func @conv1_shortcut_stats_kernel(%arg0: i32, %arg1: i32, %arg2: memref<1x18x18x4xf32, #tpu.memory_space<vmem>>, %arg3: memref<36x8xf32, #tpu.memory_space<vmem>>, %arg4: memref<4x8xf32, #tpu.memory_space<vmem>>, %arg5: memref<1x8x16x8xf32, #tpu.memory_space<vmem>>, %arg6: memref<1x8x16x8xf32, #tpu.memory_space<vmem>>, %arg7: memref<1x1x4x8xf32, #tpu.memory_space<vmem>>) attributes {dimension_semantics = [#tpu.dimension_semantics<parallel>, #tpu.dimension_semantics<parallel>], iteration_bounds = array<i64: 2, 2>, scalar_prefetch = 0 : i64, scratch_operands = 0 : i64, tpu.core_type = #tpu.core_type<tc>, window_params = [{transform_indices = @transform_0, window_bounds = array<i64: 1, 18, 18, 4>}, {pipeline_mode = #tpu.pipeline_mode<synchronous>, transform_indices = @transform_1, window_bounds = array<i64: 36, 8>}, {pipeline_mode = #tpu.pipeline_mode<synchronous>, transform_indices = @transform_2, window_bounds = array<i64: 4, 8>}, {transform_indices = @transform_3, window_bounds = array<i64: 1, 8, 16, 8>}, {transform_indices = @transform_4, window_bounds = array<i64: 1, 8, 16, 8>}, {transform_indices = @transform_5, window_bounds = array<i64: 1, 1, 4, 8>}]} {
    %c8_i32 = arith.constant 8 : i32
    %0 = arith.muli %arg1, %c8_i32 : i32
    %1 = tpu.assume_multiple %0, 8 : i32
    %c0 = arith.constant 0 : index
    %2 = arith.index_cast %1 : i32 to index
    %c0_0 = arith.constant 0 : index
    %c0_1 = arith.constant 0 : index
    %3 = vector.load %arg2[%c0, %2, %c0_0, %c0_1] : memref<1x18x18x4xf32, #tpu.memory_space<vmem>>, vector<1x10x18x4xf32>
    %4 = vector.shape_cast %3 : vector<1x10x18x4xf32> to vector<10x18x4xf32>
    %5 = vector.extract_strided_slice %4 {offsets = [0, 0, 0], sizes = [8, 16, 4], strides = [1, 1, 1]} : vector<10x18x4xf32> to vector<8x16x4xf32>
    %6 = vector.extract_strided_slice %4 {offsets = [0, 1, 0], sizes = [8, 16, 4], strides = [1, 1, 1]} : vector<10x18x4xf32> to vector<8x16x4xf32>
    %7 = vector.extract_strided_slice %4 {offsets = [0, 2, 0], sizes = [8, 16, 4], strides = [1, 1, 1]} : vector<10x18x4xf32> to vector<8x16x4xf32>
    %8 = vector.extract_strided_slice %4 {offsets = [1, 0, 0], sizes = [8, 16, 4], strides = [1, 1, 1]} : vector<10x18x4xf32> to vector<8x16x4xf32>
    %9 = vector.extract_strided_slice %4 {offsets = [1, 1, 0], sizes = [8, 16, 4], strides = [1, 1, 1]} : vector<10x18x4xf32> to vector<8x16x4xf32>
    %10 = vector.extract_strided_slice %4 {offsets = [1, 2, 0], sizes = [8, 16, 4], strides = [1, 1, 1]} : vector<10x18x4xf32> to vector<8x16x4xf32>
    %11 = vector.extract_strided_slice %4 {offsets = [2, 0, 0], sizes = [8, 16, 4], strides = [1, 1, 1]} : vector<10x18x4xf32> to vector<8x16x4xf32>
    %12 = vector.extract_strided_slice %4 {offsets = [2, 1, 0], sizes = [8, 16, 4], strides = [1, 1, 1]} : vector<10x18x4xf32> to vector<8x16x4xf32>
    %13 = vector.extract_strided_slice %4 {offsets = [2, 2, 0], sizes = [8, 16, 4], strides = [1, 1, 1]} : vector<10x18x4xf32> to vector<8x16x4xf32>
    %14 = tpu.concatenate %5, %6, %7, %8, %9, %10, %11, %12, %13 in 2 : vector<8x16x4xf32>, vector<8x16x4xf32>, vector<8x16x4xf32>, vector<8x16x4xf32>, vector<8x16x4xf32>, vector<8x16x4xf32>, vector<8x16x4xf32>, vector<8x16x4xf32>, vector<8x16x4xf32> -> vector<8x16x36xf32>
    %15 = vector.shape_cast %14 : vector<8x16x36xf32> to vector<128x36xf32>
    %c0_2 = arith.constant 0 : index
    %c0_3 = arith.constant 0 : index
    %16 = vector.load %arg3[%c0_2, %c0_3] : memref<36x8xf32, #tpu.memory_space<vmem>>, vector<36x8xf32>
    %cst = arith.constant dense<0.000000e+00> : vector<128x8xf32>
    %17 = tpu.matmul %15, %16, %cst {dimension_numbers = #tpu.dot_dimension_numbers<[1], [0], [0], [1], [0, 0, 1, 1], [], []>} : vector<128x36xf32>, vector<36x8xf32>, vector<128x8xf32> -> vector<128x8xf32>
    %18 = vector.shape_cast %17 : vector<128x8xf32> to vector<8x16x8xf32>
    %c0_4 = arith.constant 0 : index
    %c0_5 = arith.constant 0 : index
    %c0_6 = arith.constant 0 : index
    %c0_7 = arith.constant 0 : index
    %19 = vector.load %arg5[%c0_4, %c0_5, %c0_6, %c0_7] : memref<1x8x16x8xf32, #tpu.memory_space<vmem>>, vector<1x8x16x8xf32>
    %20 = vector.shape_cast %19 : vector<1x8x16x8xf32> to vector<8x16x8xf32>
    %21 = vector.shape_cast %18 : vector<8x16x8xf32> to vector<1x8x16x8xf32>
    tpu.vector_store %arg5[%c0_4, %c0_5, %c0_6, %c0_7], %21 {strides = array<i32>} : memref<1x8x16x8xf32, #tpu.memory_space<vmem>>, vector<1x8x16x8xf32>,
    %22 = vector.extract_strided_slice %4 {offsets = [1, 1, 0], sizes = [8, 16, 4], strides = [1, 1, 1]} : vector<10x18x4xf32> to vector<8x16x4xf32>
    %23 = vector.shape_cast %22 : vector<8x16x4xf32> to vector<128x4xf32>
    %c0_8 = arith.constant 0 : index
    %c0_9 = arith.constant 0 : index
    %24 = vector.load %arg4[%c0_8, %c0_9] : memref<4x8xf32, #tpu.memory_space<vmem>>, vector<4x8xf32>
    %cst_10 = arith.constant dense<0.000000e+00> : vector<128x8xf32>
    %25 = tpu.matmul %23, %24, %cst_10 {dimension_numbers = #tpu.dot_dimension_numbers<[1], [0], [0], [1], [0, 0, 1, 1], [], []>} : vector<128x4xf32>, vector<4x8xf32>, vector<128x8xf32> -> vector<128x8xf32>
    %26 = vector.shape_cast %25 : vector<128x8xf32> to vector<8x16x8xf32>
    %c0_11 = arith.constant 0 : index
    %c0_12 = arith.constant 0 : index
    %c0_13 = arith.constant 0 : index
    %c0_14 = arith.constant 0 : index
    %27 = vector.load %arg6[%c0_11, %c0_12, %c0_13, %c0_14] : memref<1x8x16x8xf32, #tpu.memory_space<vmem>>, vector<1x8x16x8xf32>
    %28 = vector.shape_cast %27 : vector<1x8x16x8xf32> to vector<8x16x8xf32>
    %29 = vector.shape_cast %26 : vector<8x16x8xf32> to vector<1x8x16x8xf32>
    tpu.vector_store %arg6[%c0_11, %c0_12, %c0_13, %c0_14], %29 {strides = array<i32>} : memref<1x8x16x8xf32, #tpu.memory_space<vmem>>, vector<1x8x16x8xf32>,
    %cst_15 = arith.constant dense<0.000000e+00> : vector<8xf32>
    %30 = vector.multi_reduction <add>, %17, %cst_15 [0] : vector<128x8xf32> to vector<8xf32>
    %31 = vector.shape_cast %30 : vector<8xf32> to vector<1x8xf32>
    %32 = arith.mulf %17, %17 : vector<128x8xf32>
    %cst_16 = arith.constant dense<0.000000e+00> : vector<8xf32>
    %33 = vector.multi_reduction <add>, %32, %cst_16 [0] : vector<128x8xf32> to vector<8xf32>
    %34 = vector.shape_cast %33 : vector<8xf32> to vector<1x8xf32>
    %cst_17 = arith.constant dense<0.000000e+00> : vector<8xf32>
    %35 = vector.multi_reduction <add>, %25, %cst_17 [0] : vector<128x8xf32> to vector<8xf32>
    %36 = vector.shape_cast %35 : vector<8xf32> to vector<1x8xf32>
    %37 = arith.mulf %25, %25 : vector<128x8xf32>
    %cst_18 = arith.constant dense<0.000000e+00> : vector<8xf32>
    %38 = vector.multi_reduction <add>, %37, %cst_18 [0] : vector<128x8xf32> to vector<8xf32>
    %39 = vector.shape_cast %38 : vector<8xf32> to vector<1x8xf32>
    %40 = tpu.concatenate %31, %34, %36, %39 in 0 : vector<1x8xf32>, vector<1x8xf32>, vector<1x8xf32>, vector<1x8xf32> -> vector<4x8xf32>
    %c0_19 = arith.constant 0 : index
    %c0_20 = arith.constant 0 : index
    %c0_21 = arith.constant 0 : index
    %c0_22 = arith.constant 0 : index
    %41 = vector.load %arg7[%c0_19, %c0_20, %c0_21, %c0_22] : memref<1x1x4x8xf32, #tpu.memory_space<vmem>>, vector<1x1x4x8xf32>
    %42 = vector.shape_cast %41 : vector<1x1x4x8xf32> to vector<4x8xf32>
    %43 = vector.shape_cast %40 : vector<4x8xf32> to vector<1x1x4x8xf32>
    tpu.vector_store %arg7[%c0_19, %c0_20, %c0_21, %c0_22], %43 {strides = array<i32>} : memref<1x1x4x8xf32, #tpu.memory_space<vmem>>, vector<1x1x4x8xf32>,
    return
  }
  func.func @transform_0(%arg0: i32, %arg1: i32) -> (i32, i32, i32, i32) {
    %c0_i32 = arith.constant 0 : i32
    %c0_i32_0 = arith.constant 0 : i32
    %c0_i32_1 = arith.constant 0 : i32
    %c0_i32_2 = arith.constant 0 : i32
    return %arg0, %c0_i32, %c0_i32_0, %c0_i32_1 : i32, i32, i32, i32
  }
  func.func @transform_1(%arg0: i32, %arg1: i32) -> (i32, i32) {
    %c0_i32 = arith.constant 0 : i32
    %c0_i32_0 = arith.constant 0 : i32
    %c0_i32_1 = arith.constant 0 : i32
    return %c0_i32, %c0_i32_0 : i32, i32
  }
  func.func @transform_2(%arg0: i32, %arg1: i32) -> (i32, i32) {
    %c0_i32 = arith.constant 0 : i32
    %c0_i32_0 = arith.constant 0 : i32
    %c0_i32_1 = arith.constant 0 : i32
    return %c0_i32, %c0_i32_0 : i32, i32
  }
  func.func @transform_3(%arg0: i32, %arg1: i32) -> (i32, i32, i32, i32) {
    %c0_i32 = arith.constant 0 : i32
    %c0_i32_0 = arith.constant 0 : i32
    %c0_i32_1 = arith.constant 0 : i32
    return %arg0, %arg1, %c0_i32, %c0_i32_0 : i32, i32, i32, i32
  }
  func.func @transform_4(%arg0: i32, %arg1: i32) -> (i32, i32, i32, i32) {
    %c0_i32 = arith.constant 0 : i32
    %c0_i32_0 = arith.constant 0 : i32
    %c0_i32_1 = arith.constant 0 : i32
    return %arg0, %arg1, %c0_i32, %c0_i32_0 : i32, i32, i32, i32
  }
  func.func @transform_5(%arg0: i32, %arg1: i32) -> (i32, i32, i32, i32) {
    %c0_i32 = arith.constant 0 : i32
    %c0_i32_0 = arith.constant 0 : i32
    %c0_i32_1 = arith.constant 0 : i32
    return %arg0, %arg1, %c0_i32, %c0_i32_0 : i32, i32, i32, i32
  }
}

module attributes {stable_mosaic.version = 11 : i64} {
  func.func @bn_relu_conv2_stats_kernel(%arg0: i32, %arg1: i32, %arg2: memref<1x18x18x8xf32, #tpu.memory_space<vmem>>, %arg3: memref<18x18x1xf32, #tpu.memory_space<vmem>>, %arg4: memref<72x8xf32, #tpu.memory_space<vmem>>, %arg5: memref<1x8xf32, #tpu.memory_space<vmem>>, %arg6: memref<1x8xf32, #tpu.memory_space<vmem>>, %arg7: memref<1x8x16x8xf32, #tpu.memory_space<vmem>>, %arg8: memref<1x1x2x8xf32, #tpu.memory_space<vmem>>) attributes {dimension_semantics = [#tpu.dimension_semantics<parallel>, #tpu.dimension_semantics<parallel>], iteration_bounds = array<i64: 2, 2>, scalar_prefetch = 0 : i64, scratch_operands = 0 : i64, tpu.core_type = #tpu.core_type<tc>, window_params = [{transform_indices = @transform_0, window_bounds = array<i64: 1, 18, 18, 8>}, {pipeline_mode = #tpu.pipeline_mode<synchronous>, transform_indices = @transform_1, window_bounds = array<i64: 18, 18, 1>}, {pipeline_mode = #tpu.pipeline_mode<synchronous>, transform_indices = @transform_2, window_bounds = array<i64: 72, 8>}, {pipeline_mode = #tpu.pipeline_mode<synchronous>, transform_indices = @transform_3, window_bounds = array<i64: 1, 8>}, {pipeline_mode = #tpu.pipeline_mode<synchronous>, transform_indices = @transform_4, window_bounds = array<i64: 1, 8>}, {transform_indices = @transform_5, window_bounds = array<i64: 1, 8, 16, 8>}, {transform_indices = @transform_6, window_bounds = array<i64: 1, 1, 2, 8>}]} {
    %c8_i32 = arith.constant 8 : i32
    %0 = arith.muli %arg1, %c8_i32 : i32
    %1 = tpu.assume_multiple %0, 8 : i32
    %c0 = arith.constant 0 : index
    %2 = arith.index_cast %1 : i32 to index
    %c0_0 = arith.constant 0 : index
    %c0_1 = arith.constant 0 : index
    %3 = vector.load %arg2[%c0, %2, %c0_0, %c0_1] : memref<1x18x18x8xf32, #tpu.memory_space<vmem>>, vector<1x10x18x8xf32>
    %4 = vector.shape_cast %3 : vector<1x10x18x8xf32> to vector<10x18x8xf32>
    %5 = arith.index_cast %1 : i32 to index
    %c0_2 = arith.constant 0 : index
    %c0_3 = arith.constant 0 : index
    %6 = vector.load %arg3[%5, %c0_2, %c0_3] : memref<18x18x1xf32, #tpu.memory_space<vmem>>, vector<10x18x1xf32>
    %c0_4 = arith.constant 0 : index
    %c0_5 = arith.constant 0 : index
    %7 = vector.load %arg5[%c0_4, %c0_5] : memref<1x8xf32, #tpu.memory_space<vmem>>, vector<1x8xf32>
    %8 = vector.shape_cast %7 : vector<1x8xf32> to vector<1x1x8xf32>
    %9 = vector.broadcast %8 : vector<1x1x8xf32> to vector<10x18x8xf32>
    %10 = arith.mulf %4, %9 : vector<10x18x8xf32>
    %c0_6 = arith.constant 0 : index
    %c0_7 = arith.constant 0 : index
    %11 = vector.load %arg6[%c0_6, %c0_7] : memref<1x8xf32, #tpu.memory_space<vmem>>, vector<1x8xf32>
    %12 = vector.shape_cast %11 : vector<1x8xf32> to vector<1x1x8xf32>
    %13 = vector.broadcast %12 : vector<1x1x8xf32> to vector<10x18x8xf32>
    %14 = arith.addf %10, %13 : vector<10x18x8xf32>
    %cst = arith.constant 0.000000e+00 : f32
    %15 = vector.broadcast %cst : f32 to vector<10x18x8xf32>
    %16 = arith.maximumf %14, %15 : vector<10x18x8xf32>
    %17 = vector.broadcast %6 : vector<10x18x1xf32> to vector<10x18x8xf32>
    %18 = arith.mulf %16, %17 : vector<10x18x8xf32>
    %19 = vector.extract_strided_slice %18 {offsets = [0, 0, 0], sizes = [8, 16, 8], strides = [1, 1, 1]} : vector<10x18x8xf32> to vector<8x16x8xf32>
    %20 = vector.extract_strided_slice %18 {offsets = [0, 1, 0], sizes = [8, 16, 8], strides = [1, 1, 1]} : vector<10x18x8xf32> to vector<8x16x8xf32>
    %21 = vector.extract_strided_slice %18 {offsets = [0, 2, 0], sizes = [8, 16, 8], strides = [1, 1, 1]} : vector<10x18x8xf32> to vector<8x16x8xf32>
    %22 = vector.extract_strided_slice %18 {offsets = [1, 0, 0], sizes = [8, 16, 8], strides = [1, 1, 1]} : vector<10x18x8xf32> to vector<8x16x8xf32>
    %23 = vector.extract_strided_slice %18 {offsets = [1, 1, 0], sizes = [8, 16, 8], strides = [1, 1, 1]} : vector<10x18x8xf32> to vector<8x16x8xf32>
    %24 = vector.extract_strided_slice %18 {offsets = [1, 2, 0], sizes = [8, 16, 8], strides = [1, 1, 1]} : vector<10x18x8xf32> to vector<8x16x8xf32>
    %25 = vector.extract_strided_slice %18 {offsets = [2, 0, 0], sizes = [8, 16, 8], strides = [1, 1, 1]} : vector<10x18x8xf32> to vector<8x16x8xf32>
    %26 = vector.extract_strided_slice %18 {offsets = [2, 1, 0], sizes = [8, 16, 8], strides = [1, 1, 1]} : vector<10x18x8xf32> to vector<8x16x8xf32>
    %27 = vector.extract_strided_slice %18 {offsets = [2, 2, 0], sizes = [8, 16, 8], strides = [1, 1, 1]} : vector<10x18x8xf32> to vector<8x16x8xf32>
    %28 = tpu.concatenate %19, %20, %21, %22, %23, %24, %25, %26, %27 in 2 : vector<8x16x8xf32>, vector<8x16x8xf32>, vector<8x16x8xf32>, vector<8x16x8xf32>, vector<8x16x8xf32>, vector<8x16x8xf32>, vector<8x16x8xf32>, vector<8x16x8xf32>, vector<8x16x8xf32> -> vector<8x16x72xf32>
    %29 = vector.shape_cast %28 : vector<8x16x72xf32> to vector<128x72xf32>
    %c0_8 = arith.constant 0 : index
    %c0_9 = arith.constant 0 : index
    %30 = vector.load %arg4[%c0_8, %c0_9] : memref<72x8xf32, #tpu.memory_space<vmem>>, vector<72x8xf32>
    %cst_10 = arith.constant dense<0.000000e+00> : vector<128x8xf32>
    %31 = tpu.matmul %29, %30, %cst_10 {dimension_numbers = #tpu.dot_dimension_numbers<[1], [0], [0], [1], [0, 0, 1, 1], [], []>} : vector<128x72xf32>, vector<72x8xf32>, vector<128x8xf32> -> vector<128x8xf32>
    %32 = vector.shape_cast %31 : vector<128x8xf32> to vector<8x16x8xf32>
    %c0_11 = arith.constant 0 : index
    %c0_12 = arith.constant 0 : index
    %c0_13 = arith.constant 0 : index
    %c0_14 = arith.constant 0 : index
    %33 = vector.load %arg7[%c0_11, %c0_12, %c0_13, %c0_14] : memref<1x8x16x8xf32, #tpu.memory_space<vmem>>, vector<1x8x16x8xf32>
    %34 = vector.shape_cast %33 : vector<1x8x16x8xf32> to vector<8x16x8xf32>
    %35 = vector.shape_cast %32 : vector<8x16x8xf32> to vector<1x8x16x8xf32>
    tpu.vector_store %arg7[%c0_11, %c0_12, %c0_13, %c0_14], %35 {strides = array<i32>} : memref<1x8x16x8xf32, #tpu.memory_space<vmem>>, vector<1x8x16x8xf32>,
    %cst_15 = arith.constant dense<0.000000e+00> : vector<8xf32>
    %36 = vector.multi_reduction <add>, %31, %cst_15 [0] : vector<128x8xf32> to vector<8xf32>
    %37 = vector.shape_cast %36 : vector<8xf32> to vector<1x8xf32>
    %38 = arith.mulf %31, %31 : vector<128x8xf32>
    %cst_16 = arith.constant dense<0.000000e+00> : vector<8xf32>
    %39 = vector.multi_reduction <add>, %38, %cst_16 [0] : vector<128x8xf32> to vector<8xf32>
    %40 = vector.shape_cast %39 : vector<8xf32> to vector<1x8xf32>
    %41 = tpu.concatenate %37, %40 in 0 : vector<1x8xf32>, vector<1x8xf32> -> vector<2x8xf32>
    %c0_17 = arith.constant 0 : index
    %c0_18 = arith.constant 0 : index
    %c0_19 = arith.constant 0 : index
    %c0_20 = arith.constant 0 : index
    %42 = vector.load %arg8[%c0_17, %c0_18, %c0_19, %c0_20] : memref<1x1x2x8xf32, #tpu.memory_space<vmem>>, vector<1x1x2x8xf32>
    %43 = vector.shape_cast %42 : vector<1x1x2x8xf32> to vector<2x8xf32>
    %44 = vector.shape_cast %41 : vector<2x8xf32> to vector<1x1x2x8xf32>
    tpu.vector_store %arg8[%c0_17, %c0_18, %c0_19, %c0_20], %44 {strides = array<i32>} : memref<1x1x2x8xf32, #tpu.memory_space<vmem>>, vector<1x1x2x8xf32>,
    return
  }
  func.func @transform_0(%arg0: i32, %arg1: i32) -> (i32, i32, i32, i32) {
    %c0_i32 = arith.constant 0 : i32
    %c0_i32_0 = arith.constant 0 : i32
    %c0_i32_1 = arith.constant 0 : i32
    %c0_i32_2 = arith.constant 0 : i32
    return %arg0, %c0_i32, %c0_i32_0, %c0_i32_1 : i32, i32, i32, i32
  }
  func.func @transform_1(%arg0: i32, %arg1: i32) -> (i32, i32, i32) {
    %c0_i32 = arith.constant 0 : i32
    %c0_i32_0 = arith.constant 0 : i32
    %c0_i32_1 = arith.constant 0 : i32
    %c0_i32_2 = arith.constant 0 : i32
    return %c0_i32, %c0_i32_0, %c0_i32_1 : i32, i32, i32
  }
  func.func @transform_2(%arg0: i32, %arg1: i32) -> (i32, i32) {
    %c0_i32 = arith.constant 0 : i32
    %c0_i32_0 = arith.constant 0 : i32
    %c0_i32_1 = arith.constant 0 : i32
    return %c0_i32, %c0_i32_0 : i32, i32
  }
  func.func @transform_3(%arg0: i32, %arg1: i32) -> (i32, i32) {
    %c0_i32 = arith.constant 0 : i32
    %c0_i32_0 = arith.constant 0 : i32
    %c0_i32_1 = arith.constant 0 : i32
    return %c0_i32, %c0_i32_0 : i32, i32
  }
  func.func @transform_4(%arg0: i32, %arg1: i32) -> (i32, i32) {
    %c0_i32 = arith.constant 0 : i32
    %c0_i32_0 = arith.constant 0 : i32
    %c0_i32_1 = arith.constant 0 : i32
    return %c0_i32, %c0_i32_0 : i32, i32
  }
  func.func @transform_5(%arg0: i32, %arg1: i32) -> (i32, i32, i32, i32) {
    %c0_i32 = arith.constant 0 : i32
    %c0_i32_0 = arith.constant 0 : i32
    %c0_i32_1 = arith.constant 0 : i32
    return %arg0, %arg1, %c0_i32, %c0_i32_0 : i32, i32, i32, i32
  }
  func.func @transform_6(%arg0: i32, %arg1: i32) -> (i32, i32, i32, i32) {
    %c0_i32 = arith.constant 0 : i32
    %c0_i32_0 = arith.constant 0 : i32
    %c0_i32_1 = arith.constant 0 : i32
    return %arg0, %arg1, %c0_i32, %c0_i32_0 : i32, i32, i32, i32
  }
}

module attributes {stable_mosaic.version = 11 : i64} {
  func.func @bn_concat_relu_kernel(%arg0: i32, %arg1: i32, %arg2: memref<1x8x16x8xf32, #tpu.memory_space<vmem>>, %arg3: memref<1x8x16x8xf32, #tpu.memory_space<vmem>>, %arg4: memref<1x8xf32, #tpu.memory_space<vmem>>, %arg5: memref<1x8xf32, #tpu.memory_space<vmem>>, %arg6: memref<1x8xf32, #tpu.memory_space<vmem>>, %arg7: memref<1x8xf32, #tpu.memory_space<vmem>>, %arg8: memref<1x8x16x16xf32, #tpu.memory_space<vmem>>) attributes {dimension_semantics = [#tpu.dimension_semantics<parallel>, #tpu.dimension_semantics<parallel>], iteration_bounds = array<i64: 2, 2>, scalar_prefetch = 0 : i64, scratch_operands = 0 : i64, tpu.core_type = #tpu.core_type<tc>, window_params = [{transform_indices = @transform_0, window_bounds = array<i64: 1, 8, 16, 8>}, {transform_indices = @transform_1, window_bounds = array<i64: 1, 8, 16, 8>}, {pipeline_mode = #tpu.pipeline_mode<synchronous>, transform_indices = @transform_2, window_bounds = array<i64: 1, 8>}, {pipeline_mode = #tpu.pipeline_mode<synchronous>, transform_indices = @transform_3, window_bounds = array<i64: 1, 8>}, {pipeline_mode = #tpu.pipeline_mode<synchronous>, transform_indices = @transform_4, window_bounds = array<i64: 1, 8>}, {pipeline_mode = #tpu.pipeline_mode<synchronous>, transform_indices = @transform_5, window_bounds = array<i64: 1, 8>}, {transform_indices = @transform_6, window_bounds = array<i64: 1, 8, 16, 16>}]} {
    %c0 = arith.constant 0 : index
    %c0_0 = arith.constant 0 : index
    %c0_1 = arith.constant 0 : index
    %c0_2 = arith.constant 0 : index
    %0 = vector.load %arg2[%c0, %c0_0, %c0_1, %c0_2] : memref<1x8x16x8xf32, #tpu.memory_space<vmem>>, vector<1x8x16x8xf32>
    %1 = vector.shape_cast %0 : vector<1x8x16x8xf32> to vector<8x16x8xf32>
    %c0_3 = arith.constant 0 : index
    %c0_4 = arith.constant 0 : index
    %2 = vector.load %arg4[%c0_3, %c0_4] : memref<1x8xf32, #tpu.memory_space<vmem>>, vector<1x8xf32>
    %3 = vector.shape_cast %2 : vector<1x8xf32> to vector<1x1x8xf32>
    %4 = vector.broadcast %3 : vector<1x1x8xf32> to vector<8x16x8xf32>
    %5 = arith.mulf %1, %4 : vector<8x16x8xf32>
    %c0_5 = arith.constant 0 : index
    %c0_6 = arith.constant 0 : index
    %6 = vector.load %arg5[%c0_5, %c0_6] : memref<1x8xf32, #tpu.memory_space<vmem>>, vector<1x8xf32>
    %7 = vector.shape_cast %6 : vector<1x8xf32> to vector<1x1x8xf32>
    %8 = vector.broadcast %7 : vector<1x1x8xf32> to vector<8x16x8xf32>
    %9 = arith.addf %5, %8 : vector<8x16x8xf32>
    %cst = arith.constant 0.000000e+00 : f32
    %10 = vector.broadcast %cst : f32 to vector<8x16x8xf32>
    %11 = arith.maximumf %9, %10 : vector<8x16x8xf32>
    %c0_7 = arith.constant 0 : index
    %c0_8 = arith.constant 0 : index
    %c0_9 = arith.constant 0 : index
    %c0_10 = arith.constant 0 : index
    %12 = vector.load %arg8[%c0_7, %c0_8, %c0_9, %c0_10] : memref<1x8x16x16xf32, #tpu.memory_space<vmem>>, vector<1x8x16x8xf32>
    %13 = vector.shape_cast %12 : vector<1x8x16x8xf32> to vector<8x16x8xf32>
    %14 = vector.shape_cast %11 : vector<8x16x8xf32> to vector<1x8x16x8xf32>
    tpu.vector_store %arg8[%c0_7, %c0_8, %c0_9, %c0_10], %14 {strides = array<i32>} : memref<1x8x16x16xf32, #tpu.memory_space<vmem>>, vector<1x8x16x8xf32>,
    %c0_11 = arith.constant 0 : index
    %c0_12 = arith.constant 0 : index
    %c0_13 = arith.constant 0 : index
    %c0_14 = arith.constant 0 : index
    %15 = vector.load %arg3[%c0_11, %c0_12, %c0_13, %c0_14] : memref<1x8x16x8xf32, #tpu.memory_space<vmem>>, vector<1x8x16x8xf32>
    %16 = vector.shape_cast %15 : vector<1x8x16x8xf32> to vector<8x16x8xf32>
    %c0_15 = arith.constant 0 : index
    %c0_16 = arith.constant 0 : index
    %17 = vector.load %arg6[%c0_15, %c0_16] : memref<1x8xf32, #tpu.memory_space<vmem>>, vector<1x8xf32>
    %18 = vector.shape_cast %17 : vector<1x8xf32> to vector<1x1x8xf32>
    %19 = vector.broadcast %18 : vector<1x1x8xf32> to vector<8x16x8xf32>
    %20 = arith.mulf %16, %19 : vector<8x16x8xf32>
    %c0_17 = arith.constant 0 : index
    %c0_18 = arith.constant 0 : index
    %21 = vector.load %arg7[%c0_17, %c0_18] : memref<1x8xf32, #tpu.memory_space<vmem>>, vector<1x8xf32>
    %22 = vector.shape_cast %21 : vector<1x8xf32> to vector<1x1x8xf32>
    %23 = vector.broadcast %22 : vector<1x1x8xf32> to vector<8x16x8xf32>
    %24 = arith.addf %20, %23 : vector<8x16x8xf32>
    %cst_19 = arith.constant 0.000000e+00 : f32
    %25 = vector.broadcast %cst_19 : f32 to vector<8x16x8xf32>
    %26 = arith.maximumf %24, %25 : vector<8x16x8xf32>
    %c0_20 = arith.constant 0 : index
    %c0_21 = arith.constant 0 : index
    %c0_22 = arith.constant 0 : index
    %c8 = arith.constant 8 : index
    %27 = vector.load %arg8[%c0_20, %c0_21, %c0_22, %c8] : memref<1x8x16x16xf32, #tpu.memory_space<vmem>>, vector<1x8x16x8xf32>
    %28 = vector.shape_cast %27 : vector<1x8x16x8xf32> to vector<8x16x8xf32>
    %29 = vector.shape_cast %26 : vector<8x16x8xf32> to vector<1x8x16x8xf32>
    tpu.vector_store %arg8[%c0_20, %c0_21, %c0_22, %c8], %29 {strides = array<i32>} : memref<1x8x16x16xf32, #tpu.memory_space<vmem>>, vector<1x8x16x8xf32>,
    return
  }
  func.func @transform_0(%arg0: i32, %arg1: i32) -> (i32, i32, i32, i32) {
    %c0_i32 = arith.constant 0 : i32
    %c0_i32_0 = arith.constant 0 : i32
    %c0_i32_1 = arith.constant 0 : i32
    return %arg0, %arg1, %c0_i32, %c0_i32_0 : i32, i32, i32, i32
  }
  func.func @transform_1(%arg0: i32, %arg1: i32) -> (i32, i32, i32, i32) {
    %c0_i32 = arith.constant 0 : i32
    %c0_i32_0 = arith.constant 0 : i32
    %c0_i32_1 = arith.constant 0 : i32
    return %arg0, %arg1, %c0_i32, %c0_i32_0 : i32, i32, i32, i32
  }
  func.func @transform_2(%arg0: i32, %arg1: i32) -> (i32, i32) {
    %c0_i32 = arith.constant 0 : i32
    %c0_i32_0 = arith.constant 0 : i32
    %c0_i32_1 = arith.constant 0 : i32
    return %c0_i32, %c0_i32_0 : i32, i32
  }
  func.func @transform_3(%arg0: i32, %arg1: i32) -> (i32, i32) {
    %c0_i32 = arith.constant 0 : i32
    %c0_i32_0 = arith.constant 0 : i32
    %c0_i32_1 = arith.constant 0 : i32
    return %c0_i32, %c0_i32_0 : i32, i32
  }
  func.func @transform_4(%arg0: i32, %arg1: i32) -> (i32, i32) {
    %c0_i32 = arith.constant 0 : i32
    %c0_i32_0 = arith.constant 0 : i32
    %c0_i32_1 = arith.constant 0 : i32
    return %c0_i32, %c0_i32_0 : i32, i32
  }
  func.func @transform_5(%arg0: i32, %arg1: i32) -> (i32, i32) {
    %c0_i32 = arith.constant 0 : i32
    %c0_i32_0 = arith.constant 0 : i32
    %c0_i32_1 = arith.constant 0 : i32
    return %c0_i32, %c0_i32_0 : i32, i32
  }
  func.func @transform_6(%arg0: i32, %arg1: i32) -> (i32, i32, i32, i32) {
    %c0_i32 = arith.constant 0 : i32
    %c0_i32_0 = arith.constant 0 : i32
    %c0_i32_1 = arith.constant 0 : i32
    return %arg0, %arg1, %c0_i32, %c0_i32_0 : i32, i32, i32, i32
  }
}

</mosaic_0001>

<bundles_post_ra>
// kernel: res_unet_encoder_block.3
= control target key start
LH: loop header
LB: loop body
LE: loop exit
PB: predicated region body
PF: predicated region fallthrough
CT: control target
= control target key end

     0   :  { %s2059_s18 = smov 0   ;;  %s2061_s19 = smov 0   ;;  %s2935_s0 = inlined_call_operand.vmem [shape: f32[2,18,18,4], index: 0, kind: input, shape index: {}]   ;;  %s2936_s1 = inlined_call_operand.vmem [shape: f32[36,8], index: 1, kind: input, shape index: {}]   ;;  %s2937_s2 = inlined_call_operand.vmem [shape: f32[4,8], index: 2, kind: input, shape index: {}]   ;;  %s2938_s3 = inlined_call_operand.vmem [shape: f32[2,16,16,8], index: 3, kind: output, shape index: {0}]   ;;  %s2939_s4 = inlined_call_operand.vmem [shape: f32[2,16,16,8], index: 4, kind: output, shape index: {1}]   ;;  %s2940_s5 = inlined_call_operand.vmem [shape: f32[2,2,4,8], index: 5, kind: output, shape index: {2}]  }
   0x1   :  { %s2063_s20 = smov 0   ;;  %s2065_s21 = smov 0  }
   0x2   :  { %s2067_s22 = smov 0  }
   0x3 LB: > { %s25_s23 = sadd.s32 1, %s2011_s20  ;;  %s28_s24 = sadd.s32 1, %s2015_s21  ;;  %s2019_s22 = sphi %s2067_s22, %s16_s22   ;;  %s2015_s21 = sphi %s2065_s21, %s2944_s21   ;;  %s2011_s20 = sphi %s2063_s20, %s2943_s20   ;;  %s2007_s19 = sphi %s2061_s19, %s2942_s19   ;;  %s2003_s18 = sphi %s2059_s18, %s2941_s18  }
   0x4   : > { %p26_p0 = scmp.ge.s32.totalorder %s25_s23, 2  ;;  %p1784_p1 = scmp.ge.s32.totalorder %s2019_s22, 1 }
   0x5   : > { %p210_p2 = scmp.lt.s32.totalorder %s2019_s22, 5 }
   0x6   : > { %s2946_s23 = smov (%p26_p0, %s25_s23), 0  ;;  %s2948_s24 = smov (!%p26_p0, %s28_s24), %s2015_s21 }
   0x7   : > { %p211_p3 = pnand %p1784_p1, %p210_p2  ;;  %p30_p4 = scmp.ge.s32.totalorder %s2948_s24, 2 }
   0x8   : > { %p261_p5 = scmp.lt.s32.totalorder (!%p211_p3), %s2007_s19, 1  ;;  %s1797_s25 = smul.u32 (!%p211_p3), 192, %s2003_s18 }
   0x9   : > { %s2950_s24 = smov (%p30_p4, %s2948_s24), 0  ;;  %214 = sbr.rel (%p211_p3) target bundleno = 607 (0x25f), region = 32 }
   0xa   : > { %s2021_s6 = smov (!%p211_p3), 12   ;;  %s2022_s7 = smov (!%p211_p3), 8  }
   0xb   : > { %s2023_s8 = smov (!%p211_p3), 4   ;;  %s2024_s9 = smov (!%p211_p3), 16  }
   0xc   : > { %s2025_s10 = smov (!%p211_p3), 20   ;;  %s2026_s11 = smov (!%p211_p3), 24  }
   0xd   : > { %s2027_s27 = smov (!%p211_p3), 28   ;;  %s2028_s12 = smov (!%p211_p3), 32  }
   0xe   : > { %s2952_s19 = smov (!%p261_p5, %s2007_s19), 1  ;;  %vm442_vm0 = vcmask 1045504   ;;  %vm353_vm1 = vcmask 1046528   ;;  %vm845_vm2 = vcmask 31744   ;;  %v985_v28 = vld [vmem:[%s2936_s1 + $0x20] sm:$0xf] }
   0xf   : > { %s1932_s26 = smul.u32 432, %s2952_s19  ;;  %vm1035_vm3 = vcmask 1043456   ;;  %v984_v31 = vld [vmem:[%s2936_s1 + $0x18] sm:$0xff]  ;;  %v983_v33 = vld [vmem:[%s2936_s1 + $0x10] sm:$0xff]  ;;  %v982_v35 = vld [vmem:[%s2936_s1 + $0x8] sm:$0xff]  ;;  %vm862_vm4 = vcmask 64512  }
  0x10   : > { %1872 = vmatprep.subr.msk.mxu0 %vm1035_vm3, %v985_v28  ;;  %v981_v39 = vld [vmem:[%s2936_s1] sm:$0xff]  ;;  %vm879_vm5 = vcmask 97280   ;;  %vm896_vm6 = vcmask 130048   ;;  %vm913_vm7 = vcmask 162816   ;;  %vm930_vm8 = vcmask 195584   ;;  %p290_p7 = scmp.lt.s32.totalorder %s2003_s18, 1 }
  0x11   : > { %s265_s29 = scalar_lea.vmem %s2935_s0, %s1932_s26  ;;  %1873 = vmatpush3.msk.msra.mxu0 %vm1035_vm3, %v985_v28  ;;  %vm947_vm9 = vcmask 228352   ;;  %vm964_vm10 = vcmask 261120   ;;  %vm986_vm11 = vcmask 293888   ;;  %s1794_s26 = sshll.u32 %s2952_s19, 1  ;;  %vm1577_vm12 = vcmask 1040384  }
  0x12   : > { %s2098_s30 = scalar_lea.vmem %s265_s29, %s1797_s25  ;;  %1874 = vmatprep.subr.mxu0 %v984_v31  ;;  %vm1579_vm13 = vcmask 1041408   ;;  %vm1581_vm14 = vcmask 1042432   ;;  %vm1583_vm15 = vcmask 60416  }
  0x13   : > { %v2101_v0 = vld [vmem:[%s2098_s30 + $0x20] sm:$0xff]  ;;  %v2104_v1 = vld [vmem:[%s2098_s30 + $0x18] sm:$0xff]  ;;  %v2114_v3 = vld [vmem:[%s2098_s30 + $0x8] sm:$0xff]  ;;  %1875 = vmatpush3.msra.mxu0 %v984_v31 }
  0x14   : > { %v2107_v2 = vld [vmem:[%s2098_s30] sm:$0xff]  ;;  %535 = vrot.lane.b32.xlu1 %v2101_v0, %s2021_s6  ;;  %533 = vrot.lane.b32.xlu0 %v2104_v1, %s2021_s6  ;;  %v301_v6 = vld [vmem:[%s2098_s30 + $0x10] sm:$0x3]  ;;  %v359_v7 = vrot.slane %v2104_v1, 1  ;;  %v444_v8 = vrot.slane %v2114_v3, 2  ;;  %v355_v9 = vrot.slane %v2114_v3, 1 }
  0x15   : > { %v443_v4 = vrot.slane %v2107_v2, 2  ;;  %v354_v5 = vrot.slane %v2107_v2, 1  ;;  %v446_v10 = vrot.slane %v301_v6, 2  ;;  %v357_v11 = vrot.slane %v301_v6, 1  ;;  %v304_v18 = vld [vmem:[%s2098_s30 + $0x28] sm:$0x3]  ;;  %1876 = vmatprep.subr.mxu0 %v983_v33 }
  0x16   : > { %v360_v12 = vrot.slane %v2101_v0, 1  ;;  %v448_v19 = vrot.slane %v2104_v1, 2  ;;  %v449_v20 = vrot.slane %v2101_v0, 2  ;;  %v362_v21 = vrot.slane %v304_v18, 1  ;;  %v2149_v25 = vld [vmem:[%s2098_s30 + $0x30] sm:$0xff]  ;;  %v2153_v27 = vld [vmem:[%s2098_s30 + $0x38] sm:$0xff]  ;;  %1877 = vmatpush3.msra.mxu0 %v983_v33 }
  0x17   : > { %v445_v13 = vsel %vm442_vm0, %v443_v4, %v444_v8  ;;  %v356_v14 = vsel %vm353_vm1, %v354_v5, %v355_v9  ;;  %v447_v16 = vsel %vm442_vm0, %v444_v8, %v446_v10  ;;  %v358_v17 = vsel %vm353_vm1, %v355_v9, %v357_v11  ;;  %v307_v34 = vld [vmem:[%s2098_s30 + $0x40] sm:$0x3]  ;;  %1878 = vmatprep.subr.mxu0 %v982_v35  ;;  %v2212_v44 = vld [vmem:[%s2098_s30 + $0x48] sm:$0xff]  ;;  %v2215_v45 = vld [vmem:[%s2098_s30 + $0x50] sm:$0xff] }
  0x18   : > { %483 = vrot.lane.b32.xlu1 %v445_v13, %s2022_s7  ;;  %394 = vrot.lane.b32.xlu0 %v356_v14, %s2023_s8  ;;  %v361_v15 = vsel %vm353_vm1, %v359_v7, %v360_v12  ;;  %v450_v22 = vsel %vm442_vm0, %v448_v19, %v449_v20  ;;  %v2140_v23 = vsel %vm353_vm1, %v360_v12, %v362_v21  ;;  %v451_v24 = vrot.slane %v304_v18, 2  ;;  %v310_v49 = vld [vmem:[%s2098_s30 + $0x58] sm:$0x3]  ;;  %v2257_v57 = vld [vmem:[%s2098_s30 + $0x60] sm:$0xff] }
  0x19   : > { %1908 = vmatprep.mubr.msk.f32.mxu1 %vm845_vm2, %v361_v15  ;;  %v364_v29 = vrot.slane %v2149_v25, 1  ;;  %v365_v30 = vrot.slane %v2153_v27, 1  ;;  %v453_v36 = vrot.slane %v2149_v25, 2  ;;  %v454_v37 = vrot.slane %v2153_v27, 2  ;;  %1879 = vmatpush3.msra.mxu0 %v982_v35  ;;  %v2260_v58 = vld [vmem:[%s2098_s30 + $0x68] sm:$0xff]  ;;  %v2304_v12 = vld [vmem:[%s2098_s30 + $0x78] sm:$0xff] }
  0x1a   : > { %v452_v26 = vsel %vm442_vm0, %v449_v20, %v451_v24  ;;  %v367_v38 = vrot.slane %v307_v34, 1  ;;  %1880 = vmatprep.subr.mxu0 %v981_v39  ;;  %v456_v42 = vrot.slane %v307_v34, 2  ;;  %v369_v46 = vrot.slane %v2212_v44, 1  ;;  %v313_v62 = vld [vmem:[%s2098_s30 + $0x70] sm:$0x3] }
  0x1b   : > { %v2172_v32 = vsel %vm353_vm1, %v364_v29, %v365_v30  ;;  %v455_v40 = vsel %vm442_vm0, %v453_v36, %v454_v37  ;;  %1881 = vmatpush3.msra.mxu0 %v981_v39  ;;  %v370_v47 = vrot.slane %v2215_v45, 1  ;;  %v458_v50 = vrot.slane %v2212_v44, 2  ;;  %v316_v24 = vld [vmem:[%s2098_s30 + $0x88] sm:$0x3] }
  0x1c   : > { %485 = vrot.lane.b32.xlu1 %v447_v16, %s2022_s7  ;;  %396 = vrot.lane.b32.xlu0 %v358_v17, %s2023_s8  ;;  %v2196_v41 = vsel %vm353_vm1, %v365_v30, %v367_v38  ;;  %v457_v43 = vsel %vm442_vm0, %v454_v37, %v456_v42  ;;  %v459_v51 = vrot.slane %v2215_v45, 2  ;;  %v372_v52 = vrot.slane %v310_v49, 1 }
  0x1d   : > { %v2226_v48 = vsel %vm353_vm1, %v369_v46, %v370_v47  ;;  %v461_v55 = vrot.slane %v310_v49, 2  ;;  %v374_v59 = vrot.slane %v2257_v57, 1  ;;  %v375_v60 = vrot.slane %v2260_v58, 1 }
  0x1e   : > { %v460_v53 = vsel %vm442_vm0, %v458_v50, %v459_v51  ;;  %v2241_v54 = vsel %vm353_vm1, %v370_v47, %v372_v52  ;;  %v463_v63 = vrot.slane %v2257_v57, 2  ;;  %v464_v4 = vrot.slane %v2260_v58, 2 }
  0x1f   : > { %v462_v56 = vsel %vm442_vm0, %v459_v51, %v461_v55  ;;  %v2271_v61 = vsel %vm353_vm1, %v374_v59, %v375_v60  ;;  %v377_v5 = vrot.slane %v313_v62, 1  ;;  %v466_v8 = vrot.slane %v313_v62, 2  ;;  %v2364_v51 = vld [vmem:[%s2098_s30 + $0x90] sm:$0xff]  ;;  %v2372_v55 = vld [vmem:[%s2098_s30 + $0x98] sm:$0xff] }
  0x20   : > { %398 = vrot.lane.b32.xlu1 %v361_v15, %s2023_s8  ;;  %587 = vrot.lane.b32.xlu0 %v361_v15, %s2024_s9  ;;  %v465_v6 = vsel %vm442_vm0, %v463_v63, %v464_v4  ;;  %v2307_v15 = vld [vmem:[%s2098_s30 + $0x80] sm:$0xff]  ;;  %v379_v16 = vrot.slane %v2304_v12, 1  ;;  %v382_v29 = vrot.slane %v316_v24, 1  ;;  %v471_v37 = vrot.slane %v316_v24, 2 }
  0x21   : > { %v2286_v7 = vsel %vm353_vm1, %v375_v60, %v377_v5  ;;  %v467_v9 = vsel %vm442_vm0, %v464_v4, %v466_v8  ;;  %v380_v17 = vrot.slane %v2307_v15, 1  ;;  %v469_v28 = vrot.slane %v2307_v15, 2 }
  0x22   : > { %v384_v63 = vrot.slane %v2364_v51, 1  ;;  %v385_v4 = vrot.slane %v2372_v55, 1  ;;  %v473_v24 = vrot.slane %v2364_v51, 2 }
  0x23   : > { %v2320_v20 = vsel %vm353_vm1, %v379_v16, %v380_v17  ;;  %v2337_v34 = vsel %vm353_vm1, %v380_v17, %v382_v29  ;;  %v319_v17 = vld [vmem:[%s2098_s30 + $0xa0] sm:$0x3] }
  0x24   : > { %640 = vrot.lane.b32.xlu1 %v450_v22, %s2025_s10  ;;  %589 = vrot.lane.b32.xlu0 %v2140_v23, %s2024_s9 }
  0x28   : > { %487 = vrot.lane.b32.xlu1 %v450_v22, %s2022_s7  ;;  %400 = vrot.lane.b32.xlu0 %v2140_v23, %s2023_s8 }
  0x2c   : > { %690 = vrot.lane.b32.xlu1 %v2149_v25, %s2026_s11  ;;  %642 = vrot.lane.b32.xlu0 %v452_v26, %s2025_s10 }
  0x30   : > { %537 = vrot.lane.b32.xlu1 %v2149_v25, %s2021_s6  ;;  %489 = vrot.lane.b32.xlu0 %v452_v26, %s2022_s7  ;;  %v468_v26 = vrot.slane %v2304_v12, 2 }
  0x32   : > { %v470_v33 = vsel %vm442_vm0, %v468_v26, %v469_v28  ;;  %v387_v26 = vrot.slane %v319_v17, 1 }
  0x34   : > { %744 = vrot.lane.b32.xlu1 %v2172_v32, %s2027_s27  ;;  %692 = vrot.lane.b32.xlu0 %v2153_v27, %s2026_s11 }
  0x38   : > { %591 = vrot.lane.b32.xlu1 %v2172_v32, %s2024_s9  ;;  %539 = vrot.lane.b32.xlu0 %v2153_v27, %s2021_s6 }
  0x3c   : > { %797 = vrot.lane.b32.xlu1 %v455_v40, %s2028_s12  ;;  %746 = vrot.lane.b32.xlu0 %v2196_v41, %s2027_s27 }
  0x40   : > { %593 = vrot.lane.b32.xlu1 %v2196_v41, %s2024_s9  ;;  %402 = vrot.lane.b32.xlu0 %v2172_v32, %s2023_s8 }
  0x44   : > { %799 = vrot.lane.b32.xlu1 %v457_v43, %s2028_s12  ;;  %644 = vrot.lane.b32.xlu0 %v455_v40, %s2025_s10 }
  0x48   : > { %491 = vrot.lane.b32.xlu1 %v455_v40, %s2022_s7  ;;  %404 = vrot.lane.b32.xlu0 %v2196_v41, %s2023_s8  ;;  %v472_v40 = vsel %vm442_vm0, %v469_v28, %v471_v37  ;;  %v2420_v37 = vsel %vm353_vm1, %v385_v4, %v387_v26 }
  0x4c   : > { %694 = vrot.lane.b32.xlu1 %v2212_v44, %s2026_s11  ;;  %646 = vrot.lane.b32.xlu0 %v457_v43, %s2025_s10 }
  0x50   : > { %541 = vrot.lane.b32.xlu1 %v2212_v44, %s2021_s6  ;;  %493 = vrot.lane.b32.xlu0 %v457_v43, %s2022_s7 }
  0x54   : > { %748 = vrot.lane.b32.xlu1 %v2226_v48, %s2027_s27  ;;  %696 = vrot.lane.b32.xlu0 %v2215_v45, %s2026_s11 }
  0x58   : > { %595 = vrot.lane.b32.xlu1 %v2226_v48, %s2024_s9  ;;  %543 = vrot.lane.b32.xlu0 %v2215_v45, %s2021_s6 }
  0x5c   : > { %801 = vrot.lane.b32.xlu1 %v460_v53, %s2028_s12  ;;  %750 = vrot.lane.b32.xlu0 %v2241_v54, %s2027_s27 }
  0x60   : > { %597 = vrot.lane.b32.xlu1 %v2241_v54, %s2024_s9  ;;  %406 = vrot.lane.b32.xlu0 %v2226_v48, %s2023_s8 }
  0x64   : > { %803 = vrot.lane.b32.xlu1 %v462_v56, %s2028_s12  ;;  %648 = vrot.lane.b32.xlu0 %v460_v53, %s2025_s10 }
  0x68   : > { %495 = vrot.lane.b32.xlu1 %v460_v53, %s2022_s7  ;;  %408 = vrot.lane.b32.xlu0 %v2241_v54, %s2023_s8 }
  0x6c   : > { %698 = vrot.lane.b32.xlu1 %v2257_v57, %s2026_s11  ;;  %650 = vrot.lane.b32.xlu0 %v462_v56, %s2025_s10 }
  0x70   : > { %545 = vrot.lane.b32.xlu1 %v2257_v57, %s2021_s6  ;;  %497 = vrot.lane.b32.xlu0 %v462_v56, %s2022_s7 }
  0x74   : > { %752 = vrot.lane.b32.xlu1 %v2271_v61, %s2027_s27  ;;  %700 = vrot.lane.b32.xlu0 %v2260_v58, %s2026_s11 }
  0x78   : > { %599 = vrot.lane.b32.xlu1 %v2271_v61, %s2024_s9  ;;  %547 = vrot.lane.b32.xlu0 %v2260_v58, %s2021_s6 }
  0x7c   : > { %805 = vrot.lane.b32.xlu1 %v465_v6, %s2028_s12  ;;  %754 = vrot.lane.b32.xlu0 %v2286_v7, %s2027_s27 }
  0x80   : > { %601 = vrot.lane.b32.xlu1 %v2286_v7, %s2024_s9  ;;  %410 = vrot.lane.b32.xlu0 %v2271_v61, %s2023_s8 }
  0x84   : > { %807 = vrot.lane.b32.xlu1 %v467_v9, %s2028_s12  ;;  %652 = vrot.lane.b32.xlu0 %v465_v6, %s2025_s10 }
  0x86   : > { %v2298_v10 = vpop.permute.xlu1 %535  ;;  %v534_v11 = vpop.permute.xlu0 %533 }
  0x88   : > { %499 = vrot.lane.b32.xlu1 %v465_v6, %s2022_s7  ;;  %412 = vrot.lane.b32.xlu0 %v2286_v7, %s2023_s8 }
  0x8a   : > { %v484_v13 = vpop.permute.xlu1 %483  ;;  %v395_v14 = vpop.permute.xlu0 %394 }
  0x8b   : > { %v846_v46 = vsel %vm845_vm2, %v2107_v2, %v395_v14 }
  0x8c   : > { %702 = vrot.lane.b32.xlu1 %v2304_v12, %s2026_s11  ;;  %654 = vrot.lane.b32.xlu0 %v467_v9, %s2025_s10  ;;  %v863_v50 = vsel %vm862_vm4, %v846_v46, %v484_v13 }
  0x8d   : > { %v880_v2 = vsel %vm879_vm5, %v863_v50, %v534_v11  ;;  %v2393_v11 = vsel %vm353_vm1, %v384_v63, %v385_v4  ;;  %v2449_v63 = vld [vmem:[%s2098_s30 + $0xa8] sm:$0xff] }
  0x8e   : > { %v2314_v18 = vpop.permute.xlu1 %485  ;;  %v397_v19 = vpop.permute.xlu0 %396 }
  0x8f   : > { %v847_v59 = vsel %vm845_vm2, %v2114_v3, %v397_v19 }
  0x90   : > { %549 = vrot.lane.b32.xlu1 %v2304_v12, %s2021_s6  ;;  %501 = vrot.lane.b32.xlu0 %v467_v9, %s2022_s7  ;;  %v864_v3 = vsel %vm862_vm4, %v847_v59, %v2314_v18 }
  0x91   : > { %v881_v13 = vsel %vm879_vm5, %v864_v3, %v2298_v10  ;;  %v474_v10 = vrot.slane %v2372_v55, 2 }
  0x92   : > { %v2322_v21 = vpop.permute.xlu1 %398  ;;  %v588_v22 = vpop.permute.xlu0 %587 }
  0x93   : > { %v897_v56 = vsel %vm896_vm6, %v880_v2, %v588_v22 }
  0x94   : > { %756 = vrot.lane.b32.xlu1 %v2320_v20, %s2027_s27  ;;  %704 = vrot.lane.b32.xlu0 %v2307_v15, %s2026_s11 }
  0x96   : > { %v641_v30 = vpop.permute.xlu1 %640  ;;  %v590_v31 = vpop.permute.xlu0 %589 }
  0x97   : > { %v914_v60 = vsel %vm913_vm7, %v897_v56, %v641_v30  ;;  %v898_v18 = vsel %vm896_vm6, %v881_v13, %v590_v31 }
  0x98   : > { %603 = vrot.lane.b32.xlu1 %v2320_v20, %s2024_s9  ;;  %551 = vrot.lane.b32.xlu0 %v2307_v15, %s2021_s6 }
  0x9a   : > { %v2339_v35 = vpop.permute.xlu1 %487  ;;  %v2341_v36 = vpop.permute.xlu0 %400 }
  0x9c   : > { %809 = vrot.lane.b32.xlu1 %v470_v33, %s2028_s12  ;;  %758 = vrot.lane.b32.xlu0 %v2337_v34, %s2027_s27 }
  0x9e   : > { %v691_v38 = vpop.permute.xlu1 %690  ;;  %v643_v39 = vpop.permute.xlu0 %642 }
  0x9f   : > { %v931_v62 = vsel %vm930_vm8, %v914_v60, %v691_v38  ;;  %v915_v19 = vsel %vm913_vm7, %v898_v18, %v643_v39  ;;  %v848_v60 = vsel %vm845_vm2, %v2104_v1, %v2322_v21  ;;  %v849_v18 = vsel %vm845_vm2, %v2101_v0, %v2341_v36  ;;  %v322_v0 = vld [vmem:[%s2098_s30 + $0xb8] sm:$0x3] }
  0xa0   : > { %605 = vrot.lane.b32.xlu1 %v2337_v34, %s2024_s9  ;;  %414 = vrot.lane.b32.xlu0 %v2320_v20, %s2023_s8 }
  0xa2   : > { %v2351_v42 = vpop.permute.xlu1 %537  ;;  %v2353_v43 = vpop.permute.xlu0 %489 }
  0xa4   : > { %811 = vrot.lane.b32.xlu1 %v472_v40, %s2028_s12  ;;  %656 = vrot.lane.b32.xlu0 %v470_v33, %s2025_s10 }
  0xa6   : > { %v745_v47 = vpop.permute.xlu1 %744  ;;  %v693_v49 = vpop.permute.xlu0 %692 }
  0xa7   : > { %v948_v5 = vsel %vm947_vm9, %v931_v62, %v745_v47  ;;  %v932_v22 = vsel %vm930_vm8, %v915_v19, %v693_v49  ;;  %v865_v62 = vsel %vm862_vm4, %v848_v60, %v2339_v35  ;;  %v866_v19 = vsel %vm862_vm4, %v849_v18, %v2353_v43 }
  0xa8   : > { %503 = vrot.lane.b32.xlu1 %v470_v33, %s2022_s7  ;;  %416 = vrot.lane.b32.xlu0 %v2337_v34, %s2023_s8  ;;  %v475_v33 = vsel %vm442_vm0, %v473_v24, %v474_v10  ;;  %v882_v4 = vsel %vm879_vm5, %v865_v62, %v2351_v42  ;;  %v389_v42 = vrot.slane %v2449_v63, 1 }
  0xaa   : > { %v2367_v52 = vpop.permute.xlu1 %591  ;;  %v2369_v53 = vpop.permute.xlu0 %539 }
  0xab   : > { %v899_v1 = vsel %vm896_vm6, %v882_v4, %v2367_v52  ;;  %v883_v24 = vsel %vm879_vm5, %v866_v19, %v2369_v53  ;;  %v478_v53 = vrot.slane %v2449_v63, 2  ;;  %v1200_v4 = vld [vmem:[%s2937_s2] sm:$0xf] }
  0xac   : > { %706 = vrot.lane.b32.xlu1 %v2364_v51, %s2026_s11  ;;  %658 = vrot.lane.b32.xlu0 %v472_v40, %s2025_s10 }
  0xad   : > { %1906 = vmatprep.subr.msk.mxu1 %vm1035_vm3, %v1200_v4 }
  0xae   : > { %v798_v6 = vpop.permute.xlu1 %797  ;;  %v747_v8 = vpop.permute.xlu0 %746  ;;  %1907 = vmatpush3.msk.msra.mxu1 %vm1035_vm3, %v1200_v4  ;;  %v328_v4 = vld [vmem:[%s2098_s30 + $0xe8] sm:$0x3] }
  0xaf   : > { %v965_v9 = vsel %vm964_vm10, %v948_v5, %v798_v6  ;;  %v949_v28 = vsel %vm947_vm9, %v932_v22, %v747_v8  ;;  %v2458_v8 = vld [vmem:[%s2098_s30 + $0xb0] sm:$0xff]  ;;  %1909 = vmatmul.mubr.msk.f32.vlgmr.msra.gmra.mxu1 %vm845_vm2, %v2140_v23 }
  0xb0   : > { %553 = vrot.lane.b32.xlu1 %v2364_v51, %s2021_s6  ;;  %505 = vrot.lane.b32.xlu0 %v472_v40, %s2022_s7  ;;  %v476_v40 = vrot.slane %v319_v17, 2  ;;  %v390_v3 = vrot.slane %v2458_v8, 1 }
  0xb1   : > { %1882 = vmatprep.mubr.msk.f32.mxu0 %vm986_vm11, %v965_v9  ;;  %1911 = vmatprep.mubr.msk.f32.mxu1 %vm845_vm2, %v2172_v32 }
  0xb2   : > { %v2397_v14 = vpop.permute.xlu1 %593  ;;  %v2399_v16 = vpop.permute.xlu0 %402  ;;  %v477_v49 = vsel %vm442_vm0, %v474_v10, %v476_v40  ;;  %v2481_v22 = vsel %vm353_vm1, %v389_v42, %v390_v3 }
  0xb3   : > { %v900_v36 = vsel %vm896_vm6, %v883_v24, %v2397_v14  ;;  %1912 = vmatmul.mubr.msk.f32.gmra.mxu1 %vm845_vm2, %v2196_v41 }
  0xb4   : > { %760 = vrot.lane.b32.xlu1 %v2393_v11, %s2027_s27  ;;  %708 = vrot.lane.b32.xlu0 %v2372_v55, %s2026_s11 }
  0xb5   : > { %1914 = vmatprep.mubr.msk.f32.mxu1 %vm845_vm2, %v2226_v48 }
  0xb6   : > { %v800_v29 = vpop.permute.xlu1 %799  ;;  %v645_v30 = vpop.permute.xlu0 %644 }
  0xb7   : > { %v966_v31 = vsel %vm964_vm10, %v949_v28, %v800_v29  ;;  %v916_v21 = vsel %vm913_vm7, %v899_v1, %v645_v30  ;;  %v479_v29 = vrot.slane %v2458_v8, 2  ;;  %v392_v30 = vrot.slane %v322_v0, 1  ;;  %1915 = vmatmul.mubr.msk.f32.gmra.mxu1 %vm845_vm2, %v2241_v54 }
  0xb8   : > { %607 = vrot.lane.b32.xlu1 %v2393_v11, %s2024_s9  ;;  %555 = vrot.lane.b32.xlu0 %v2372_v55, %s2021_s6 }
  0xb9   : > { %1883 = vmatmul.mubr.msk.f32.vlgmr.msra.gmra.mxu0 %vm986_vm11, %v966_v31  ;;  %1917 = vmatprep.mubr.msk.f32.mxu1 %vm845_vm2, %v2271_v61 }
  0xba   : > { %v2422_v38 = vpop.permute.xlu1 %491  ;;  %v2424_v39 = vpop.permute.xlu0 %404 }
  0xbb   : > { %1918 = vmatmul.mubr.msk.f32.gmra.mxu1 %vm845_vm2, %v2286_v7  ;;  %v851_v24 = vsel %vm845_vm2, %v2153_v27, %v2424_v39  ;;  %v325_v39 = vld [vmem:[%s2098_s30 + $0xd0] sm:$0x3] }
  0xbc   : > { %813 = vrot.lane.b32.xlu1 %v475_v33, %s2028_s12  ;;  %762 = vrot.lane.b32.xlu0 %v2420_v37, %s2027_s27 }
  0xbd   : > { %1920 = vmatprep.mubr.msk.f32.mxu1 %vm845_vm2, %v2320_v20 }
  0xbe   : > { %v695_v46 = vpop.permute.xlu1 %694  ;;  %v647_v47 = vpop.permute.xlu0 %646 }
  0xbf   : > { %v933_v35 = vsel %vm930_vm8, %v916_v21, %v695_v46  ;;  %v917_v28 = vsel %vm913_vm7, %v900_v36, %v647_v47  ;;  %v480_v46 = vsel %vm442_vm0, %v478_v53, %v479_v29  ;;  %v2509_v47 = vsel %vm353_vm1, %v390_v3, %v392_v30  ;;  %1921 = vmatmul.mubr.msk.f32.gmra.mxu1 %vm845_vm2, %v2337_v34 }
  0xc0   : > { %609 = vrot.lane.b32.xlu1 %v2420_v37, %s2024_s9  ;;  %418 = vrot.lane.b32.xlu0 %v2393_v11, %s2023_s8  ;;  %v585_v53 = vrot.slane %v325_v39, 1 }
  0xc1   : > { %1923 = vmatprep.mubr.msk.f32.mxu1 %vm845_vm2, %v2393_v11 }
  0xc2   : > { %v2434_v50 = vpop.permute.xlu1 %541  ;;  %v2436_v2 = vpop.permute.xlu0 %493 }
  0xc3   : > { %v868_v61 = vsel %vm862_vm4, %v851_v24, %v2436_v2  ;;  %1924 = vmatmul.mubr.msk.f32.gmra.mxu1 %vm845_vm2, %v2420_v37 }
  0xc4   : > { %815 = vrot.lane.b32.xlu1 %v477_v49, %s2028_s12  ;;  %660 = vrot.lane.b32.xlu0 %v475_v33, %s2025_s10 }
  0xc5   : > { %1926 = vmatprep.mubr.msk.f32.mxu1 %vm845_vm2, %v2481_v22 }
  0xc6   : > { %v749_v56 = vpop.permute.xlu1 %748  ;;  %v697_v59 = vpop.permute.xlu0 %696 }
  0xc7   : > { %v950_v9 = vsel %vm947_vm9, %v933_v35, %v749_v56  ;;  %v934_v43 = vsel %vm930_vm8, %v917_v28, %v697_v59  ;;  %v481_v59 = vrot.slane %v322_v0, 2  ;;  %1927 = vmatmul.mubr.msk.f32.gmra.mxu1 %vm845_vm2, %v2509_v47 }
  0xc8   : > { %507 = vrot.lane.b32.xlu1 %v475_v33, %s2022_s7  ;;  %420 = vrot.lane.b32.xlu0 %v2420_v37, %s2023_s8  ;;  %v638_v37 = vrot.slane %v325_v39, 2 }
  0xc9   : > { %v482_v1 = vsel %vm442_vm0, %v479_v29, %v481_v59 }
  0xca   : > { %v2453_v5 = vpop.permute.xlu1 %595  ;;  %v2455_v6 = vpop.permute.xlu0 %543 }
  0xcb   : > { %v885_v7 = vsel %vm879_vm5, %v868_v61, %v2455_v6 }
  0xcc   : > { %710 = vrot.lane.b32.xlu1 %v2449_v63, %s2026_s11  ;;  %662 = vrot.lane.b32.xlu0 %v477_v49, %s2025_s10 }
  0xce   : > { %v802_v13 = vpop.permute.xlu1 %801  ;;  %v751_v17 = vpop.permute.xlu0 %750 }
  0xcf   : > { %v967_v52 = vsel %vm964_vm10, %v950_v9, %v802_v13  ;;  %v951_v31 = vsel %vm947_vm9, %v934_v43, %v751_v17  ;;  %v850_v9 = vsel %vm845_vm2, %v2149_v25, %v2399_v16  ;;  %v323_v13 = vld [vmem:[%s2098_s30 + $0xc0] sm:$0xff]  ;;  %v324_v25 = vld [vmem:[%s2098_s30 + $0xc8] sm:$0xff] }
  0xd0   : > { %557 = vrot.lane.b32.xlu1 %v2449_v63, %s2021_s6  ;;  %509 = vrot.lane.b32.xlu0 %v477_v49, %s2022_s7  ;;  %v867_v23 = vsel %vm862_vm4, %v850_v9, %v2422_v38  ;;  %v635_v6 = vrot.slane %v323_v13, 2  ;;  %v636_v43 = vrot.slane %v324_v25, 2 }
  0xd1   : > { %1885 = vmatprep.mubr.msk.f32.mxu0 %vm986_vm11, %v967_v52  ;;  %v884_v32 = vsel %vm879_vm5, %v867_v23, %v2434_v50  ;;  %v582_v50 = vrot.slane %v323_v13, 1  ;;  %v583_v52 = vrot.slane %v324_v25, 1 }
  0xd2   : > { %v2485_v10 = vpop.permute.xlu1 %597  ;;  %v2487_v26 = vpop.permute.xlu0 %406  ;;  %v901_v16 = vsel %vm896_vm6, %v884_v32, %v2453_v5 }
  0xd3   : > { %v584_v0 = vsel %vm353_vm1, %v582_v50, %v583_v52  ;;  %v902_v28 = vsel %vm896_vm6, %v885_v7, %v2485_v10  ;;  %v795_v50 = vrot.slane %v328_v4, 2 }
  0xd4   : > { %764 = vrot.lane.b32.xlu1 %v2481_v22, %s2027_s27  ;;  %712 = vrot.lane.b32.xlu0 %v2458_v8, %s2026_s11 }
  0xd5   : > { %1929 = vmatprep.mubr.msk.f32.mxu1 %vm845_vm2, %v584_v0 }
  0xd6   : > { %v804_v33 = vpop.permute.xlu1 %803  ;;  %v649_v40 = vpop.permute.xlu0 %648 }
  0xd7   : > { %v968_v14 = vsel %vm964_vm10, %v951_v31, %v804_v33  ;;  %v918_v38 = vsel %vm913_vm7, %v901_v16, %v649_v40  ;;  %v637_v31 = vsel %vm442_vm0, %v635_v6, %v636_v43  ;;  %v586_v33 = vsel %vm353_vm1, %v583_v52, %v585_v53 }
  0xd8   : > { %611 = vrot.lane.b32.xlu1 %v2481_v22, %s2024_s9  ;;  %559 = vrot.lane.b32.xlu0 %v2458_v8, %s2021_s6 }
  0xd9   : > { %1886 = vmatmul.mubr.msk.f32.gmra.mxu0 %vm986_vm11, %v968_v14  ;;  %1930 = vmatmul.mubr.msk.f32.gmra.mxu1 %vm845_vm2, %v586_v33 }
  0xda   : > { %v2511_v49 = vpop.permute.xlu1 %495  ;;  %v2513_v56 = vpop.permute.xlu0 %408 }
  0xdc   : > { %817 = vrot.lane.b32.xlu1 %v480_v46, %s2028_s12  ;;  %766 = vrot.lane.b32.xlu0 %v2509_v47, %s2027_s27 }
  0xde   : > { %v699_v60 = vpop.permute.xlu1 %698  ;;  %v651_v62 = vpop.permute.xlu0 %650 }
  0xdf   : > { %v935_v48 = vsel %vm930_vm8, %v918_v38, %v699_v60  ;;  %v919_v2 = vsel %vm913_vm7, %v902_v28, %v651_v62  ;;  %v326_v62 = vld [vmem:[%s2098_s30 + $0xd8] sm:$0xff] }
  0xe0   : > { %613 = vrot.lane.b32.xlu1 %v2509_v47, %s2024_s9  ;;  %422 = vrot.lane.b32.xlu0 %v2481_v22, %s2023_s8  ;;  %v639_v22 = vsel %vm442_vm0, %v636_v43, %v638_v37 }
  0xe2   : > { %v2527_v21 = vpop.permute.xlu1 %545  ;;  %v2529_v35 = vpop.permute.xlu0 %497 }
  0xe4   : > { %819 = vrot.lane.b32.xlu1 %v482_v1, %s2028_s12  ;;  %664 = vrot.lane.b32.xlu0 %v480_v46, %s2025_s10 }
  0xe6   : > { %v753_v42 = vpop.permute.xlu1 %752  ;;  %v701_v3 = vpop.permute.xlu0 %700 }
  0xe7   : > { %v952_v18 = vsel %vm947_vm9, %v935_v48, %v753_v42  ;;  %v936_v20 = vsel %vm930_vm8, %v919_v2, %v701_v3  ;;  %v739_v42 = vrot.slane %v326_v62, 1  ;;  %v742_v3 = vrot.slane %v328_v4, 1 }
  0xe8   : > { %511 = vrot.lane.b32.xlu1 %v480_v46, %s2022_s7  ;;  %424 = vrot.lane.b32.xlu0 %v2509_v47, %s2023_s8  ;;  %v327_v47 = vld [vmem:[%s2098_s30 + $0xe0] sm:$0xff]  ;;  %s1786_s30 = sshll.u32 %s2003_s18, 3  ;;  %s2956_s18 = smov (!%p290_p7, %s2003_s18), 1 }
  0xe9   : > { %v793_v32 = vrot.slane %v327_v47, 2  ;;  %p269_p6 = scmp.lt.s32.totalorder %s1786_s30, 15 }
  0xea   : > { %v2553_v41 = vpop.permute.xlu1 %599  ;;  %v2555_v17 = vpop.permute.xlu0 %547 }
  0xeb   : > { %s2954_s30 = smov (!%p269_p6, %s1786_s30), 15 }
  0xec   : > { %714 = vrot.lane.b32.xlu1 %v323_v13, %s2026_s11  ;;  %666 = vrot.lane.b32.xlu0 %v482_v1, %s2025_s10 }
  0xee   : > { %v806_v5 = vpop.permute.xlu1 %805  ;;  %v755_v19 = vpop.permute.xlu0 %754 }
  0xef   : > { %v969_v54 = vsel %vm964_vm10, %v952_v18, %v806_v5  ;;  %v953_v29 = vsel %vm947_vm9, %v936_v20, %v755_v19  ;;  %v796_v19 = vsel %vm442_vm0, %v793_v32, %v795_v50 }
  0xf0   : > { %561 = vrot.lane.b32.xlu1 %v323_v13, %s2021_s6  ;;  %513 = vrot.lane.b32.xlu0 %v482_v1, %s2022_s7  ;;  %v740_v1 = vrot.slane %v327_v47, 1  ;;  %v852_v13 = vsel %vm845_vm2, %v2212_v44, %v2487_v26  ;;  %s1788_s7 = sshll.u32 %s2952_s19, 5 }
  0xf1   : > { %1888 = vmatprep.mubr.msk.f32.mxu0 %vm986_vm11, %v969_v54  ;;  %v869_v16 = vsel %vm862_vm4, %v852_v13, %v2511_v49 }
  0xf2   : > { %v2585_v36 = vpop.permute.xlu1 %601  ;;  %v2587_v27 = vpop.permute.xlu0 %410  ;;  %v743_v38 = vsel %vm353_vm1, %v740_v1, %v742_v3  ;;  %v741_v48 = vsel %vm353_vm1, %v739_v42, %v740_v1  ;;  %v886_v52 = vsel %vm879_vm5, %v869_v16, %v2527_v21 }
  0xf3   : > { %v903_v44 = vsel %vm896_vm6, %v886_v52, %v2553_v41  ;;  %v853_v41 = vsel %vm845_vm2, %v2215_v45, %v2513_v56  ;;  %v854_v37 = vsel %vm845_vm2, %v2257_v57, %v2587_v27 }
  0xf4   : > { %768 = vrot.lane.b32.xlu1 %v584_v0, %s2027_s27  ;;  %716 = vrot.lane.b32.xlu0 %v324_v25, %s2026_s11  ;;  %v870_v7 = vsel %vm862_vm4, %v853_v41, %v2529_v35 }
  0xf5   : > { %v887_v39 = vsel %vm879_vm5, %v870_v7, %v2555_v17 }
  0xf6   : > { %v808_v10 = vpop.permute.xlu1 %807  ;;  %v653_v30 = vpop.permute.xlu0 %652  ;;  %v904_v20 = vsel %vm896_vm6, %v887_v39, %v2585_v36 }
  0xf7   : > { %v970_v34 = vsel %vm964_vm10, %v953_v29, %v808_v10  ;;  %v920_v26 = vsel %vm913_vm7, %v903_v44, %v653_v30 }
  0xf8   : > { %615 = vrot.lane.b32.xlu1 %v584_v0, %s2024_s9  ;;  %563 = vrot.lane.b32.xlu0 %v324_v25, %s2021_s6  ;;  %v792_v25 = vrot.slane %v326_v62, 2  ;;  %s1787_s6 = sshll.u32 %s2954_s30, 1 }
  0xf9   : > { %1889 = vmatmul.mubr.msk.f32.gmra.mxu0 %vm986_vm11, %v970_v34  ;;  %s2728_s8 = sadd.s32 %s1788_s7, %s1787_s6 }
  0xfa   : > { %v2611_v11 = vpop.permute.xlu1 %499  ;;  %v2613_v40 = vpop.permute.xlu0 %412  ;;  %v794_v54 = vsel %vm442_vm0, %v792_v25, %v793_v32 }
  0xfb   : > { %v855_v57 = vsel %vm845_vm2, %v2260_v58, %v2613_v40 }
  0xfc   : > { %821 = vrot.lane.b32.xlu1 %v637_v31, %s2028_s12  ;;  %770 = vrot.lane.b32.xlu0 %v586_v33, %s2027_s27 }
  0xfe   : > { %v703_v14 = vpop.permute.xlu1 %702  ;;  %v655_v46 = vpop.permute.xlu0 %654 }
  0xff   : > { %v937_v49 = vsel %vm930_vm8, %v920_v26, %v703_v14  ;;  %v921_v6 = vsel %vm913_vm7, %v904_v20, %v655_v46  ;;  %v871_v14 = vsel %vm862_vm4, %v854_v37, %v2611_v11 }
 0x100   : > { %668 = vrot.lane.b32.xlu1 %v637_v31, %s2025_s10  ;;  %617 = vrot.lane.b32.xlu0 %v586_v33, %s2024_s9  ;;  %s1789_s9 = sshll.u32 %s2728_s8, 3 }
 0x101   : > { %s2742_s15 = scalar_lea.vmem %s2938_s3, %s1789_s9  ;;  %s2790_s25 = scalar_lea.vmem %s2939_s4, %s1789_s9 }
 0x102   : > { %v550_v59 = vpop.permute.xlu1 %549  ;;  %v2624_v60 = vpop.permute.xlu0 %501 }
 0x103   : > { %v888_v46 = vsel %vm879_vm5, %v871_v14, %v550_v59  ;;  %v872_v27 = vsel %vm862_vm4, %v855_v57, %v2624_v60 }
 0x104   : > { %670 = vrot.lane.b32.xlu1 %v639_v22, %s2025_s10  ;;  %823 = vrot.lane.b32.xlu0 %v639_v22, %s2028_s12 }
 0x106   : > { %v757_v9 = vpop.permute.xlu1 %756  ;;  %v705_v23 = vpop.permute.xlu0 %704 }
 0x107   : > { %v954_v24 = vsel %vm947_vm9, %v937_v49, %v757_v9  ;;  %v938_v45 = vsel %vm930_vm8, %v921_v6, %v705_v23 }
 0x108   : > { %720 = vrot.lane.b32.xlu1 %v327_v47, %s2026_s11  ;;  %718 = vrot.lane.b32.xlu0 %v326_v62, %s2026_s11 }
 0x10a   : > { %v604_v18 = vpop.permute.xlu1 %603  ;;  %v552_v5 = vpop.permute.xlu0 %551 }
 0x10b   : > { %v905_v62 = vsel %vm896_vm6, %v888_v46, %v604_v18  ;;  %v889_v11 = vsel %vm879_vm5, %v872_v27, %v552_v5 }
 0x10c   : > { %774 = vrot.lane.b32.xlu1 %v743_v38, %s2027_s27  ;;  %772 = vrot.lane.b32.xlu0 %v741_v48, %s2027_s27  ;;  %s293_s27 = sadd.s32 %s1794_s26, %s2956_s18 }
 0x10d   : > { %s1795_s28 = sshll.u32 %s293_s27, 2 }
 0x10e   : > { %v810_v21 = vpop.permute.xlu1 %809  ;;  %v759_v61 = vpop.permute.xlu0 %758  ;;  %s295_s19 = scalar_lea.vmem %s2940_s5, %s1795_s28 }
 0x10f   : > { %v971_v0 = vsel %vm964_vm10, %v954_v24, %v810_v21  ;;  %v955_v56 = vsel %vm947_vm9, %v938_v45, %v759_v61 }
 0x110   : > { %827 = vrot.lane.b32.xlu1 %v796_v19, %s2028_s12  ;;  %825 = vrot.lane.b32.xlu0 %v794_v54, %s2028_s12 }
 0x111   : > { %1891 = vmatprep.mubr.msk.f32.mxu0 %vm986_vm11, %v971_v0 }
 0x112   : > { %v606_v28 = vpop.permute.xlu1 %605  ;;  %v415_v2 = vpop.permute.xlu0 %414 }
 0x113   : > { %v906_v32 = vsel %vm896_vm6, %v889_v11, %v606_v28  ;;  %v856_v19 = vsel %vm845_vm2, %v2304_v12, %v415_v2 }
 0x116   : > { %v812_v43 = vpop.permute.xlu1 %811  ;;  %v657_v53 = vpop.permute.xlu0 %656 }
 0x117   : > { %v972_v35 = vsel %vm964_vm10, %v955_v56, %v812_v43  ;;  %v922_v4 = vsel %vm913_vm7, %v905_v62, %v657_v53 }
 0x118   : > { %1892 = vmatmul.mubr.msk.f32.gmra.mxu0 %vm986_vm11, %v972_v35 }
 0x11a   : > { %v504_v29 = vpop.permute.xlu1 %503  ;;  %v417_v10 = vpop.permute.xlu0 %416 }
 0x11b   : > { %v873_v54 = vsel %vm862_vm4, %v856_v19, %v504_v29  ;;  %v857_v12 = vsel %vm845_vm2, %v2307_v15, %v417_v10 }
 0x11e   : > { %v707_v17 = vpop.permute.xlu1 %706  ;;  %v659_v30 = vpop.permute.xlu0 %658 }
 0x11f   : > { %v939_v1 = vsel %vm930_vm8, %v922_v4, %v707_v17  ;;  %v923_v25 = vsel %vm913_vm7, %v906_v32, %v659_v30 }
 0x122   : > { %v554_v34 = vpop.permute.xlu1 %553  ;;  %v506_v31 = vpop.permute.xlu0 %505 }
 0x123   : > { %v890_v24 = vsel %vm879_vm5, %v873_v54, %v554_v34  ;;  %v874_v2 = vsel %vm862_vm4, %v857_v12, %v506_v31 }
 0x126   : > { %v761_v33 = vpop.permute.xlu1 %760  ;;  %v709_v36 = vpop.permute.xlu0 %708 }
 0x127   : > { %v956_v42 = vsel %vm947_vm9, %v939_v1, %v761_v33  ;;  %v940_v16 = vsel %vm930_vm8, %v923_v25, %v709_v36 }
 0x12a   : > { %v608_v22 = vpop.permute.xlu1 %607  ;;  %v556_v47 = vpop.permute.xlu0 %555 }
 0x12b   : > { %v907_v0 = vsel %vm896_vm6, %v890_v24, %v608_v22  ;;  %v891_v45 = vsel %vm879_vm5, %v874_v2, %v556_v47 }
 0x12e   : > { %v814_v3 = vpop.permute.xlu1 %813  ;;  %v763_v9 = vpop.permute.xlu0 %762 }
 0x12f   : > { %v973_v23 = vsel %vm964_vm10, %v956_v42, %v814_v3  ;;  %v957_v38 = vsel %vm947_vm9, %v940_v16, %v763_v9 }
 0x130   : > { %1894 = vmatprep.mubr.msk.f32.mxu0 %vm986_vm11, %v973_v23 }
 0x132   : > { %v610_v59 = vpop.permute.xlu1 %609  ;;  %v419_v13 = vpop.permute.xlu0 %418 }
 0x133   : > { %v908_v53 = vsel %vm896_vm6, %v891_v45, %v610_v59  ;;  %v858_v47 = vsel %vm845_vm2, %v2364_v51, %v419_v13 }
 0x136   : > { %v816_v48 = vpop.permute.xlu1 %815  ;;  %v661_v50 = vpop.permute.xlu0 %660 }
 0x137   : > { %v974_v58 = vsel %vm964_vm10, %v957_v38, %v816_v48  ;;  %v924_v41 = vsel %vm913_vm7, %v907_v0, %v661_v50 }
 0x138   : > { %1895 = vmatmul.mubr.msk.f32.gmra.mxu0 %vm986_vm11, %v974_v58 }
 0x13a   : > { %v508_v40 = vpop.permute.xlu1 %507  ;;  %v421_v60 = vpop.permute.xlu0 %420 }
 0x13b   : > { %v875_v62 = vsel %vm862_vm4, %v858_v47, %v508_v40  ;;  %v859_v59 = vsel %vm845_vm2, %v2372_v55, %v421_v60 }
 0x13e   : > { %v711_v52 = vpop.permute.xlu1 %710  ;;  %v663_v18 = vpop.permute.xlu0 %662 }
 0x13f   : > { %v941_v7 = vsel %vm930_vm8, %v924_v41, %v711_v52  ;;  %v925_v35 = vsel %vm913_vm7, %v908_v53, %v663_v18 }
 0x142   : > { %v558_v5 = vpop.permute.xlu1 %557  ;;  %v510_v44 = vpop.permute.xlu0 %509 }
 0x143   : > { %v892_v4 = vsel %vm879_vm5, %v875_v62, %v558_v5  ;;  %v876_v13 = vsel %vm862_vm4, %v859_v59, %v510_v44 }
 0x146   : > { %v765_v26 = vpop.permute.xlu1 %764  ;;  %v713_v49 = vpop.permute.xlu0 %712 }
 0x147   : > { %v958_v39 = vsel %vm947_vm9, %v941_v7, %v765_v26  ;;  %v942_v29 = vsel %vm930_vm8, %v925_v35, %v713_v49 }
 0x14a   : > { %v612_v21 = vpop.permute.xlu1 %611  ;;  %v560_v61 = vpop.permute.xlu0 %559 }
 0x14b   : > { %v909_v3 = vsel %vm896_vm6, %v892_v4, %v612_v21  ;;  %v893_v32 = vsel %vm879_vm5, %v876_v13, %v560_v61 }
 0x14e   : > { %v818_v28 = vpop.permute.xlu1 %817  ;;  %v767_v20 = vpop.permute.xlu0 %766 }
 0x14f   : > { %v975_v6 = vsel %vm964_vm10, %v958_v39, %v818_v28  ;;  %v959_v17 = vsel %vm947_vm9, %v942_v29, %v767_v20 }
 0x150   : > { %1897 = vmatprep.mubr.msk.f32.mxu0 %vm986_vm11, %v975_v6 }
 0x152   : > { %v614_v56 = vpop.permute.xlu1 %613  ;;  %v423_v43 = vpop.permute.xlu0 %422 }
 0x153   : > { %v910_v38 = vsel %vm896_vm6, %v893_v32, %v614_v56  ;;  %v860_v26 = vsel %vm845_vm2, %v2449_v63, %v423_v43 }
 0x156   : > { %v820_v30 = vpop.permute.xlu1 %819  ;;  %v665_v34 = vpop.permute.xlu0 %664 }
 0x157   : > { %v976_v15 = vsel %vm964_vm10, %v959_v17, %v820_v30  ;;  %v926_v9 = vsel %vm913_vm7, %v909_v3, %v665_v34 }
 0x158   : > { %1898 = vmatmul.mubr.msk.f32.gmra.mxu0 %vm986_vm11, %v976_v15 }
 0x15a   : > { %v512_v10 = vpop.permute.xlu1 %511  ;;  %v425_v31 = vpop.permute.xlu0 %424 }
 0x15b   : > { %v861_v19 = vsel %vm845_vm2, %v2458_v8, %v425_v31  ;;  %v877_v61 = vsel %vm862_vm4, %v860_v26, %v512_v10 }
 0x15e   : > { %v715_v33 = vpop.permute.xlu1 %714  ;;  %v667_v36 = vpop.permute.xlu0 %666 }
 0x15f   : > { %v943_v23 = vsel %vm930_vm8, %v926_v9, %v715_v33  ;;  %v927_v48 = vsel %vm913_vm7, %v910_v38, %v667_v36 }
 0x162   : > { %v562_v37 = vpop.permute.xlu1 %561  ;;  %v514_v14 = vpop.permute.xlu0 %513 }
 0x163   : > { %v878_v0 = vsel %vm862_vm4, %v861_v19, %v514_v14  ;;  %v894_v7 = vsel %vm879_vm5, %v877_v61, %v562_v37 }
 0x166   : > { %v769_v46 = vpop.permute.xlu1 %768  ;;  %v717_v22 = vpop.permute.xlu0 %716 }
 0x167   : > { %v960_v57 = vsel %vm947_vm9, %v943_v23, %v769_v46  ;;  %v944_v50 = vsel %vm930_vm8, %v927_v48, %v717_v22 }
 0x16a   : > { %v616_v1 = vpop.permute.xlu1 %615  ;;  %v564_v42 = vpop.permute.xlu0 %563 }
 0x16b   : > { %v895_v63 = vsel %vm879_vm5, %v878_v0, %v564_v42  ;;  %v911_v6 = vsel %vm896_vm6, %v894_v7, %v616_v1 }
 0x16e   : > { %v822_v27 = vpop.permute.xlu1 %821  ;;  %v771_v11 = vpop.permute.xlu0 %770 }
 0x16f   : > { %v977_v51 = vsel %vm964_vm10, %v960_v57, %v822_v27  ;;  %v961_v55 = vsel %vm947_vm9, %v944_v50, %v771_v11  ;;  %v1910_v42 = vpop.f32.mrf.mxu1 }
 0x170   : > { %1900 = vmatprep.mubr.msk.f32.mxu0 %vm986_vm11, %v977_v51  ;;  %1382 = vst.msk [vmem:[%s2790_s25 + $0x8] sm:$0xff] %vm862_vm4, %v1910_v42  ;;  %v1488_v3 = vsel %vm862_vm4, %v1910_v42, 0.0  ;;  %v1525_v9 = vmul.f32 %v1910_v42, %v1910_v42 }
 0x171   : > { %v1302_v23 = vpop.f32.mrf.mxu1 }
 0x172   : > { %v669_v25 = vpop.permute.xlu1 %668  ;;  %v618_v16 = vpop.permute.xlu0 %617  ;;  %v1541_v57 = vsel %vm862_vm4, %v1525_v9, 0.0  ;;  %1381 = vst.msk [vmem:[%s2790_s25] sm:$0xff] %vm862_vm4, %v1302_v23  ;;  %v1487_v27 = vsel %vm862_vm4, %v1302_v23, 0.0  ;;  %v1524_v11 = vmul.f32 %v1302_v23, %v1302_v23 }
 0x173   : > { %v912_v12 = vsel %vm896_vm6, %v895_v63, %v618_v16  ;;  %v928_v45 = vsel %vm913_vm7, %v911_v6, %v669_v25  ;;  %v1489_v51 = vadd.f32 %v1488_v3, %v1487_v27  ;;  %v1913_v59 = vpop.f32.mrf.mxu1 }
 0x174   : > { %v1540_v13 = vsel %vm862_vm4, %v1524_v11, 0.0  ;;  %1384 = vst.msk [vmem:[%s2790_s25 + $0x18] sm:$0xff] %vm862_vm4, %v1913_v59  ;;  %v1527_v32 = vmul.f32 %v1913_v59, %v1913_v59  ;;  %v1492_v38 = vsel %vm862_vm4, %v1913_v59, 0.0 }
 0x175   : > { %v1542_v25 = vadd.f32 %v1541_v57, %v1540_v13  ;;  %v1312_v16 = vpop.f32.mrf.mxu1 }
 0x176   : > { %v671_v58 = vpop.permute.xlu1 %670  ;;  %v824_v40 = vpop.permute.xlu0 %823  ;;  %1383 = vst.msk [vmem:[%s2790_s25 + $0x10] sm:$0xff] %vm862_vm4, %v1312_v16  ;;  %v1490_v48 = vsel %vm862_vm4, %v1312_v16, 0.0  ;;  %v1526_v50 = vmul.f32 %v1312_v16, %v1312_v16 }
 0x177   : > { %v978_v60 = vsel %vm964_vm10, %v961_v55, %v824_v40  ;;  %v929_v56 = vsel %vm913_vm7, %v912_v12, %v671_v58  ;;  %v1491_v55 = vadd.f32 %v1490_v48, %v1489_v51  ;;  %v1916_v58 = vpop.f32.mrf.mxu1  ;;  %v1545_v40 = vsel %vm862_vm4, %v1527_v32, 0.0 }
 0x178   : > { %1901 = vmatmul.mubr.msk.f32.gmra.mxu0 %vm986_vm11, %v978_v60  ;;  %v1543_v60 = vsel %vm862_vm4, %v1526_v50, 0.0  ;;  %1386 = vst.msk [vmem:[%s2790_s25 + $0x28] sm:$0xff] %vm862_vm4, %v1916_v58  ;;  %v1496_v26 = vsel %vm862_vm4, %v1916_v58, 0.0 }
 0x179   : > { %v1884_v52 = vpop.f32.mrf.mxu0 }
 0x17a   : > { %1185 = vst.msk [vmem:[%s2742_s15 + $0x8] sm:$0xff] %vm862_vm4, %v1884_v52  ;;  %v1435_v18 = vmul.f32 %v1884_v52, %v1884_v52  ;;  %v721_v5 = vpop.permute.xlu1 %720  ;;  %v719_v44 = vpop.permute.xlu0 %718  ;;  %v1398_v54 = vsel %vm862_vm4, %v1884_v52, 0.0  ;;  %v1529_v52 = vmul.f32 %v1916_v58, %v1916_v58 }
 0x17b   : > { %v1105_v49 = vpop.f32.mrf.mxu0  ;;  %v946_v43 = vsel %vm930_vm8, %v929_v56, %v721_v5  ;;  %v945_v53 = vsel %vm930_vm8, %v928_v45, %v719_v44  ;;  %v1322_v5 = vpop.f32.mrf.mxu1  ;;  %v1493_v44 = vadd.f32 %v1492_v38, %v1491_v55 }
 0x17c   : > { %1184 = vst.msk [vmem:[%s2742_s15] sm:$0xff] %vm862_vm4, %v1105_v49  ;;  %v1397_v24 = vsel %vm862_vm4, %v1105_v49, 0.0  ;;  %v1434_v21 = vmul.f32 %v1105_v49, %v1105_v49  ;;  %v1451_v39 = vsel %vm862_vm4, %v1435_v18, 0.0  ;;  %v1544_v18 = vadd.f32 %v1543_v60, %v1542_v25  ;;  %1385 = vst.msk [vmem:[%s2790_s25 + $0x20] sm:$0xff] %vm862_vm4, %v1322_v5 }
 0x17d   : > { %v1399_v41 = vadd.f32 %v1398_v54, %v1397_v24  ;;  %v1494_v49 = vsel %vm862_vm4, %v1322_v5, 0.0  ;;  %v1528_v19 = vmul.f32 %v1322_v5, %v1322_v5  ;;  %v1549_v61 = vsel %vm862_vm4, %v1529_v52, 0.0 }
 0x17e   : > { %v1450_v8 = vsel %vm862_vm4, %v1434_v21, 0.0  ;;  %v775_v28 = vpop.permute.xlu1 %774  ;;  %v773_v20 = vpop.permute.xlu0 %772  ;;  %v1495_v54 = vadd.f32 %v1494_v49, %v1493_v44  ;;  %v1546_v24 = vadd.f32 %v1545_v40, %v1544_v18 }
 0x17f   : > { %v1452_v2 = vadd.f32 %v1451_v39, %v1450_v8  ;;  %v963_v35 = vsel %vm947_vm9, %v946_v43, %v775_v28  ;;  %v962_v29 = vsel %vm947_vm9, %v945_v53, %v773_v20  ;;  %v1919_v21 = vpop.f32.mrf.mxu1  ;;  %v1547_v0 = vsel %vm862_vm4, %v1528_v19, 0.0 }
 0x180   : > { %1388 = vst.msk [vmem:[%s2790_s25 + $0x38] sm:$0xff] %vm862_vm4, %v1919_v21  ;;  %v1548_v7 = vadd.f32 %v1547_v0, %v1546_v24  ;;  %v1497_v39 = vadd.f32 %v1496_v26, %v1495_v54  ;;  %v1500_v8 = vsel %vm862_vm4, %v1919_v21, 0.0 }
 0x181   : > { %v1332_v63 = vpop.f32.mrf.mxu1 }
 0x182   : > { %v828_v17 = vpop.permute.xlu1 %827  ;;  %v826_v30 = vpop.permute.xlu0 %825  ;;  %1387 = vst.msk [vmem:[%s2790_s25 + $0x30] sm:$0xff] %vm862_vm4, %v1332_v63  ;;  %v1498_v28 = vsel %vm862_vm4, %v1332_v63, 0.0  ;;  %v1530_v20 = vmul.f32 %v1332_v63, %v1332_v63  ;;  %v1550_v12 = vadd.f32 %v1549_v61, %v1548_v7 }
 0x183   : > { %v980_v34 = vsel %vm964_vm10, %v963_v35, %v828_v17  ;;  %v979_v15 = vsel %vm964_vm10, %v962_v29, %v826_v30  ;;  %v1499_v6 = vadd.f32 %v1498_v28, %v1497_v39 }
 0x184   : > { %1903 = vmatprep.mubr.msk.f32.mxu0 %vm986_vm11, %v979_v15  ;;  %v1551_v56 = vsel %vm862_vm4, %v1530_v20, 0.0 }
 0x185   : > { %1904 = vmatmul.mubr.msk.f32.gmra.mxu0 %vm986_vm11, %v980_v34  ;;  %v1552_v53 = vadd.f32 %v1551_v56, %v1550_v12  ;;  %v1501_v29 = vadd.f32 %v1500_v8, %v1499_v6 }
 0x199   : > { %v1887_v10 = vpop.f32.mrf.mxu0 }
 0x19a   : > { %1187 = vst.msk [vmem:[%s2742_s15 + $0x18] sm:$0xff] %vm862_vm4, %v1887_v10  ;;  %v1437_v33 = vmul.f32 %v1887_v10, %v1887_v10  ;;  %v1402_v46 = vsel %vm862_vm4, %v1887_v10, 0.0 }
 0x19b   : > { %v1115_v31 = vpop.f32.mrf.mxu0 }
 0x19c   : > { %1186 = vst.msk [vmem:[%s2742_s15 + $0x10] sm:$0xff] %vm862_vm4, %v1115_v31  ;;  %v1400_v36 = vsel %vm862_vm4, %v1115_v31, 0.0  ;;  %v1436_v37 = vmul.f32 %v1115_v31, %v1115_v31  ;;  %v1455_v4 = vsel %vm862_vm4, %v1437_v33, 0.0 }
 0x19d   : > { %v1401_v14 = vadd.f32 %v1400_v36, %v1399_v41  ;;  %v1531_v41 = vmul.f32 %v1919_v21, %v1919_v21 }
 0x19e   : > { %v1453_v22 = vsel %vm862_vm4, %v1436_v37, 0.0 }
 0x19f   : > { %v1454_v47 = vadd.f32 %v1453_v22, %v1452_v2  ;;  %v2780_v62 = vadd.f32 %v1402_v46, %v1401_v14  ;;  %v1922_v2 = vpop.f32.mrf.mxu1  ;;  %v1553_v45 = vsel %vm862_vm4, %v1531_v41, 0.0 }
 0x1a0   : > { %1390 = vst.msk [vmem:[%s2790_s25 + $0x48] sm:$0xff] %vm862_vm4, %v1922_v2  ;;  %v1533_v43 = vmul.f32 %v1922_v2, %v1922_v2  ;;  %v1504_v17 = vsel %vm862_vm4, %v1922_v2, 0.0  ;;  %v1554_v10 = vadd.f32 %v1553_v45, %v1552_v53 }
 0x1a1   : > { %v2783_v1 = vadd.f32 %v1455_v4, %v1454_v47  ;;  %v1342_v35 = vpop.f32.mrf.mxu1 }
 0x1a2   : > { %1389 = vst.msk [vmem:[%s2790_s25 + $0x40] sm:$0xff] %vm862_vm4, %v1342_v35  ;;  %v1502_v30 = vsel %vm862_vm4, %v1342_v35, 0.0  ;;  %v1532_v34 = vmul.f32 %v1342_v35, %v1342_v35  ;;  %v1557_v33 = vsel %vm862_vm4, %v1533_v43, 0.0 }
 0x1a3   : > { %v1503_v15 = vadd.f32 %v1502_v30, %v1501_v29  ;;  %v1925_v31 = vpop.f32.mrf.mxu1 }
 0x1a4   : > { %v1555_v36 = vsel %vm862_vm4, %v1532_v34, 0.0  ;;  %1392 = vst.msk [vmem:[%s2790_s25 + $0x58] sm:$0xff] %vm862_vm4, %v1925_v31  ;;  %v1535_v37 = vmul.f32 %v1925_v31, %v1925_v31  ;;  %v1508_v42 = vsel %vm862_vm4, %v1925_v31, 0.0 }
 0x1a5   : > { %v1556_v46 = vadd.f32 %v1555_v36, %v1554_v10  ;;  %v1352_v22 = vpop.f32.mrf.mxu1  ;;  %v1505_v47 = vadd.f32 %v1504_v17, %v1503_v15 }
 0x1a6   : > { %1391 = vst.msk [vmem:[%s2790_s25 + $0x50] sm:$0xff] %vm862_vm4, %v1352_v22  ;;  %v1506_v3 = vsel %vm862_vm4, %v1352_v22, 0.0  ;;  %v1534_v27 = vmul.f32 %v1352_v22, %v1352_v22  ;;  %v1561_v32 = vsel %vm862_vm4, %v1535_v37, 0.0 }
 0x1a7   : > { %v1507_v57 = vadd.f32 %v1506_v3, %v1505_v47  ;;  %v1558_v11 = vadd.f32 %v1557_v33, %v1556_v46  ;;  %v1928_v51 = vpop.f32.mrf.mxu1 }
 0x1a8   : > { %1394 = vst.msk [vmem:[%s2790_s25 + $0x68] sm:$0xff] %vm862_vm4, %v1928_v51  ;;  %v1512_v25 = vsel %vm862_vm4, %v1928_v51, 0.0  ;;  %v1559_v38 = vsel %vm862_vm4, %v1534_v27, 0.0  ;;  %v1537_v48 = vmul.f32 %v1928_v51, %v1928_v51 }
 0x1a9   : > { %v1362_v50 = vpop.f32.mrf.mxu1  ;;  %v1509_v55 = vadd.f32 %v1508_v42, %v1507_v57  ;;  %v1560_v40 = vadd.f32 %v1559_v38, %v1558_v11 }
 0x1aa   : > { %1393 = vst.msk [vmem:[%s2790_s25 + $0x60] sm:$0xff] %vm862_vm4, %v1362_v50  ;;  %v1510_v60 = vsel %vm862_vm4, %v1362_v50, 0.0  ;;  %v1536_v52 = vmul.f32 %v1362_v50, %v1362_v50  ;;  %v1565_v24 = vsel %vm862_vm4, %v1537_v48, 0.0 }
 0x1ab   : > { %v1511_v44 = vadd.f32 %v1510_v60, %v1509_v55  ;;  %v1562_v49 = vadd.f32 %v1561_v32, %v1560_v40 }
 0x1ac   : > { %v1563_v19 = vsel %vm862_vm4, %v1536_v52, 0.0 }
 0x1ad   : > { %v1513_v0 = vadd.f32 %v1512_v25, %v1511_v44  ;;  %v1564_v41 = vadd.f32 %v1563_v19, %v1562_v49 }
 0x1af   : > { %v1566_v8 = vadd.f32 %v1565_v24, %v1564_v41 }
 0x1b9   : > { %v1890_v14 = vpop.f32.mrf.mxu0 }
 0x1ba   : > { %1189 = vst.msk [vmem:[%s2742_s15 + $0x28] sm:$0xff] %vm862_vm4, %v1890_v14  ;;  %v1406_v4 = vsel %vm862_vm4, %v1890_v14, 0.0  ;;  %v1439_v9 = vmul.f32 %v1890_v14, %v1890_v14 }
 0x1bb   : > { %v1125_v23 = vpop.f32.mrf.mxu0 }
 0x1bc   : > { %1188 = vst.msk [vmem:[%s2742_s15 + $0x20] sm:$0xff] %vm862_vm4, %v1125_v23  ;;  %v1404_v59 = vsel %vm862_vm4, %v1125_v23, 0.0  ;;  %v1438_v13 = vmul.f32 %v1125_v23, %v1125_v23  ;;  %v1459_v26 = vsel %vm862_vm4, %v1439_v9, 0.0 }
 0x1bd   : > { %v1405_v16 = vadd.f32 %v1404_v59, %v2780_v62  ;;  %v1931_v62 = vpop.f32.mrf.mxu1 }
 0x1be   : > { %v1457_v58 = vsel %vm862_vm4, %v1438_v13, 0.0  ;;  %1396 = vst.msk [vmem:[%s2790_s25 + $0x78] sm:$0xff] %vm862_vm4, %v1931_v62  ;;  %v1539_v21 = vmul.f32 %v1931_v62, %v1931_v62 }
 0x1bf   : > { %v1458_v18 = vadd.f32 %v1457_v58, %v2783_v1  ;;  %v1407_v5 = vadd.f32 %v1406_v4, %v1405_v16  ;;  %v1372_v61 = vpop.f32.mrf.mxu1  ;;  %v1516_v1 = vsel %vm862_vm4, %v1931_v62, 0.0 }
 0x1c0   : > { %1395 = vst.msk [vmem:[%s2790_s25 + $0x70] sm:$0xff] %vm862_vm4, %v1372_v61  ;;  %v1514_v7 = vsel %vm862_vm4, %v1372_v61, 0.0  ;;  %v1538_v63 = vmul.f32 %v1372_v61, %v1372_v61  ;;  %v1569_v20 = vsel %vm862_vm4, %v1539_v21, 0.0 }
 0x1c1   : > { %v1460_v54 = vadd.f32 %v1459_v26, %v1458_v18  ;;  %v1515_v39 = vadd.f32 %v1514_v7, %v1513_v0 }
 0x1c2   : > { %v1567_v28 = vsel %vm862_vm4, %v1538_v63, 0.0 }
 0x1c3   : > { %v2866_v6 = vadd.f32 %v1516_v1, %v1515_v39  ;;  %v1568_v12 = vadd.f32 %v1567_v28, %v1566_v8 }
 0x1c5   : > { %v2868_v2 = vadd.f32 %v1569_v20, %v1568_v12  ;;  %v1518_v49 = vrot.slane %v2866_v6, 4 }
 0x1c7   : > { %v1571_v19 = vrot.slane %v2868_v2, 4  ;;  %v1519_v63 = vadd.f32 %v1518_v49, %v2866_v6 }
 0x1c9   : > { %v1572_v28 = vadd.f32 %v1571_v19, %v2868_v2 }
 0x1d8   : > { %v1893_v45 = vpop.f32.mrf.mxu0 }
 0x1d9   : > { %1191 = vst.msk [vmem:[%s2742_s15 + $0x38] sm:$0xff] %vm862_vm4, %v1893_v45  ;;  %v1441_v43 = vmul.f32 %v1893_v45, %v1893_v45  ;;  %v1410_v17 = vsel %vm862_vm4, %v1893_v45, 0.0 }
 0x1da   : > { %v1135_v56 = vpop.f32.mrf.mxu0 }
 0x1db   : > { %1190 = vst.msk [vmem:[%s2742_s15 + $0x30] sm:$0xff] %vm862_vm4, %v1135_v56  ;;  %v1408_v53 = vsel %vm862_vm4, %v1135_v56, 0.0  ;;  %v1440_v35 = vmul.f32 %v1135_v56, %v1135_v56  ;;  %v1463_v10 = vsel %vm862_vm4, %v1441_v43, 0.0 }
 0x1dc   : > { %v1409_v29 = vadd.f32 %v1408_v53, %v1407_v5  ;;  %v1520_v53 = vrot.slane %v1519_v63, 2 }
 0x1dd   : > { %v1461_v30 = vsel %vm862_vm4, %v1440_v35, 0.0  ;;  %v1573_v35 = vrot.slane %v1572_v28, 2 }
 0x1de   : > { %v1462_v34 = vadd.f32 %v1461_v30, %v1460_v54  ;;  %v1411_v15 = vadd.f32 %v1410_v17, %v1409_v29 }
 0x1e0   : > { %v1464_v31 = vadd.f32 %v1463_v10, %v1462_v34  ;;  %v1521_v34 = vadd.f32 %v1520_v53, %v1519_v63 }
 0x1f8   : > { %v1896_v33 = vpop.f32.mrf.mxu0 }
 0x1f9   : > { %1193 = vst.msk [vmem:[%s2742_s15 + $0x48] sm:$0xff] %vm862_vm4, %v1896_v33  ;;  %v1443_v37 = vmul.f32 %v1896_v33, %v1896_v33  ;;  %v1414_v47 = vsel %vm862_vm4, %v1896_v33, 0.0 }
 0x1fa   : > { %v1145_v36 = vpop.f32.mrf.mxu0 }
 0x1fb   : > { %1192 = vst.msk [vmem:[%s2742_s15 + $0x40] sm:$0xff] %vm862_vm4, %v1145_v36  ;;  %v1412_v14 = vsel %vm862_vm4, %v1145_v36, 0.0  ;;  %v1442_v46 = vmul.f32 %v1145_v36, %v1145_v36  ;;  %v1467_v9 = vsel %vm862_vm4, %v1443_v37, 0.0  ;;  %v1522_v36 = vrot.slane %v1521_v34, 1 }
 0x1fc   : > { %v1413_v22 = vadd.f32 %v1412_v14, %v1411_v15  ;;  %v1574_v15 = vadd.f32 %v1573_v35, %v1572_v28 }
 0x1fd   : > { %v1465_v4 = vsel %vm862_vm4, %v1442_v46, 0.0 }
 0x1fe   : > { %v1466_v42 = vadd.f32 %v1465_v4, %v1464_v31  ;;  %v1415_v3 = vadd.f32 %v1414_v47, %v1413_v22  ;;  %v1575_v37 = vrot.slane %v1574_v15, 1  ;;  %v1523_v47 = vadd.f32 %v1522_v36, %v1521_v34 }
 0x200   : > { %v1468_v23 = vadd.f32 %v1467_v9, %v1466_v42  ;;  %v1576_v4 = vadd.f32 %v1575_v37, %v1574_v15 }
 0x218   : > { %v1899_v57 = vpop.f32.mrf.mxu0 }
 0x219   : > { %1195 = vst.msk [vmem:[%s2742_s15 + $0x58] sm:$0xff] %vm862_vm4, %v1899_v57  ;;  %v1445_v16 = vmul.f32 %v1899_v57, %v1899_v57  ;;  %v1418_v50 = vsel %vm862_vm4, %v1899_v57, 0.0 }
 0x21a   : > { %v1155_v27 = vpop.f32.mrf.mxu0 }
 0x21b   : > { %1194 = vst.msk [vmem:[%s2742_s15 + $0x50] sm:$0xff] %vm862_vm4, %v1155_v27  ;;  %v1444_v11 = vmul.f32 %v1155_v27, %v1155_v27  ;;  %v1416_v59 = vsel %vm862_vm4, %v1155_v27, 0.0  ;;  %v1471_v40 = vsel %vm862_vm4, %v1445_v16, 0.0 }
 0x21c   : > { %v1417_v25 = vadd.f32 %v1416_v59, %v1415_v3 }
 0x21d   : > { %v1469_v32 = vsel %vm862_vm4, %v1444_v11, 0.0 }
 0x21e   : > { %v1470_v48 = vadd.f32 %v1469_v32, %v1468_v23  ;;  %v1419_v58 = vadd.f32 %v1418_v50, %v1417_v25 }
 0x220   : > { %v1472_v18 = vadd.f32 %v1471_v40, %v1470_v48 }
 0x238   : > { %v1902_v51 = vpop.f32.mrf.mxu0 }
 0x239   : > { %1197 = vst.msk [vmem:[%s2742_s15 + $0x68] sm:$0xff] %vm862_vm4, %v1902_v51  ;;  %v1447_v5 = vmul.f32 %v1902_v51, %v1902_v51  ;;  %v1422_v26 = vsel %vm862_vm4, %v1902_v51, 0.0 }
 0x23a   : > { %v1165_v13 = vpop.f32.mrf.mxu0 }
 0x23b   : > { %1196 = vst.msk [vmem:[%s2742_s15 + $0x60] sm:$0xff] %vm862_vm4, %v1165_v13  ;;  %v1446_v38 = vmul.f32 %v1165_v13, %v1165_v13  ;;  %v1420_v55 = vsel %vm862_vm4, %v1165_v13, 0.0  ;;  %v1475_v21 = vsel %vm862_vm4, %v1447_v5, 0.0 }
 0x23c   : > { %v1421_v52 = vadd.f32 %v1420_v55, %v1419_v58 }
 0x23d   : > { %v1473_v60 = vsel %vm862_vm4, %v1446_v38, 0.0 }
 0x23e   : > { %v1474_v44 = vadd.f32 %v1473_v60, %v1472_v18  ;;  %v1423_v24 = vadd.f32 %v1422_v26, %v1421_v52 }
 0x240   : > { %v1476_v7 = vadd.f32 %v1475_v21, %v1474_v44 }
 0x245   : > { %v1905_v62 = vpop.f32.mrf.mxu0 }
 0x246   : > { %1199 = vst.msk [vmem:[%s2742_s15 + $0x78] sm:$0xff] %vm862_vm4, %v1905_v62  ;;  %v1449_v61 = vmul.f32 %v1905_v62, %v1905_v62  ;;  %v1426_v39 = vsel %vm862_vm4, %v1905_v62, 0.0 }
 0x247   : > { %v1175_v54 = vpop.f32.mrf.mxu0 }
 0x248   : > { %1198 = vst.msk [vmem:[%s2742_s15 + $0x70] sm:$0xff] %vm862_vm4, %v1175_v54  ;;  %v1424_v0 = vsel %vm862_vm4, %v1175_v54, 0.0  ;;  %v1448_v41 = vmul.f32 %v1175_v54, %v1175_v54  ;;  %v1479_v45 = vsel %vm862_vm4, %v1449_v61, 0.0 }
 0x249   : > { %v1425_v1 = vadd.f32 %v1424_v0, %v1423_v24 }
 0x24a   : > { %v1477_v8 = vsel %vm862_vm4, %v1448_v41, 0.0 }
 0x24b   : > { %v1427_v20 = vadd.f32 %v1426_v39, %v1425_v1  ;;  %v1478_v12 = vadd.f32 %v1477_v8, %v1476_v7 }
 0x24d   : > { %v1428_v56 = vrot.slane %v1427_v20, 4  ;;  %v1480_v43 = vadd.f32 %v1479_v45, %v1478_v12 }
 0x24f   : > { %v1429_v29 = vadd.f32 %v1428_v56, %v1427_v20  ;;  %v1481_v17 = vrot.slane %v1480_v43, 4 }
 0x251   : > { %v1430_v6 = vrot.slane %v1429_v29, 2  ;;  %v1482_v30 = vadd.f32 %v1481_v17, %v1480_v43 }
 0x253   : > { %v1431_v10 = vadd.f32 %v1430_v6, %v1429_v29  ;;  %v1483_v31 = vrot.slane %v1482_v30, 2 }
 0x255   : > { %v1432_v2 = vrot.slane %v1431_v10, 1  ;;  %v1484_v33 = vadd.f32 %v1483_v31, %v1482_v30 }
 0x257   : > { %v1485_v14 = vrot.slane %v1484_v33, 1  ;;  %v1433_v46 = vadd.f32 %v1432_v2, %v1431_v10 }
 0x259   : > { %v1486_v22 = vadd.f32 %v1485_v14, %v1484_v33 }
 0x25b   : > { %v1578_v42 = vsel %vm1577_vm12, %v1433_v46, %v1486_v22 }
 0x25c   : > { %v1580_v3 = vsel %vm1579_vm13, %v1578_v42, %v1523_v47 }
 0x25d   : > { %v1582_v9 = vsel %vm1581_vm14, %v1580_v3, %v1576_v4 }
 0x25e   : > { %1584 = vst.msk [vmem:[%s295_s19] sm:$0xf] %vm1583_vm15, %v1582_v9 }
 0x25f PF: > { %s16_s22 = sadd.s32 1, %s2019_s22   ;;  %s2941_s18 = smov %s2011_s20 }
 0x260   : > { %p13_p8 = scmp.ge.s32.totalorder %s16_s22, 6   ;;  %s2942_s19 = smov %s2015_s21 }
 0x261   : > { %s2943_s20 = smov %s2946_s23  ;;  %s2944_s21 = smov %s2950_s24 }
 0x262   :  { %15 = sbr.rel (!%p13_p8) target bundleno = 3 (0x3), region = 87 }

// kernel: res_unet_encoder_block.5
= control target key start
LH: loop header
LB: loop body
LE: loop exit
PB: predicated region body
PF: predicated region fallthrough
CT: control target
= control target key end

     0   :  { %s849_s21 = smov 0   ;;  %s851_s22 = smov 0   ;;  %s1142_s0 = inlined_call_operand.vmem [shape: f32[2,16,16,8], index: 0, kind: input, shape index: {}]   ;;  %s1143_s1 = inlined_call_operand.vmem [shape: f32[2,16,16,8], index: 1, kind: input, shape index: {}]   ;;  %s1144_s2 = inlined_call_operand.vmem [shape: f32[1,8], index: 2, kind: input, shape index: {}]   ;;  %s1145_s3 = inlined_call_operand.vmem [shape: f32[1,8], index: 3, kind: input, shape index: {}]   ;;  %s1146_s4 = inlined_call_operand.vmem [shape: f32[1,8], index: 4, kind: input, shape index: {}]   ;;  %s1147_s5 = inlined_call_operand.vmem [shape: f32[1,8], index: 5, kind: input, shape index: {}]   ;;  %s1148_s6 = inlined_call_operand.vmem [shape: f32[2,16,16,16], index: 6, kind: output, shape index: {}]  }
   0x1   :  { %s853_s23 = smov 0   ;;  %s855_s24 = smov 0  }
   0x2   :  { %s857_s25 = smov 0  }
   0x3 LB: > { %s25_s26 = sadd.s32 1, %s803_s23  ;;  %s28_s27 = sadd.s32 1, %s807_s24  ;;  %s811_s25 = sphi %s857_s25, %s16_s25   ;;  %s807_s24 = sphi %s855_s24, %s1152_s24   ;;  %s803_s23 = sphi %s853_s23, %s1151_s23   ;;  %s799_s22 = sphi %s851_s22, %s1150_s22   ;;  %s795_s21 = sphi %s849_s21, %s1149_s21  }
   0x4   : > { %p26_p0 = scmp.ge.s32.totalorder %s25_s26, 2  ;;  %p713_p1 = scmp.ge.s32.totalorder %s811_s25, 1 }
   0x5   : > { %p252_p2 = scmp.lt.s32.totalorder %s811_s25, 5 }
   0x6   : > { %s1154_s26 = smov (%p26_p0, %s25_s26), 0  ;;  %s1156_s27 = smov (!%p26_p0, %s28_s27), %s807_s24 }
   0x7   : > { %p253_p3 = pnand %p713_p1, %p252_p2  ;;  %p30_p4 = scmp.ge.s32.totalorder %s1156_s27, 2 }
   0x8   : > { %s714_s28 = sshll.u32 (!%p253_p3), %s795_s21, 3  ;;  %p303_p5 = scmp.lt.s32.totalorder (!%p253_p3), %s799_s22, 1 }
   0x9   : > { %s1158_s27 = smov (%p30_p4, %s1156_s27), 0  ;;  %256 = sbr.rel (%p253_p3) target bundleno = 170 (0xaa), region = 44 }
   0xa   : > { %p305_p6 = scmp.lt.s32.totalorder (!%p253_p3), %s714_s28, 15  ;;  %s813_s19 = smov (!%p253_p3), 8  }
   0xe   : > { %s1160_s22 = smov (!%p303_p5, %s799_s22), 1  ;;  %s1162_s28 = smov (!%p305_p6, %s714_s28), 15  ;;  %v884_v0 = vld [vmem:[%s1146_s4] ss:$0 sm:$0xff]  ;;  %vm413_vm0 = vcmask 64512   ;;  %vm572_vm1 = vcmask 130112  }
   0xf   : > { %s716_s29 = sshll.u32 %s1160_s22, 5  ;;  %s715_s30 = sshll.u32 %s1162_s28, 1  ;;  %v895_v1 = vld [vmem:[%s1147_s5] ss:$0 sm:$0xff] }
  0x10   : > { %s309_s7 = sadd.s32 %s716_s29, %s715_s30  ;;  %v953_v45 = vld [vmem:[%s1144_s2] ss:$0 sm:$0xff] }
  0x11   : > { %s879_s8 = sshll.u32 %s309_s7, 3  ;;  %v989_v63 = vld [vmem:[%s1145_s3] ss:$0 sm:$0xff] }
  0x12   : > { %s890_s13 = scalar_lea.vmem %s1143_s1, %s879_s8  ;;  %s928_s18 = scalar_lea.vmem %s1142_s0, %s879_s8 }
  0x13   : > { %v432_v2 = vld [vmem:[%s890_s13 + $0x10] sm:$0xff]  ;;  %v430_v3 = vld [vmem:[%s890_s13] sm:$0xff]  ;;  %v433_v4 = vld [vmem:[%s890_s13 + $0x18] sm:$0xff]  ;;  %s1011_s7 = scalar_lea.vmem %s1148_s6, %s879_s8 }
  0x14   : > { %v455_v5 = vmul.f32 %v884_v0, %v432_v2  ;;  %v453_v6 = vmul.f32 %v884_v0, %v430_v3  ;;  %v456_v7 = vmul.f32 %v884_v0, %v433_v4  ;;  %v431_v8 = vld [vmem:[%s890_s13 + $0x8] sm:$0xff]  ;;  %v434_v10 = vld [vmem:[%s890_s13 + $0x20] sm:$0xff]  ;;  %v437_v14 = vld [vmem:[%s890_s13 + $0x38] sm:$0xff] }
  0x15   : > { %v435_v9 = vld [vmem:[%s890_s13 + $0x28] sm:$0xff]  ;;  %v454_v11 = vmul.f32 %v884_v0, %v431_v8  ;;  %v457_v13 = vmul.f32 %v884_v0, %v434_v10  ;;  %v436_v15 = vld [vmem:[%s890_s13 + $0x30] sm:$0xff]  ;;  %v460_v19 = vmul.f32 %v884_v0, %v437_v14  ;;  %v438_v23 = vld [vmem:[%s890_s13 + $0x40] sm:$0xff] }
  0x16   : > { %v458_v12 = vmul.f32 %v884_v0, %v435_v9  ;;  %v478_v16 = vadd.f32 %v895_v1, %v455_v5  ;;  %v476_v17 = vadd.f32 %v895_v1, %v453_v6  ;;  %v479_v18 = vadd.f32 %v895_v1, %v456_v7  ;;  %v439_v22 = vld [vmem:[%s890_s13 + $0x48] sm:$0xff]  ;;  %v441_v24 = vld [vmem:[%s890_s13 + $0x58] sm:$0xff]  ;;  %v440_v28 = vld [vmem:[%s890_s13 + $0x50] sm:$0xff] }
  0x17   : > { %v477_v20 = vadd.f32 %v895_v1, %v454_v11  ;;  %v459_v21 = vmul.f32 %v884_v0, %v436_v15  ;;  %v443_v29 = vld [vmem:[%s890_s13 + $0x68] sm:$0xff]  ;;  %v442_v30 = vld [vmem:[%s890_s13 + $0x60] sm:$0xff]  ;;  %v480_v32 = vadd.f32 %v895_v1, %v457_v13  ;;  %v932_v33 = vadd.f32 %v895_v1, %v460_v19  ;;  %v445_v42 = vld [vmem:[%s890_s13 + $0x78] sm:$0xff] }
  0x18   : > { %v494_v25 = vmax.f32 %v478_v16, 0.0  ;;  %v492_v26 = vmax.f32 %v476_v17, 0.0  ;;  %v481_v27 = vadd.f32 %v895_v1, %v458_v12  ;;  %v495_v31 = vmax.f32 %v479_v18, 0.0  ;;  %v444_v44 = vld [vmem:[%s890_s13 + $0x70] sm:$0xff]  ;;  %v335_v50 = vld [vmem:[%s928_s18] sm:$0xff]  ;;  %v338_v51 = vld [vmem:[%s928_s18 + $0x18] sm:$0xff] }
  0x19   : > { %v935_v34 = vadd.f32 %v895_v1, %v459_v21  ;;  %v493_v35 = vmax.f32 %v477_v20, 0.0  ;;  %v462_v36 = vmul.f32 %v884_v0, %v439_v22  ;;  %v461_v37 = vmul.f32 %v884_v0, %v438_v23  ;;  %v337_v46 = vld [vmem:[%s928_s18 + $0x10] sm:$0xff]  ;;  %v336_v52 = vld [vmem:[%s928_s18 + $0x8] sm:$0xff]  ;;  %v339_v58 = vld [vmem:[%s928_s18 + $0x20] sm:$0xff] }
  0x1a   : > { %528 = vrot.lane.b32.xlu1 %v494_v25, %s813_s19  ;;  %524 = vrot.lane.b32.xlu0 %v492_v26, %s813_s19  ;;  %v464_v38 = vmul.f32 %v884_v0, %v441_v24  ;;  %v463_v39 = vmul.f32 %v884_v0, %v440_v28  ;;  %v466_v40 = vmul.f32 %v884_v0, %v443_v29  ;;  %v497_v47 = vmax.f32 %v481_v27, 0.0  ;;  %v340_v57 = vld [vmem:[%s928_s18 + $0x28] sm:$0xff]  ;;  %v342_v6 = vld [vmem:[%s928_s18 + $0x38] sm:$0xff] }
  0x1b   : > { %v465_v41 = vmul.f32 %v884_v0, %v442_v30  ;;  %v947_v43 = vadd.f32 %v895_v1, %v462_v36  ;;  %v496_v48 = vmax.f32 %v480_v32, 0.0  ;;  %v957_v49 = vadd.f32 %v895_v1, %v461_v37  ;;  %v341_v10 = vld [vmem:[%s928_s18 + $0x30] sm:$0xff]  ;;  %v344_v19 = vld [vmem:[%s928_s18 + $0x48] sm:$0xff]  ;;  %v343_v20 = vld [vmem:[%s928_s18 + $0x40] sm:$0xff] }
  0x1c   : > { %v499_v53 = vmax.f32 %v932_v33, 0.0  ;;  %v498_v54 = vmax.f32 %v935_v34, 0.0  ;;  %v967_v55 = vadd.f32 %v895_v1, %v464_v38  ;;  %v970_v56 = vmul.f32 %v884_v0, %v445_v42  ;;  %v346_v25 = vld [vmem:[%s928_s18 + $0x58] sm:$0xff]  ;;  %v345_v26 = vld [vmem:[%s928_s18 + $0x50] sm:$0xff]  ;;  %v348_v27 = vld [vmem:[%s928_s18 + $0x68] sm:$0xff] }
  0x1d   : > { %v975_v59 = vadd.f32 %v895_v1, %v463_v39  ;;  %v978_v60 = vadd.f32 %v895_v1, %v466_v40  ;;  %v981_v61 = vadd.f32 %v895_v1, %v465_v41  ;;  %v984_v62 = vmul.f32 %v884_v0, %v444_v44  ;;  %v347_v32 = vld [vmem:[%s928_s18 + $0x60] sm:$0xff]  ;;  %v350_v37 = vld [vmem:[%s928_s18 + $0x78] sm:$0xff]  ;;  %v349_v42 = vld [vmem:[%s928_s18 + $0x70] sm:$0xff] }
  0x1e   : > { %530 = vrot.lane.b32.xlu1 %v495_v31, %s813_s19  ;;  %526 = vrot.lane.b32.xlu0 %v493_v35, %s813_s19  ;;  %v501_v2 = vmax.f32 %v947_v43, 0.0  ;;  %v360_v3 = vmul.f32 %v953_v45, %v337_v46  ;;  %v358_v4 = vmul.f32 %v953_v45, %v335_v50  ;;  %v361_v5 = vmul.f32 %v953_v45, %v338_v51 }
  0x1f   : > { %v500_v7 = vmax.f32 %v957_v49, 0.0  ;;  %v359_v0 = vmul.f32 %v953_v45, %v336_v52  ;;  %v363_v8 = vmul.f32 %v953_v45, %v340_v57  ;;  %v362_v9 = vmul.f32 %v953_v45, %v339_v58 }
  0x20   : > { %v503_v11 = vmax.f32 %v967_v55, 0.0  ;;  %v383_v12 = vadd.f32 %v989_v63, %v360_v3  ;;  %v381_v13 = vadd.f32 %v989_v63, %v358_v4  ;;  %v384_v14 = vadd.f32 %v989_v63, %v361_v5 }
  0x21   : > { %v382_v15 = vadd.f32 %v989_v63, %v359_v0  ;;  %v386_v16 = vadd.f32 %v989_v63, %v363_v8  ;;  %v385_v17 = vadd.f32 %v989_v63, %v362_v9  ;;  %v365_v18 = vmul.f32 %v953_v45, %v342_v6 }
  0x22   : > { %534 = vrot.lane.b32.xlu1 %v497_v47, %s813_s19  ;;  %532 = vrot.lane.b32.xlu0 %v496_v48, %s813_s19  ;;  %v399_v21 = vmax.f32 %v383_v12, 0.0  ;;  %v397_v22 = vmax.f32 %v381_v13, 0.0  ;;  %v400_v23 = vmax.f32 %v384_v14, 0.0  ;;  %v364_v24 = vmul.f32 %v953_v45, %v341_v10 }
  0x23   : > { %v398_v28 = vmax.f32 %v382_v15, 0.0  ;;  %v402_v29 = vmax.f32 %v386_v16, 0.0  ;;  %v401_v30 = vmax.f32 %v385_v17, 0.0  ;;  %v388_v31 = vadd.f32 %v989_v63, %v365_v18 }
  0x24   : > { %v502_v33 = vmax.f32 %v975_v59, 0.0  ;;  %416 = vst.msk [vmem:[%s1011_s7 + $0x10] sm:$0xff] %vm413_vm0, %v399_v21  ;;  %414 = vst.msk [vmem:[%s1011_s7] sm:$0xff] %vm413_vm0, %v397_v22  ;;  %v387_v34 = vadd.f32 %v989_v63, %v364_v24  ;;  %v367_v35 = vmul.f32 %v953_v45, %v344_v19  ;;  %v366_v36 = vmul.f32 %v953_v45, %v343_v20 }
  0x25   : > { %417 = vst.msk [vmem:[%s1011_s7 + $0x18] sm:$0xff] %vm413_vm0, %v400_v23  ;;  %415 = vst.msk [vmem:[%s1011_s7 + $0x8] sm:$0xff] %vm413_vm0, %v398_v28  ;;  %v404_v38 = vmax.f32 %v388_v31, 0.0  ;;  %v369_v39 = vmul.f32 %v953_v45, %v346_v25  ;;  %v368_v40 = vmul.f32 %v953_v45, %v345_v26  ;;  %v371_v41 = vmul.f32 %v953_v45, %v348_v27 }
  0x26   : > { %538 = vrot.lane.b32.xlu1 %v499_v53, %s813_s19  ;;  %536 = vrot.lane.b32.xlu0 %v498_v54, %s813_s19  ;;  %419 = vst.msk [vmem:[%s1011_s7 + $0x28] sm:$0xff] %vm413_vm0, %v402_v29  ;;  %418 = vst.msk [vmem:[%s1011_s7 + $0x20] sm:$0xff] %vm413_vm0, %v401_v30  ;;  %v403_v43 = vmax.f32 %v387_v34, 0.0  ;;  %v390_v44 = vadd.f32 %v989_v63, %v367_v35  ;;  %v389_v46 = vadd.f32 %v989_v63, %v366_v36 }
  0x27   : > { %v370_v47 = vmul.f32 %v953_v45, %v347_v32  ;;  %421 = vst.msk [vmem:[%s1011_s7 + $0x38] sm:$0xff] %vm413_vm0, %v404_v38  ;;  %v392_v48 = vadd.f32 %v989_v63, %v369_v39  ;;  %v391_v49 = vadd.f32 %v989_v63, %v368_v40  ;;  %v394_v50 = vadd.f32 %v989_v63, %v371_v41 }
  0x28   : > { %v373_v51 = vmul.f32 %v953_v45, %v350_v37  ;;  %420 = vst.msk [vmem:[%s1011_s7 + $0x30] sm:$0xff] %vm413_vm0, %v403_v43  ;;  %v406_v52 = vmax.f32 %v390_v44, 0.0  ;;  %v405_v53 = vmax.f32 %v389_v46, 0.0  ;;  %v372_v57 = vmul.f32 %v953_v45, %v349_v42 }
  0x29   : > { %v393_v54 = vadd.f32 %v989_v63, %v370_v47  ;;  %v408_v58 = vmax.f32 %v392_v48, 0.0  ;;  %v407_v59 = vmax.f32 %v391_v49, 0.0  ;;  %v410_v3 = vmax.f32 %v394_v50, 0.0 }
  0x2a   : > { %542 = vrot.lane.b32.xlu1 %v501_v2, %s813_s19  ;;  %540 = vrot.lane.b32.xlu0 %v500_v7, %s813_s19  ;;  %v396_v4 = vadd.f32 %v989_v63, %v373_v51  ;;  %423 = vst.msk [vmem:[%s1011_s7 + $0x48] sm:$0xff] %vm413_vm0, %v406_v52  ;;  %422 = vst.msk [vmem:[%s1011_s7 + $0x40] sm:$0xff] %vm413_vm0, %v405_v53  ;;  %v395_v5 = vadd.f32 %v989_v63, %v372_v57  ;;  %v505_v7 = vmax.f32 %v978_v60, 0.0 }
  0x2b   : > { %v409_v2 = vmax.f32 %v393_v54, 0.0  ;;  %v491_v6 = vadd.f32 %v895_v1, %v970_v56  ;;  %425 = vst.msk [vmem:[%s1011_s7 + $0x58] sm:$0xff] %vm413_vm0, %v408_v58  ;;  %424 = vst.msk [vmem:[%s1011_s7 + $0x50] sm:$0xff] %vm413_vm0, %v407_v59  ;;  %v504_v63 = vmax.f32 %v981_v61, 0.0  ;;  %v490_v56 = vadd.f32 %v895_v1, %v984_v62 }
  0x2c   : > { %427 = vst.msk [vmem:[%s1011_s7 + $0x68] sm:$0xff] %vm413_vm0, %v410_v3  ;;  %v412_v45 = vmax.f32 %v396_v4, 0.0  ;;  %v411_v0 = vmax.f32 %v395_v5, 0.0 }
  0x2d   : > { %426 = vst.msk [vmem:[%s1011_s7 + $0x60] sm:$0xff] %vm413_vm0, %v409_v2  ;;  %v507_v55 = vmax.f32 %v491_v6, 0.0  ;;  %v506_v60 = vmax.f32 %v490_v56, 0.0 }
  0x2e   : > { %546 = vrot.lane.b32.xlu1 %v503_v11, %s813_s19  ;;  %544 = vrot.lane.b32.xlu0 %v502_v33, %s813_s19  ;;  %429 = vst.msk [vmem:[%s1011_s7 + $0x78] sm:$0xff] %vm413_vm0, %v412_v45  ;;  %428 = vst.msk [vmem:[%s1011_s7 + $0x70] sm:$0xff] %vm413_vm0, %v411_v0 }
  0x32   : > { %550 = vrot.lane.b32.xlu1 %v505_v7, %s813_s19  ;;  %548 = vrot.lane.b32.xlu0 %v504_v63, %s813_s19 }
  0x36   : > { %554 = vrot.lane.b32.xlu1 %v507_v55, %s813_s19  ;;  %552 = vrot.lane.b32.xlu0 %v506_v60, %s813_s19 }
  0x8c   : > { %v529_v1 = vpop.permute.xlu1 %528  ;;  %v525_v61 = vpop.permute.xlu0 %524 }
  0x8d   : > { %575 = vst.msk [vmem:[%s1011_s7 + $0x10] sm:$0xff] %vm572_vm1, %v529_v1  ;;  %573 = vst.msk [vmem:[%s1011_s7] sm:$0xff] %vm572_vm1, %v525_v61 }
  0x90   : > { %v531_v62 = vpop.permute.xlu1 %530  ;;  %v527_v8 = vpop.permute.xlu0 %526 }
  0x91   : > { %576 = vst.msk [vmem:[%s1011_s7 + $0x18] sm:$0xff] %vm572_vm1, %v531_v62  ;;  %574 = vst.msk [vmem:[%s1011_s7 + $0x8] sm:$0xff] %vm572_vm1, %v527_v8 }
  0x94   : > { %v535_v9 = vpop.permute.xlu1 %534  ;;  %v533_v10 = vpop.permute.xlu0 %532 }
  0x95   : > { %578 = vst.msk [vmem:[%s1011_s7 + $0x28] sm:$0xff] %vm572_vm1, %v535_v9  ;;  %577 = vst.msk [vmem:[%s1011_s7 + $0x20] sm:$0xff] %vm572_vm1, %v533_v10 }
  0x98   : > { %v539_v11 = vpop.permute.xlu1 %538  ;;  %v537_v12 = vpop.permute.xlu0 %536 }
  0x99   : > { %580 = vst.msk [vmem:[%s1011_s7 + $0x38] sm:$0xff] %vm572_vm1, %v539_v11  ;;  %579 = vst.msk [vmem:[%s1011_s7 + $0x30] sm:$0xff] %vm572_vm1, %v537_v12 }
  0x9c   : > { %v543_v13 = vpop.permute.xlu1 %542  ;;  %v541_v14 = vpop.permute.xlu0 %540 }
  0x9d   : > { %582 = vst.msk [vmem:[%s1011_s7 + $0x48] sm:$0xff] %vm572_vm1, %v543_v13  ;;  %581 = vst.msk [vmem:[%s1011_s7 + $0x40] sm:$0xff] %vm572_vm1, %v541_v14 }
  0xa0   : > { %v547_v15 = vpop.permute.xlu1 %546  ;;  %v545_v16 = vpop.permute.xlu0 %544 }
  0xa1   : > { %584 = vst.msk [vmem:[%s1011_s7 + $0x58] sm:$0xff] %vm572_vm1, %v547_v15  ;;  %583 = vst.msk [vmem:[%s1011_s7 + $0x50] sm:$0xff] %vm572_vm1, %v545_v16 }
  0xa4   : > { %v551_v17 = vpop.permute.xlu1 %550  ;;  %v549_v18 = vpop.permute.xlu0 %548 }
  0xa5   : > { %586 = vst.msk [vmem:[%s1011_s7 + $0x68] sm:$0xff] %vm572_vm1, %v551_v17  ;;  %585 = vst.msk [vmem:[%s1011_s7 + $0x60] sm:$0xff] %vm572_vm1, %v549_v18 }
  0xa8   : > { %v555_v19 = vpop.permute.xlu1 %554  ;;  %v553_v20 = vpop.permute.xlu0 %552 }
  0xa9   : > { %588 = vst.msk [vmem:[%s1011_s7 + $0x78] sm:$0xff] %vm572_vm1, %v555_v19  ;;  %587 = vst.msk [vmem:[%s1011_s7 + $0x70] sm:$0xff] %vm572_vm1, %v553_v20 }
  0xaa PF: > { %s16_s25 = sadd.s32 1, %s811_s25   ;;  %s1149_s21 = smov %s803_s23 }
  0xab   : > { %p13_p7 = scmp.ge.s32.totalorder %s16_s25, 6   ;;  %s1150_s22 = smov %s807_s24 }
  0xac   : > { %s1151_s23 = smov %s1154_s26  ;;  %s1152_s24 = smov %s1158_s27 }
  0xad   :  { %15 = sbr.rel (!%p13_p7) target bundleno = 3 (0x3), region = 77 }

// kernel: res_unet_encoder_block.4
= control target key start
LH: loop header
LB: loop body
LE: loop exit
PB: predicated region body
PF: predicated region fallthrough
CT: control target
= control target key end

     0   :  { %s2007_s21 = smov 0   ;;  %s2009_s22 = smov 0   ;;  %s3013_s0 = inlined_call_operand.vmem [shape: f32[2,18,18,8], index: 0, kind: input, shape index: {}]   ;;  %s3014_s1 = inlined_call_operand.vmem [shape: f32[18,18,1], index: 1, kind: input, shape index: {}]   ;;  %s3015_s2 = inlined_call_operand.vmem [shape: f32[72,8], index: 2, kind: input, shape index: {}]   ;;  %s3016_s3 = inlined_call_operand.vmem [shape: f32[1,8], index: 3, kind: input, shape index: {}]   ;;  %s3017_s4 = inlined_call_operand.vmem [shape: f32[1,8], index: 4, kind: input, shape index: {}]   ;;  %s3018_s5 = inlined_call_operand.vmem [shape: f32[2,16,16,8], index: 5, kind: output, shape index: {0}]   ;;  %s3019_s6 = inlined_call_operand.vmem [shape: f32[2,2,2,8], index: 6, kind: output, shape index: {1}]  }
   0x1   :  { %s2011_s23 = smov 0   ;;  %s2013_s24 = smov 0  }
   0x2   :  { %s2015_s25 = smov 0  }
   0x3 LB: > { %s26_s26 = sadd.s32 1, %s1953_s23  ;;  %s29_s27 = sadd.s32 1, %s1957_s24  ;;  %s1961_s25 = sphi %s2015_s25, %s17_s25   ;;  %s1957_s24 = sphi %s2013_s24, %s3033_s24   ;;  %s1953_s23 = sphi %s2011_s23, %s3032_s23   ;;  %s1949_s22 = sphi %s2009_s22, %s3031_s22   ;;  %s1945_s21 = sphi %s2007_s21, %s3030_s21  }
   0x4   : > { %p27_p0 = scmp.ge.s32.totalorder %s26_s26, 2  ;;  %p1756_p1 = scmp.ge.s32.totalorder %s1961_s25, 1 }
   0x5   : > { %p231_p2 = scmp.lt.s32.totalorder %s1961_s25, 5 }
   0x6   : > { %s3035_s26 = smov (%p27_p0, %s26_s26), 0  ;;  %s3037_s27 = smov (!%p27_p0, %s29_s27), %s1957_s24 }
   0x7   : > { %p232_p3 = pnand %p1756_p1, %p231_p2  ;;  %p31_p4 = scmp.ge.s32.totalorder %s3037_s27, 2 }
   0x8   : > { %s1765_s28 = smul.u32 (!%p232_p3), 192, %s1945_s21  ;;  %p274_p5 = scmp.lt.s32.totalorder (!%p232_p3), %s1949_s22, 1 }
   0x9   : > { %s3039_s27 = smov (%p31_p4, %s3037_s27), 0  ;;  %235 = sbr.rel (%p232_p3) target bundleno = 735 (0x2df), region = 40 }
   0xa   : > { %s2043_s7 = scalar_lea.vmem (!%p232_p3), %s3014_s1, %s1765_s28  ;;  %s1964_s17 = smov (!%p232_p3), 24  }
   0xb   : > { %s1965_s18 = smov (!%p232_p3), 48   ;;  %s1966_s19 = smov (!%p232_p3), 8  }
   0xc   : > { %s1967_s20 = smov (!%p232_p3), 16   ;;  %s1969_s13 = smov (!%p232_p3), 40  }
   0xd   : > { %s1971_s14 = smov (!%p232_p3), 64   ;;  %p292_p7 = scmp.lt.s32.totalorder (!%p232_p3), %s1945_s21, 1 }
   0xe   : > { %v1963_v0 = vmov 0   ;;  %v334_v1 = vld [vmem:[%s2043_s7 + $0x10] sm:$0x3]  ;;  %v332_v2 = vld [vmem:[%s2043_s7] sm:$0xff]  ;;  %v335_v3 = vld [vmem:[%s2043_s7 + $0x18] sm:$0xff]  ;;  %s3041_s22 = smov (!%p274_p5, %s1949_s22), 1 }
   0xf   : > { %1922 = vset.pattern.permute.xlu1 %v1963_v0  ;;  %1921 = vset.pattern.permute.xlu0 %v1963_v0  ;;  %v333_v4 = vld [vmem:[%s2043_s7 + $0x8] sm:$0xff]  ;;  %v336_v6 = vld [vmem:[%s2043_s7 + $0x20] sm:$0xff]  ;;  %s1871_s8 = smul.u32 432, %s3041_s22  ;;  %v339_v7 = vld [vmem:[%s2043_s7 + $0x38] sm:$0xff]  ;;  %vm670_vm0 = vcmask 1046528   ;;  %vm759_vm1 = vcmask 1045504  }
  0x10   : > { %478 = vperm.xlu1 %1922, %v334_v1   ;;  %468 = vperm.xlu0 %1921, %v332_v2   ;;  %v337_v5 = vld [vmem:[%s2043_s7 + $0x28] sm:$0x3]  ;;  %v338_v8 = vld [vmem:[%s2043_s7 + $0x30] sm:$0xff]  ;;  %v340_v10 = vld [vmem:[%s2043_s7 + $0x40] sm:$0x3]  ;;  %vm1162_vm2 = vcmask 64512  }
  0x11   : > { %s278_s11 = scalar_lea.vmem %s3013_s0, %s1871_s8  ;;  %v341_v9 = vld [vmem:[%s2043_s7 + $0x48] sm:$0xff]  ;;  %v343_v14 = vld [vmem:[%s2043_s7 + $0x58] sm:$0x3]  ;;  %v2070_v15 = vld [vmem:[%s3016_s3] ss:$0 sm:$0xff]  ;;  %s1968_s8 = smov 32  }
  0x12   : > { %s2059_s12 = scalar_lea.vmem %s278_s11, %s1765_s28  ;;  %v342_v16 = vld [vmem:[%s2043_s7 + $0x50] sm:$0xff]  ;;  %v2080_v21 = vld [vmem:[%s3017_s4] ss:$0 sm:$0xff]  ;;  %v345_v26 = vld [vmem:[%s2043_s7 + $0x68] sm:$0xff]  ;;  %vm1179_vm3 = vcmask 130048   ;;  %vm1196_vm4 = vcmask 195584  }
  0x13   : > { %v312_v11 = vld [vmem:[%s2059_s12 + $0x58] sm:$0x3]  ;;  %v314_v12 = vld [vmem:[%s2059_s12 + $0x68] sm:$0xff]  ;;  %v313_v13 = vld [vmem:[%s2059_s12 + $0x60] sm:$0xff]  ;;  %vm1213_vm5 = vcmask 261120   ;;  %vm1230_vm6 = vcmask 326656  }
  0x14   : > { %483 = vperm.xlu1 %1922, %v335_v3   ;;  %473 = vperm.xlu0 %1921, %v333_v4   ;;  %v380_v17 = vmul.f32 %v2070_v15, %v312_v11  ;;  %v382_v18 = vmul.f32 %v2070_v15, %v314_v12  ;;  %v316_v19 = vld [vmem:[%s2059_s12 + $0x78] sm:$0xff]  ;;  %v315_v20 = vld [vmem:[%s2059_s12 + $0x70] sm:$0x3]  ;;  %v381_v22 = vmul.f32 %v2070_v15, %v313_v13  ;;  %v344_v29 = vld [vmem:[%s2043_s7 + $0x60] sm:$0xff]  ;;  %vm1247_vm7 = vcmask 392192   ;;  %s1762_s28 = sshll.u32 %s3041_s22, 1 }
  0x15   : > { %v384_v25 = vmul.f32 %v2070_v15, %v316_v19  ;;  %v383_v28 = vmul.f32 %v2070_v15, %v315_v20  ;;  %v318_v31 = vld [vmem:[%s2059_s12 + $0x88] sm:$0x3]  ;;  %v317_v32 = vld [vmem:[%s2059_s12 + $0x80] sm:$0xff]  ;;  %v347_v38 = vld [vmem:[%s2043_s7 + $0x78] sm:$0xff]  ;;  %vm1264_vm8 = vcmask 457728   ;;  %vm1281_vm9 = vcmask 523264  }
  0x16   : > { %v2084_v23 = vadd.f32 %v2080_v21, %v380_v17  ;;  %v2087_v24 = vadd.f32 %v2080_v21, %v382_v18  ;;  %v2092_v27 = vadd.f32 %v2080_v21, %v381_v22  ;;  %v386_v34 = vmul.f32 %v2070_v15, %v318_v31  ;;  %v346_v39 = vld [vmem:[%s2043_s7 + $0x70] sm:$0x3]  ;;  %v320_v40 = vld [vmem:[%s2059_s12 + $0x98] sm:$0xff]  ;;  %v349_v44 = vld [vmem:[%s2043_s7 + $0x88] sm:$0x3] }
  0x17   : > { %v2097_v30 = vadd.f32 %v2080_v21, %v384_v25  ;;  %v2102_v33 = vadd.f32 %v2080_v21, %v383_v28  ;;  %v385_v35 = vmul.f32 %v2070_v15, %v317_v32  ;;  %v319_v41 = vld [vmem:[%s2059_s12 + $0x90] sm:$0xff]  ;;  %v388_v42 = vmul.f32 %v2070_v15, %v320_v40  ;;  %v348_v45 = vld [vmem:[%s2043_s7 + $0x80] sm:$0xff]  ;;  %v322_v48 = vld [vmem:[%s2059_s12 + $0xa8] sm:$0xff] }
  0x18   : > { %493 = vperm.xlu1 %1922, %v337_v5   ;;  %488 = vperm.xlu0 %1921, %v336_v6   ;;  %v2107_v36 = vadd.f32 %v2080_v21, %v386_v34  ;;  %v387_v43 = vmul.f32 %v2070_v15, %v319_v41  ;;  %v321_v49 = vld [vmem:[%s2059_s12 + $0xa0] sm:$0x3]  ;;  %v390_v50 = vmul.f32 %v2070_v15, %v322_v48  ;;  %v351_v52 = vld [vmem:[%s2043_s7 + $0x98] sm:$0xff]  ;;  %v350_v53 = vld [vmem:[%s2043_s7 + $0x90] sm:$0xff]  ;;  %vm1307_vm10 = vcmask 588800  }
  0x19   : > { %v2110_v37 = vadd.f32 %v2080_v21, %v385_v35  ;;  %v2121_v46 = vadd.f32 %v2080_v21, %v388_v42  ;;  %v389_v51 = vmul.f32 %v2070_v15, %v321_v49  ;;  %v324_v56 = vld [vmem:[%s2059_s12 + $0xb8] sm:$0x3]  ;;  %v323_v57 = vld [vmem:[%s2059_s12 + $0xb0] sm:$0xff]  ;;  %v353_v60 = vld [vmem:[%s2043_s7 + $0xa8] sm:$0xff]  ;;  %vm1607_vm11 = vcmask 1040384  }
  0x1a   : > { %v2124_v47 = vadd.f32 %v2080_v21, %v387_v43  ;;  %v2133_v54 = vadd.f32 %v2080_v21, %v390_v50  ;;  %v392_v58 = vmul.f32 %v2070_v15, %v324_v56  ;;  %v391_v59 = vmul.f32 %v2070_v15, %v323_v57  ;;  %v352_v61 = vld [vmem:[%s2043_s7 + $0xa0] sm:$0x3]  ;;  %v326_v0 = vld [vmem:[%s2059_s12 + $0xc8] sm:$0xff]  ;;  %v355_v4 = vld [vmem:[%s2043_s7 + $0xb8] sm:$0x3] }
  0x1b   : > { %v2136_v55 = vadd.f32 %v2080_v21, %v389_v51  ;;  %v325_v1 = vld [vmem:[%s2059_s12 + $0xc0] sm:$0xff]  ;;  %v394_v2 = vmul.f32 %v2070_v15, %v326_v0  ;;  %v354_v5 = vld [vmem:[%s2043_s7 + $0xb0] sm:$0xff]  ;;  %v357_v12 = vld [vmem:[%s2043_s7 + $0xc8] sm:$0xff]  ;;  %vm1609_vm12 = vcmask 58368  }
  0x1c   : > { %503 = vperm.xlu1 %1922, %v339_v7   ;;  %498 = vperm.xlu0 %1921, %v338_v8   ;;  %v2145_v62 = vadd.f32 %v2080_v21, %v392_v58  ;;  %v2148_v63 = vadd.f32 %v2080_v21, %v391_v59  ;;  %v393_v3 = vmul.f32 %v2070_v15, %v325_v1  ;;  %v328_v8 = vld [vmem:[%s2059_s12 + $0xd8] sm:$0xff]  ;;  %v356_v13 = vld [vmem:[%s2043_s7 + $0xc0] sm:$0xff]  ;;  %v330_v17 = vld [vmem:[%s2059_s12 + $0xe8] sm:$0x3] }
  0x1d   : > { %v2157_v6 = vadd.f32 %v2080_v21, %v394_v2  ;;  %v329_v18 = vld [vmem:[%s2059_s12 + $0xe0] sm:$0xff]  ;;  %v398_v19 = vmul.f32 %v2070_v15, %v330_v17  ;;  %v359_v22 = vld [vmem:[%s2043_s7 + $0xd8] sm:$0xff]  ;;  %v358_v25 = vld [vmem:[%s2043_s7 + $0xd0] sm:$0x3] }
  0x1e   : > { %v2160_v7 = vadd.f32 %v2080_v21, %v393_v3  ;;  %v397_v20 = vmul.f32 %v2070_v15, %v329_v18  ;;  %v360_v31 = vld [vmem:[%s2043_s7 + $0xe0] sm:$0xff]  ;;  %v304_v32 = vld [vmem:[%s2059_s12 + $0x18] sm:$0xff]  ;;  %v307_v41 = vld [vmem:[%s2059_s12 + $0x30] sm:$0xff] }
  0x1f   : > { %v372_v34 = vmul.f32 %v2070_v15, %v304_v32  ;;  %v305_v35 = vld [vmem:[%s2059_s12 + $0x20] sm:$0xff]  ;;  %v308_v40 = vld [vmem:[%s2059_s12 + $0x38] sm:$0xff]  ;;  %v375_v49 = vmul.f32 %v2070_v15, %v307_v41  ;;  %v310_v58 = vld [vmem:[%s2059_s12 + $0x48] sm:$0xff] }
  0x20   : > { %513 = vperm.xlu1 %1922, %v341_v9   ;;  %508 = vperm.xlu0 %1921, %v340_v10   ;;  %v327_v9 = vld [vmem:[%s2059_s12 + $0xd0] sm:$0x3]  ;;  %v396_v10 = vmul.f32 %v2070_v15, %v328_v8  ;;  %v2184_v28 = vadd.f32 %v2080_v21, %v397_v20  ;;  %v376_v48 = vmul.f32 %v2070_v15, %v308_v40  ;;  %v301_v3 = vld [vmem:[%s2059_s12] sm:$0xff] }
  0x21   : > { %v395_v11 = vmul.f32 %v2070_v15, %v327_v9  ;;  %v412_v57 = vadd.f32 %v2080_v21, %v375_v49  ;;  %v311_v59 = vld [vmem:[%s2059_s12 + $0x50] sm:$0xff]  ;;  %v378_v1 = vmul.f32 %v2070_v15, %v310_v58 }
  0x22   : > { %v413_v56 = vadd.f32 %v2080_v21, %v376_v48  ;;  %v303_v2 = vld [vmem:[%s2059_s12 + $0x10] sm:$0x3]  ;;  %v379_v9 = vmul.f32 %v2070_v15, %v311_v59 }
  0x23   : > { %v442_v8 = vmax.f32 %v412_v57, 0.0  ;;  %v415_v20 = vadd.f32 %v2080_v21, %v378_v1  ;;  %v449_v57 = vmax.f32 %v2087_v24, 0.0 }
  0x24   : > { %523 = vperm.xlu1 %1922, %v343_v14   ;;  %518 = vperm.xlu0 %1921, %v342_v16   ;;  %v2169_v14 = vadd.f32 %v2080_v21, %v396_v10  ;;  %v2172_v16 = vadd.f32 %v2080_v21, %v395_v11  ;;  %v371_v11 = vmul.f32 %v2070_v15, %v303_v2  ;;  %v450_v2 = vmax.f32 %v2102_v33, 0.0 }
  0x25   : > { %v453_v33 = vmax.f32 %v2107_v36, 0.0 }
  0x28   : > { %533 = vperm.xlu1 %1922, %v345_v26   ;;  %528 = vperm.xlu0 %1921, %v344_v29   ;;  %v2181_v26 = vadd.f32 %v2080_v21, %v398_v19  ;;  %v361_v29 = vld [vmem:[%s2043_s7 + $0xe8] sm:$0x3]  ;;  %s1970_s7 = smov 56  }
  0x2c   : > { %543 = vperm.xlu1 %1922, %v347_v38   ;;  %538 = vperm.xlu0 %1921, %v346_v39   ;;  %v409_v38 = vadd.f32 %v2080_v21, %v372_v34  ;;  %v373_v39 = vmul.f32 %v2070_v15, %v305_v35  ;;  %v306_v35 = vld [vmem:[%s2059_s12 + $0x28] sm:$0x3] }
  0x30   : > { %553 = vperm.xlu1 %1922, %v349_v44   ;;  %548 = vperm.xlu0 %1921, %v348_v45   ;;  %v439_v44 = vmax.f32 %v409_v38, 0.0  ;;  %v410_v45 = vadd.f32 %v2080_v21, %v373_v39  ;;  %v445_v38 = vmax.f32 %v415_v20, 0.0 }
  0x34   : > { %563 = vperm.xlu1 %1922, %v351_v52   ;;  %558 = vperm.xlu0 %1921, %v350_v53   ;;  %v440_v53 = vmax.f32 %v410_v45, 0.0  ;;  %v374_v45 = vmul.f32 %v2070_v15, %v306_v35 }
  0x38   : > { %573 = vperm.xlu1 %1922, %v353_v60   ;;  %568 = vperm.xlu0 %1921, %v352_v61   ;;  %v302_v60 = vld [vmem:[%s2059_s12 + $0x8] sm:$0xff] }
  0x39   : > { %v370_v10 = vmul.f32 %v2070_v15, %v302_v60  ;;  %v411_v60 = vadd.f32 %v2080_v21, %v374_v45  ;;  %v455_v45 = vmax.f32 %v2121_v46, 0.0 }
  0x3c   : > { %583 = vperm.xlu1 %1922, %v355_v4   ;;  %578 = vperm.xlu0 %1921, %v354_v5   ;;  %v443_v5 = vmax.f32 %v413_v56, 0.0 }
  0x40   : > { %593 = vperm.xlu1 %1922, %v357_v12   ;;  %588 = vperm.xlu0 %1921, %v356_v13   ;;  %v369_v12 = vmul.f32 %v2070_v15, %v301_v3 }
  0x44   : > { %603 = vperm.xlu1 %1922, %v359_v22   ;;  %598 = vperm.xlu0 %1921, %v358_v25   ;;  %v416_v22 = vadd.f32 %v2080_v21, %v379_v9  ;;  %v407_v25 = vadd.f32 %v2080_v21, %v370_v10  ;;  %v452_v10 = vmax.f32 %v2110_v37, 0.0 }
  0x46   : > { %v446_v39 = vmax.f32 %v416_v22, 0.0  ;;  %v437_v40 = vmax.f32 %v407_v25, 0.0 }
  0x48   : > { %613 = vperm.xlu1 %1922, %v361_v29   ;;  %608 = vperm.xlu0 %1921, %v360_v31   ;;  %v408_v29 = vadd.f32 %v2080_v21, %v371_v11  ;;  %v406_v31 = vadd.f32 %v2080_v21, %v369_v12 }
  0x4a   : > { %v438_v41 = vmax.f32 %v408_v29, 0.0 }
  0x8b   : > { %v479_v42 = vpop.permute.xlu1 %478  ;;  %v469_v43 = vpop.permute.xlu0 %468 }
  0x8c   : > { %v618_v58 = vmul.f32 %v479_v42, %v438_v41  ;;  %v441_v42 = vmax.f32 %v411_v60, 0.0  ;;  %v309_v41 = vld [vmem:[%s2059_s12 + $0x40] sm:$0x3] }
  0x8e   : > { %v674_v24 = vrot.slane %v618_v58, 1  ;;  %v763_v37 = vrot.slane %v618_v58, 2 }
  0x8f   : > { %v484_v50 = vpop.permute.xlu1 %483  ;;  %v474_v51 = vpop.permute.xlu0 %473 }
  0x90   : > { %v2198_v52 = vmul.f32 %v484_v50, %v439_v44  ;;  %v436_v44 = vmax.f32 %v406_v31, 0.0  ;;  %v2247_v56 = vmul.f32 %v474_v51, %v437_v40 }
  0x92   : > { %850 = vrot.lane.b32.xlu0 %v2198_v52, %s1964_s17  ;;  %v2254_v59 = vmul.f32 %v469_v43, %v436_v44  ;;  %v672_v51 = vrot.slane %v2247_v56, 1  ;;  %v676_v46 = vrot.slane %v2198_v52, 1 }
  0x93   : > { %v2207_v61 = vpop.permute.xlu1 %493  ;;  %v489_v0 = vpop.permute.xlu0 %488 }
  0x94   : > { %v2212_v4 = vmul.f32 %v489_v0, %v440_v53  ;;  %v675_v11 = vsel %vm670_vm0, %v672_v51, %v674_v24  ;;  %v2280_v25 = vmul.f32 %v2207_v61, %v441_v42 }
  0x96   : > { %852 = vrot.lane.b32.xlu1 %v2212_v4, %s1964_s17  ;;  %v679_v42 = vrot.slane %v2280_v25, 1 }
  0x97   : > { %v504_v13 = vpop.permute.xlu1 %503  ;;  %v499_v17 = vpop.permute.xlu0 %498 }
  0x98   : > { %v2220_v18 = vmul.f32 %v504_v13, %v443_v5  ;;  %v2222_v19 = vmul.f32 %v499_v17, %v442_v8  ;;  %v671_v8 = vrot.slane %v2254_v59, 1  ;;  %v761_v13 = vrot.slane %v2247_v56, 2 }
  0x9a   : > { %1007 = vrot.lane.b32.xlu1 %v2222_v19, %s1965_s18  ;;  %1009 = vrot.lane.b32.xlu0 %v2220_v18, %s1965_s18  ;;  %v673_v12 = vsel %vm670_vm0, %v671_v8, %v672_v51  ;;  %v764_v61 = vsel %vm759_vm1, %v761_v13, %v763_v37  ;;  %v456_v8 = vmax.f32 %v2136_v55, 0.0 }
  0x9b   : > { %v514_v32 = vpop.permute.xlu1 %513  ;;  %v2233_v34 = vpop.permute.xlu0 %508 }
  0x9c   : > { %v2243_v50 = vmul.f32 %v514_v32, %v445_v38  ;;  %v760_v32 = vrot.slane %v2254_v59, 2 }
  0x9e   : > { %854 = vrot.lane.b32.xlu1 %v2222_v19, %s1964_s17  ;;  %856 = vrot.lane.b32.xlu0 %v2220_v18, %s1964_s17  ;;  %v762_v44 = vsel %vm759_vm1, %v760_v32, %v761_v13 }
  0x9f   : > { %v2241_v48 = vpop.permute.xlu1 %523  ;;  %v519_v49 = vpop.permute.xlu0 %518 }
  0xa0   : > { %v2245_v53 = vmul.f32 %v519_v49, %v446_v39  ;;  %v677_v49 = vrot.slane %v2212_v4, 1 }
  0xa2   : > { %1011 = vrot.lane.b32.xlu1 %v2243_v50, %s1965_s18  ;;  %1013 = vrot.lane.b32.xlu0 %v2245_v53, %s1965_s18 }
  0xa3   : > { %v534_v0 = vpop.permute.xlu1 %533  ;;  %v2257_v1 = vpop.permute.xlu0 %528 }
  0xa4   : > { %v2261_v3 = vmul.f32 %v534_v0, %v449_v57 }
  0xa6   : > { %858 = vrot.lane.b32.xlu1 %v2243_v50, %s1964_s17  ;;  %860 = vrot.lane.b32.xlu0 %v2245_v53, %s1964_s17  ;;  %v692_v22 = vrot.slane %v2261_v3, 1  ;;  %v781_v36 = vrot.slane %v2261_v3, 2 }
  0xa7   : > { %v2267_v43 = vpop.permute.xlu1 %543  ;;  %v539_v5 = vpop.permute.xlu0 %538 }
  0xa8   : > { %v630_v9 = vmul.f32 %v539_v5, %v450_v2  ;;  %v1306_v2 = vld [vmem:[%s3015_s2 + $0x40] sm:$0xff]  ;;  %v377_v5 = vmul.f32 %v2070_v15, %v309_v41  ;;  %v1305_v15 = vld [vmem:[%s3015_s2 + $0x38] sm:$0xff]  ;;  %v680_v41 = vsel %vm670_vm0, %v677_v49, %v679_v42 }
  0xa9   : > { %1811 = vmatprep.subr.mxu0 %v1306_v2  ;;  %1853 = vmatprep.subr.mxu1 %v1306_v2  ;;  %v1302_v42 = vld [vmem:[%s3015_s2 + $0x20] sm:$0xff] }
  0xaa   : > { %v694_v17 = vrot.slane %v630_v9, 1  ;;  %v783_v20 = vrot.slane %v630_v9, 2  ;;  %713 = vrot.lane.b32.xlu1 %v675_v11, %s1966_s19  ;;  %711 = vrot.lane.b32.xlu0 %v673_v12, %s1966_s19  ;;  %v678_v9 = vsel %vm670_vm0, %v676_v46, %v677_v49  ;;  %v1304_v12 = vld [vmem:[%s3015_s2 + $0x30] sm:$0xff]  ;;  %v414_v32 = vadd.f32 %v2080_v21, %v377_v5 }
  0xab   : > { %v554_v29 = vpop.permute.xlu1 %553  ;;  %v549_v31 = vpop.permute.xlu0 %548  ;;  %1812 = vmatpush3.msra.mxu0 %v1306_v2  ;;  %1862 = vmatpush3.msra.mxu1 %v1306_v2  ;;  %v460_v2 = vmax.f32 %v2160_v7, 0.0  ;;  %v681_v5 = vrot.slane %v2222_v19, 1 }
  0xac   : > { %v633_v35 = vmul.f32 %v554_v29, %v453_v33  ;;  %v2283_v38 = vmul.f32 %v549_v31, %v452_v10  ;;  %v2288_v39 = vsel %vm670_vm0, %v692_v22, %v694_v17  ;;  %v2293_v40 = vsel %vm759_vm1, %v781_v36, %v783_v20  ;;  %1813 = vmatprep.subr.mxu0 %v1305_v15 }
  0xad   : > { %v766_v33 = vrot.slane %v2212_v4, 2  ;;  %v765_v20 = vrot.slane %v2198_v52, 2  ;;  %1854 = vmatprep.subr.mxu1 %v1305_v15  ;;  %v459_v29 = vmax.f32 %v2145_v62, 0.0  ;;  %v458_v31 = vmax.f32 %v2148_v63, 0.0  ;;  %1814 = vmatpush3.msra.mxu0 %v1305_v15 }
  0xae   : > { %v699_v57 = vrot.slane %v633_v35, 1  ;;  %v788_v58 = vrot.slane %v633_v35, 2  ;;  %802 = vrot.lane.b32.xlu1 %v764_v61, %s1967_s20  ;;  %800 = vrot.lane.b32.xlu0 %v762_v44, %s1967_s20  ;;  %v697_v60 = vrot.slane %v2283_v38, 1  ;;  %v3024_v0 = vrot.slane %v2283_v38, 2  ;;  %v1303_v61 = vld [vmem:[%s3015_s2 + $0x28] sm:$0xff] }
  0xaf   : > { %v564_v51 = vpop.permute.xlu1 %563  ;;  %v2307_v24 = vpop.permute.xlu0 %558  ;;  %v767_v35 = vsel %vm759_vm1, %v765_v20, %v766_v33  ;;  %1815 = vmatprep.subr.mxu0 %v1304_v12  ;;  %1863 = vmatpush3.msra.mxu1 %v1305_v15  ;;  %v768_v63 = vrot.slane %v2280_v25, 2  ;;  %v444_v7 = vmax.f32 %v414_v32, 0.0 }
  0xb0   : > { %v2318_v10 = vsel %vm670_vm0, %v697_v60, %v699_v57  ;;  %v2323_v11 = vsel %vm759_vm1, %v3024_v0, %v788_v58  ;;  %v2328_v55 = vmul.f32 %v564_v51, %v455_v45  ;;  %v461_v58 = vmax.f32 %v2157_v6, 0.0  ;;  %1816 = vmatpush3.msra.mxu0 %v1304_v12  ;;  %1855 = vmatprep.subr.mxu1 %v1304_v12 }
  0xb1   : > { %1817 = vmatprep.subr.mxu0 %v1303_v61  ;;  %1864 = vmatpush3.msra.mxu1 %v1304_v12 }
  0xb2   : > { %715 = vrot.lane.b32.xlu1 %v678_v9, %s1966_s19  ;;  %904 = vrot.lane.b32.xlu0 %v678_v9, %s1968_s8  ;;  %v3023_v21 = vrot.slane %v2328_v55, 1  ;;  %v3022_v62 = vrot.slane %v2328_v55, 2 }
  0xb3   : > { %v2335_v13 = vpop.permute.xlu1 %573  ;;  %v569_v17 = vpop.permute.xlu0 %568  ;;  %1818 = vmatpush3.msra.mxu0 %v1303_v61  ;;  %1856 = vmatprep.subr.mxu1 %v1303_v61 }
  0xb4   : > { %v636_v37 = vmul.f32 %v569_v17, %v456_v8  ;;  %v682_v8 = vrot.slane %v2220_v18, 1  ;;  %v2377_v17 = vld [vmem:[%s3015_s2 + $0x18] sm:$0xff]  ;;  %1819 = vmatprep.subr.mxu0 %v1302_v42  ;;  %1865 = vmatpush3.msra.mxu1 %v1303_v61 }
  0xb5   : > { %1820 = vmatpush3.msra.mxu0 %v1302_v42  ;;  %1857 = vmatprep.subr.mxu1 %v1302_v42 }
  0xb6   : > { %v704_v44 = vrot.slane %v636_v37, 1  ;;  %v793_v45 = vrot.slane %v636_v37, 2  ;;  %957 = vrot.lane.b32.xlu1 %v767_v35, %s1969_s13  ;;  %906 = vrot.lane.b32.xlu0 %v680_v41, %s1968_s8 }
  0xb7   : > { %v584_v49 = vpop.permute.xlu1 %583  ;;  %v579_v57 = vpop.permute.xlu0 %578  ;;  %1821 = vmatprep.subr.mxu0 %v2377_v17  ;;  %1866 = vmatpush3.msra.mxu1 %v1302_v42 }
  0xb8   : > { %v639_v51 = vmul.f32 %v584_v49, %v459_v29  ;;  %v2355_v46 = vmul.f32 %v579_v57, %v458_v31  ;;  %v2363_v25 = vsel %vm670_vm0, %v3023_v21, %v704_v44  ;;  %v2368_v6 = vsel %vm759_vm1, %v3022_v62, %v793_v45  ;;  %1822 = vmatpush3.msra.mxu0 %v2377_v17 }
  0xb9   : > { %v462_v31 = vmax.f32 %v2172_v16, 0.0  ;;  %v2395_v16 = vmul.f32 %v2233_v34, %v444_v7  ;;  %v2400_v45 = vsel %vm670_vm0, %v681_v5, %v682_v8  ;;  %v463_v49 = vmax.f32 %v2169_v14, 0.0  ;;  %1858 = vmatprep.subr.mxu1 %v2377_v17 }
  0xba   : > { %v709_v9 = vrot.slane %v639_v51, 1  ;;  %v798_v15 = vrot.slane %v639_v51, 2  ;;  %804 = vrot.lane.b32.xlu1 %v767_v35, %s1967_s20  ;;  %717 = vrot.lane.b32.xlu0 %v680_v41, %s1966_s19  ;;  %v3021_v20 = vrot.slane %v2355_v46, 1  ;;  %v3020_v12 = vrot.slane %v2355_v46, 2 }
  0xbb   : > { %v594_v37 = vpop.permute.xlu1 %593  ;;  %v589_v29 = vpop.permute.xlu0 %588  ;;  %v769_v41 = vsel %vm759_vm1, %v766_v33, %v768_v63  ;;  %v1300_v33 = vld [vmem:[%s3015_s2 + $0x10] sm:$0xff]  ;;  %v465_v7 = vmax.f32 %v2181_v26, 0.0  ;;  %v464_v5 = vmax.f32 %v2184_v28, 0.0  ;;  %1867 = vmatpush3.msra.mxu1 %v2377_v17 }
  0xbc   : > { %v2382_v32 = vmul.f32 %v594_v37, %v461_v58  ;;  %v2384_v35 = vmul.f32 %v589_v29, %v460_v2  ;;  %v2392_v44 = vsel %vm670_vm0, %v3021_v20, %v709_v9  ;;  %v2410_v63 = vsel %vm759_vm1, %v3020_v12, %v798_v15  ;;  %1823 = vmatprep.subr.mxu0 %v1300_v33  ;;  %v1299_v9 = vld [vmem:[%s3015_s2 + $0x8] sm:$0xff] }
  0xbd   : > { %v684_v29 = vrot.slane %v2395_v16, 1  ;;  %v770_v12 = vrot.slane %v2222_v19, 2  ;;  %1824 = vmatpush3.msra.mxu0 %v1300_v33  ;;  %1859 = vmatprep.subr.mxu1 %v1300_v33 }
  0xbe   : > { %1061 = vrot.lane.b32.xlu1 %v2400_v45, %s1970_s7  ;;  %959 = vrot.lane.b32.xlu0 %v769_v41, %s1969_s13  ;;  %v899_v14 = vrot.slane %v2384_v35, 1  ;;  %v900_v34 = vrot.slane %v2382_v32, 1  ;;  %v952_v57 = vrot.slane %v2384_v35, 2  ;;  %v953_v58 = vrot.slane %v2382_v32, 2 }
  0xbf   : > { %v604_v2 = vpop.permute.xlu1 %603  ;;  %v599_v51 = vpop.permute.xlu0 %598  ;;  %1825 = vmatprep.subr.mxu0 %v1299_v9  ;;  %v685_v0 = vsel %vm670_vm0, %v682_v8, %v684_v29  ;;  %1868 = vmatpush3.msra.mxu1 %v1300_v33  ;;  %v687_v33 = vrot.slane %v2245_v53, 1 }
  0xc0   : > { %v642_v61 = vmul.f32 %v599_v51, %v462_v31  ;;  %v2426_v15 = vsel %vm670_vm0, %v899_v14, %v900_v34  ;;  %v2429_v37 = vsel %vm759_vm1, %v952_v57, %v953_v58  ;;  %v2432_v26 = vmul.f32 %v604_v2, %v463_v49  ;;  %v1298_v14 = vld [vmem:[%s3015_s2] sm:$0xff]  ;;  %1826 = vmatpush3.msra.mxu0 %v1299_v9 }
  0xc1   : > { %v771_v31 = vrot.slane %v2220_v18, 2  ;;  %1827 = vmatprep.subr.mxu0 %v1298_v14  ;;  %1860 = vmatprep.subr.mxu1 %v1299_v9 }
  0xc2   : > { %v902_v28 = vrot.slane %v642_v61, 1  ;;  %v955_v51 = vrot.slane %v642_v61, 2  ;;  %908 = vrot.lane.b32.xlu1 %v2400_v45, %s1968_s8  ;;  %806 = vrot.lane.b32.xlu0 %v769_v41, %s1967_s20  ;;  %v1056_v41 = vrot.slane %v2432_v26, 1  ;;  %v1109_v62 = vrot.slane %v2432_v26, 2 }
  0xc3   : > { %v614_v57 = vpop.permute.xlu1 %613  ;;  %v609_v49 = vpop.permute.xlu0 %608  ;;  %v772_v21 = vsel %vm759_vm1, %v770_v12, %v771_v31  ;;  %1828 = vmatpush3.msra.mxu0 %v1298_v14  ;;  %1869 = vmatpush3.msra.mxu1 %v1299_v9 }
  0xc4   : > { %v645_v2 = vmul.f32 %v614_v57, %v465_v7  ;;  %v2443_v20 = vmul.f32 %v609_v49, %v464_v5  ;;  %v2446_v42 = vsel %vm670_vm0, %v900_v34, %v902_v28  ;;  %v2449_v61 = vsel %vm759_vm1, %v953_v58, %v955_v51  ;;  %1861 = vmatprep.subr.mxu1 %v1298_v14 }
  0xc5   : > { %v773_v28 = vrot.slane %v2395_v16, 2  ;;  %1870 = vmatpush3.msra.mxu1 %v1298_v14  ;;  %v686_v16 = vrot.slane %v2243_v50, 1  ;;  %v776_v14 = vrot.slane %v2245_v53, 2  ;;  %v448_v49 = vmax.f32 %v2092_v27, 0.0 }
  0xc6   : > { %v1059_v7 = vrot.slane %v645_v2, 1  ;;  %v1112_v5 = vrot.slane %v645_v2, 2  ;;  %v1057_v34 = vrot.slane %v2443_v20, 1  ;;  %v1110_v58 = vrot.slane %v2443_v20, 2  ;;  %1114 = vrot.lane.b32.xlu1 %v772_v21, %s1971_s14  ;;  %1063 = vrot.lane.b32.xlu0 %v685_v0, %s1970_s7 }
  0xc7   : > { %v774_v51 = vsel %vm759_vm1, %v771_v31, %v773_v28  ;;  %v688_v9 = vsel %vm670_vm0, %v686_v16, %v687_v33  ;;  %v2507_v2 = vmul.f32 %v2257_v1, %v448_v49 }
  0xc8   : > { %v2463_v12 = vsel %vm670_vm0, %v1057_v34, %v1059_v7  ;;  %v2466_v8 = vsel %vm670_vm0, %v1056_v41, %v1057_v34  ;;  %v2469_v17 = vsel %vm759_vm1, %v1110_v58, %v1112_v5  ;;  %v2472_v29 = vsel %vm759_vm1, %v1109_v62, %v1110_v58 }
  0xc9   : > { %v447_v62 = vmax.f32 %v2084_v23, 0.0  ;;  %v775_v23 = vrot.slane %v2243_v50, 2  ;;  %v691_v41 = vrot.slane %v2507_v2, 1  ;;  %v780_v1 = vrot.slane %v2507_v2, 2 }
  0xca   : > { %910 = vrot.lane.b32.xlu1 %v685_v0, %s1968_s8  ;;  %719 = vrot.lane.b32.xlu0 %v2400_v45, %s1966_s19 }
  0xcb   : > { %v627_v45 = vmul.f32 %v2241_v48, %v447_v62  ;;  %v693_v27 = vsel %vm670_vm0, %v691_v41, %v692_v22  ;;  %v782_v7 = vsel %vm759_vm1, %v780_v1, %v781_v36  ;;  %v451_v22 = vmax.f32 %v2097_v30, 0.0 }
  0xcd   : > { %v689_v31 = vrot.slane %v627_v45, 1  ;;  %v778_v48 = vrot.slane %v627_v45, 2  ;;  %v2545_v36 = vmul.f32 %v2267_v43, %v451_v22 }
  0xce   : > { %1116 = vrot.lane.b32.xlu1 %v774_v51, %s1971_s14  ;;  %961 = vrot.lane.b32.xlu0 %v772_v21, %s1969_s13 }
  0xcf   : > { %v779_v57 = vsel %vm759_vm1, %v776_v14, %v778_v48  ;;  %v696_v43 = vrot.slane %v2545_v36, 1 }
  0xd2   : > { %808 = vrot.lane.b32.xlu1 %v772_v21, %s1967_s20  ;;  %721 = vrot.lane.b32.xlu0 %v685_v0, %s1966_s19  ;;  %v777_v0 = vsel %vm759_vm1, %v775_v23, %v776_v14  ;;  %v690_v21 = vsel %vm670_vm0, %v687_v33, %v689_v31  ;;  %v698_v33 = vsel %vm670_vm0, %v696_v43, %v697_v60  ;;  %v3025_v60 = vrot.slane %v2283_v38, 2 }
  0xd6   : > { %1065 = vrot.lane.b32.xlu1 %v688_v9, %s1970_s7  ;;  %963 = vrot.lane.b32.xlu0 %v774_v51, %s1969_s13 }
  0xda   : > { %912 = vrot.lane.b32.xlu1 %v688_v9, %s1968_s8  ;;  %810 = vrot.lane.b32.xlu0 %v774_v51, %s1967_s20 }
  0xde   : > { %1118 = vrot.lane.b32.xlu1 %v777_v0, %s1971_s14  ;;  %1067 = vrot.lane.b32.xlu0 %v690_v21, %s1970_s7 }
  0xe2   : > { %914 = vrot.lane.b32.xlu1 %v690_v21, %s1968_s8  ;;  %723 = vrot.lane.b32.xlu0 %v688_v9, %s1966_s19 }
  0xe6   : > { %1120 = vrot.lane.b32.xlu1 %v779_v57, %s1971_s14  ;;  %965 = vrot.lane.b32.xlu0 %v777_v0, %s1969_s13 }
  0xea   : > { %812 = vrot.lane.b32.xlu1 %v777_v0, %s1967_s20  ;;  %725 = vrot.lane.b32.xlu0 %v690_v21, %s1966_s19 }
  0xee   : > { %1015 = vrot.lane.b32.xlu1 %v2507_v2, %s1965_s18  ;;  %967 = vrot.lane.b32.xlu0 %v779_v57, %s1969_s13 }
  0xf2   : > { %862 = vrot.lane.b32.xlu1 %v2507_v2, %s1964_s17  ;;  %814 = vrot.lane.b32.xlu0 %v779_v57, %s1967_s20  ;;  %v454_v57 = vmax.f32 %v2124_v47, 0.0 }
  0xf6   : > { %1069 = vrot.lane.b32.xlu1 %v693_v27, %s1970_s7  ;;  %1017 = vrot.lane.b32.xlu0 %v2261_v3, %s1965_s18 }
  0xfa   : > { %916 = vrot.lane.b32.xlu1 %v693_v27, %s1968_s8  ;;  %864 = vrot.lane.b32.xlu0 %v2261_v3, %s1964_s17 }
  0xfe   : > { %1122 = vrot.lane.b32.xlu1 %v782_v7, %s1971_s14  ;;  %1071 = vrot.lane.b32.xlu0 %v2288_v39, %s1970_s7 }
 0x102   : > { %918 = vrot.lane.b32.xlu1 %v2288_v39, %s1968_s8  ;;  %727 = vrot.lane.b32.xlu0 %v693_v27, %s1966_s19  ;;  %v2601_v27 = vmul.f32 %v2307_v24, %v454_v57 }
 0x104   : > { %v851_v5 = vpop.permute.xlu0 %850  ;;  %v701_v43 = vrot.slane %v2601_v27, 1 }
 0x106   : > { %1124 = vrot.lane.b32.xlu1 %v2293_v40, %s1971_s14  ;;  %969 = vrot.lane.b32.xlu0 %v782_v7, %s1969_s13 }
 0x108   : > { %v2539_v34 = vpop.permute.xlu1 %852 }
 0x10a   : > { %816 = vrot.lane.b32.xlu1 %v782_v7, %s1967_s20  ;;  %729 = vrot.lane.b32.xlu0 %v2288_v39, %s1966_s19 }
 0x10c   : > { %v2547_v58 = vpop.permute.xlu1 %1007  ;;  %v2549_v28 = vpop.permute.xlu0 %1009 }
 0x10e   : > { %1019 = vrot.lane.b32.xlu1 %v2545_v36, %s1965_s18  ;;  %971 = vrot.lane.b32.xlu0 %v2293_v40, %s1969_s13 }
 0x110   : > { %v2555_v30 = vpop.permute.xlu1 %854  ;;  %v2557_v51 = vpop.permute.xlu0 %856 }
 0x112   : > { %866 = vrot.lane.b32.xlu1 %v2545_v36, %s1964_s17  ;;  %818 = vrot.lane.b32.xlu0 %v2293_v40, %s1967_s20  ;;  %v785_v40 = vrot.slane %v2545_v36, 2 }
 0x114   : > { %v2564_v39 = vpop.permute.xlu1 %1011  ;;  %v2566_v62 = vpop.permute.xlu0 %1013  ;;  %v787_v14 = vsel %vm759_vm1, %v785_v40, %v3025_v60 }
 0x116   : > { %1073 = vrot.lane.b32.xlu1 %v698_v33, %s1970_s7  ;;  %1021 = vrot.lane.b32.xlu0 %v2283_v38, %s1965_s18 }
 0x118   : > { %v2574_v16 = vpop.permute.xlu1 %858  ;;  %v2576_v45 = vpop.permute.xlu0 %860 }
 0x11a   : > { %920 = vrot.lane.b32.xlu1 %v698_v33, %s1968_s8  ;;  %868 = vrot.lane.b32.xlu0 %v2283_v38, %s1964_s17 }
 0x11c   : > { %v714_v9 = vpop.permute.xlu1 %713  ;;  %v712_v31 = vpop.permute.xlu0 %711 }
 0x11d   : > { %v1163_v22 = vsel %vm1162_vm2, %v2254_v59, %v712_v31 }
 0x11e   : > { %1126 = vrot.lane.b32.xlu1 %v787_v14, %s1971_s14  ;;  %1075 = vrot.lane.b32.xlu0 %v2318_v10, %s1970_s7 }
 0x120   : > { %v803_v23 = vpop.permute.xlu1 %802  ;;  %v801_v0 = vpop.permute.xlu0 %800 }
 0x121   : > { %v1180_v47 = vsel %vm1179_vm3, %v1163_v22, %v801_v0 }
 0x122   : > { %922 = vrot.lane.b32.xlu1 %v2318_v10, %s1968_s8  ;;  %731 = vrot.lane.b32.xlu0 %v698_v33, %s1966_s19  ;;  %v1197_v33 = vsel %vm1196_vm4, %v1180_v47, %v851_v5  ;;  %v1164_v5 = vsel %vm1162_vm2, %v2247_v56, %v714_v9  ;;  %v790_v56 = vrot.slane %v2601_v27, 2 }
 0x124   : > { %v2591_v21 = vpop.permute.xlu1 %715  ;;  %v905_v48 = vpop.permute.xlu0 %904 }
 0x125   : > { %v1214_v59 = vsel %vm1213_vm5, %v1197_v33, %v905_v48  ;;  %v3027_v33 = vrot.slane %v2328_v55, 2 }
 0x126   : > { %1128 = vrot.lane.b32.xlu1 %v2323_v11, %s1971_s14  ;;  %973 = vrot.lane.b32.xlu0 %v787_v14, %s1969_s13 }
 0x128   : > { %v958_v49 = vpop.permute.xlu1 %957  ;;  %v907_v41 = vpop.permute.xlu0 %906 }
 0x129   : > { %v1231_v40 = vsel %vm1230_vm6, %v1214_v59, %v958_v49  ;;  %v792_v59 = vsel %vm759_vm1, %v790_v56, %v3027_v33 }
 0x12a   : > { %820 = vrot.lane.b32.xlu1 %v787_v14, %s1967_s20  ;;  %733 = vrot.lane.b32.xlu0 %v2318_v10, %s1966_s19  ;;  %v3026_v14 = vrot.slane %v2328_v55, 1  ;;  %v1248_v48 = vsel %vm1247_vm7, %v1231_v40, %v2547_v58 }
 0x12c   : > { %v805_v1 = vpop.permute.xlu1 %804  ;;  %v2603_v7 = vpop.permute.xlu0 %717  ;;  %v703_v0 = vsel %vm670_vm0, %v701_v43, %v3026_v14 }
 0x12e   : > { %1023 = vrot.lane.b32.xlu1 %v2601_v27, %s1965_s18  ;;  %975 = vrot.lane.b32.xlu0 %v2323_v11, %s1969_s13 }
 0x130   : > { %v1062_v10 = vpop.permute.xlu1 %1061  ;;  %v960_v24 = vpop.permute.xlu0 %959 }
 0x131   : > { %v1265_v57 = vsel %vm1264_vm8, %v1248_v48, %v1062_v10 }
 0x132   : > { %870 = vrot.lane.b32.xlu1 %v2601_v27, %s1964_s17  ;;  %822 = vrot.lane.b32.xlu0 %v2323_v11, %s1967_s20  ;;  %v1181_v11 = vsel %vm1179_vm3, %v1164_v5, %v803_v23 }
 0x133   : > { %v1198_v9 = vsel %vm1196_vm4, %v1181_v11, %v2539_v34 }
 0x134   : > { %v909_v31 = vpop.permute.xlu1 %908  ;;  %v807_v60 = vpop.permute.xlu0 %806  ;;  %v1215_v23 = vsel %vm1213_vm5, %v1198_v9, %v907_v41 }
 0x135   : > { %v1232_v58 = vsel %vm1230_vm6, %v1215_v23, %v960_v24 }
 0x136   : > { %1077 = vrot.lane.b32.xlu1 %v703_v0, %s1970_s7  ;;  %1025 = vrot.lane.b32.xlu0 %v2328_v55, %s1965_s18  ;;  %v1249_v34 = vsel %vm1247_vm7, %v1232_v58, %v2549_v28  ;;  %v1165_v28 = vsel %vm1162_vm2, %v2198_v52, %v2591_v21 }
 0x137   : > { %v1182_v48 = vsel %vm1179_vm3, %v1165_v28, %v805_v1 }
 0x138   : > { %v1115_v49 = vpop.permute.xlu1 %1114  ;;  %v1064_v22 = vpop.permute.xlu0 %1063 }
 0x139   : > { %v1282_v47 = vsel %vm1281_vm9, %v1265_v57, %v1115_v49  ;;  %v1266_v41 = vsel %vm1264_vm8, %v1249_v34, %v1064_v22  ;;  %v457_v57 = vmax.f32 %v2133_v54, 0.0  ;;  %v1199_v22 = vsel %vm1196_vm4, %v1182_v48, %v2555_v30 }
 0x13a   : > { %924 = vrot.lane.b32.xlu1 %v703_v0, %s1968_s8  ;;  %872 = vrot.lane.b32.xlu0 %v2328_v55, %s1964_s17  ;;  %v1216_v52 = vsel %vm1213_vm5, %v1199_v22, %v909_v31  ;;  %v1166_v54 = vsel %vm1162_vm2, %v2212_v4, %v2603_v7 }
 0x13b   : > { %1829 = vmatprep.mubr.msk.f32.mxu0 %vm1307_vm10, %v1282_v47  ;;  %v2677_v21 = vmul.f32 %v2335_v13, %v457_v57 }
 0x13c   : > { %v911_v10 = vpop.permute.xlu1 %910  ;;  %v2642_v43 = vpop.permute.xlu0 %719 }
 0x13e   : > { %1130 = vrot.lane.b32.xlu1 %v792_v59, %s1971_s14  ;;  %1079 = vrot.lane.b32.xlu0 %v2363_v25, %s1970_s7 }
 0x140   : > { %v1117_v40 = vpop.permute.xlu1 %1116  ;;  %v962_v14 = vpop.permute.xlu0 %961 }
 0x141   : > { %v1283_v24 = vsel %vm1281_vm9, %v1266_v41, %v1117_v40  ;;  %v1233_v47 = vsel %vm1230_vm6, %v1216_v52, %v962_v14  ;;  %v795_v14 = vrot.slane %v2677_v21, 2  ;;  %v1167_v52 = vsel %vm1162_vm2, %v2222_v19, %v2642_v43 }
 0x142   : > { %926 = vrot.lane.b32.xlu1 %v2363_v25, %s1968_s8  ;;  %735 = vrot.lane.b32.xlu0 %v703_v0, %s1966_s19  ;;  %v1250_v13 = vsel %vm1247_vm7, %v1233_v47, %v2564_v39  ;;  %v706_v39 = vrot.slane %v2677_v21, 1 }
 0x143   : > { %1830 = vmatmul.mubr.msk.f32.vlgmr.msra.gmra.mxu0 %vm1307_vm10, %v1283_v24 }
 0x144   : > { %v2658_v5 = vpop.permute.xlu1 %808  ;;  %v2660_v11 = vpop.permute.xlu0 %721 }
 0x146   : > { %1132 = vrot.lane.b32.xlu1 %v2368_v6, %s1971_s14  ;;  %977 = vrot.lane.b32.xlu0 %v792_v59, %s1969_s13 }
 0x148   : > { %v1066_v0 = vpop.permute.xlu1 %1065  ;;  %v964_v49 = vpop.permute.xlu0 %963 }
 0x149   : > { %v1267_v30 = vsel %vm1264_vm8, %v1250_v13, %v1066_v0 }
 0x14a   : > { %824 = vrot.lane.b32.xlu1 %v792_v59, %s1967_s20  ;;  %737 = vrot.lane.b32.xlu0 %v2363_v25, %s1966_s19  ;;  %v1183_v25 = vsel %vm1179_vm3, %v1166_v54, %v807_v60  ;;  %v3028_v59 = vrot.slane %v2355_v46, 1 }
 0x14b   : > { %v1200_v4 = vsel %vm1196_vm4, %v1183_v25, %v2557_v51  ;;  %v1184_v25 = vsel %vm1179_vm3, %v1167_v52, %v2658_v5 }
 0x14c   : > { %v913_v1 = vpop.permute.xlu1 %912  ;;  %v2680_v56 = vpop.permute.xlu0 %810  ;;  %v1217_v7 = vsel %vm1213_vm5, %v1200_v4, %v911_v10  ;;  %v708_v51 = vsel %vm670_vm0, %v706_v39, %v3028_v59  ;;  %v1201_v13 = vsel %vm1196_vm4, %v1184_v25, %v2574_v16 }
 0x14d   : > { %v1234_v60 = vsel %vm1230_vm6, %v1217_v7, %v964_v49 }
 0x14e   : > { %1027 = vrot.lane.b32.xlu1 %v2677_v21, %s1965_s18  ;;  %979 = vrot.lane.b32.xlu0 %v2368_v6, %s1969_s13 }
 0x150   : > { %v1119_v31 = vpop.permute.xlu1 %1118  ;;  %v1068_v9 = vpop.permute.xlu0 %1067 }
 0x151   : > { %v1284_v23 = vsel %vm1281_vm9, %v1267_v30, %v1119_v31 }
 0x152   : > { %874 = vrot.lane.b32.xlu1 %v2677_v21, %s1964_s17  ;;  %826 = vrot.lane.b32.xlu0 %v2368_v6, %s1967_s20  ;;  %v1251_v6 = vsel %vm1247_vm7, %v1234_v60, %v2566_v62  ;;  %v3029_v62 = vrot.slane %v2355_v46, 2 }
 0x153   : > { %1832 = vmatprep.mubr.msk.f32.mxu0 %vm1307_vm10, %v1284_v23  ;;  %v1268_v10 = vsel %vm1264_vm8, %v1251_v6, %v1068_v9  ;;  %v1218_v9 = vsel %vm1213_vm5, %v1201_v13, %v913_v1 }
 0x154   : > { %v915_v58 = vpop.permute.xlu1 %914  ;;  %v2704_v33 = vpop.permute.xlu0 %723  ;;  %v797_v48 = vsel %vm759_vm1, %v795_v14, %v3029_v62 }
 0x156   : > { %1081 = vrot.lane.b32.xlu1 %v708_v51, %s1970_s7  ;;  %1029 = vrot.lane.b32.xlu0 %v2355_v46, %s1965_s18 }
 0x158   : > { %v1121_v34 = vpop.permute.xlu1 %1120  ;;  %v966_v41 = vpop.permute.xlu0 %965 }
 0x159   : > { %v1285_v40 = vsel %vm1281_vm9, %v1268_v10, %v1121_v34  ;;  %v1235_v19 = vsel %vm1230_vm6, %v1218_v9, %v966_v41 }
 0x15a   : > { %928 = vrot.lane.b32.xlu1 %v708_v51, %s1968_s8  ;;  %876 = vrot.lane.b32.xlu0 %v2355_v46, %s1964_s17 }
 0x15b   : > { %1833 = vmatmul.mubr.msk.f32.gmra.mxu0 %vm1307_vm10, %v1285_v40  ;;  %v1169_v40 = vsel %vm1162_vm2, %v2243_v50, %v2704_v33 }
 0x15c   : > { %v2721_v24 = vpop.permute.xlu1 %812  ;;  %v2723_v28 = vpop.permute.xlu0 %725 }
 0x15e   : > { %1134 = vrot.lane.b32.xlu1 %v797_v48, %s1971_s14  ;;  %1083 = vrot.lane.b32.xlu0 %v2392_v44, %s1970_s7 }
 0x160   : > { %v1016_v57 = vpop.permute.xlu1 %1015  ;;  %v968_v0 = vpop.permute.xlu0 %967 }
 0x161   : > { %v1252_v43 = vsel %vm1247_vm7, %v1235_v19, %v1016_v57  ;;  %v1170_v57 = vsel %vm1162_vm2, %v2245_v53, %v2723_v28 }
 0x162   : > { %930 = vrot.lane.b32.xlu1 %v2392_v44, %s1968_s8  ;;  %739 = vrot.lane.b32.xlu0 %v708_v51, %s1966_s19 }
 0x164   : > { %v863_v49 = vpop.permute.xlu1 %862  ;;  %v2734_v22 = vpop.permute.xlu0 %814 }
 0x166   : > { %1136 = vrot.lane.b32.xlu1 %v2410_v63, %s1971_s14  ;;  %981 = vrot.lane.b32.xlu0 %v797_v48, %s1969_s13 }
 0x168   : > { %v1070_v47 = vpop.permute.xlu1 %1069  ;;  %v1018_v54 = vpop.permute.xlu0 %1017 }
 0x169   : > { %v1269_v16 = vsel %vm1264_vm8, %v1252_v43, %v1070_v47 }
 0x16a   : > { %828 = vrot.lane.b32.xlu1 %v797_v48, %s1967_s20  ;;  %741 = vrot.lane.b32.xlu0 %v2392_v44, %s1966_s19  ;;  %v1168_v44 = vsel %vm1162_vm2, %v2220_v18, %v2660_v11  ;;  %s1760_s19 = sshll.u32 %s3041_s22, 5 }
 0x16b   : > { %v1185_v1 = vsel %vm1179_vm3, %v1168_v44, %v2680_v56 }
 0x16c   : > { %v917_v30 = vpop.permute.xlu1 %916  ;;  %v2749_v31 = vpop.permute.xlu0 %864  ;;  %v1202_v18 = vsel %vm1196_vm4, %v1185_v1, %v2576_v45 }
 0x16d   : > { %v1219_v39 = vsel %vm1213_vm5, %v1202_v18, %v915_v58 }
 0x16e   : > { %1031 = vrot.lane.b32.xlu1 %v2384_v35, %s1965_s18  ;;  %983 = vrot.lane.b32.xlu0 %v2410_v63, %s1969_s13  ;;  %v1236_v56 = vsel %vm1230_vm6, %v1219_v39, %v968_v0 }
 0x170   : > { %v1123_v5 = vpop.permute.xlu1 %1122  ;;  %v1072_v23 = vpop.permute.xlu0 %1071 }
 0x171   : > { %v1286_v4 = vsel %vm1281_vm9, %v1269_v16, %v1123_v5 }
 0x172   : > { %878 = vrot.lane.b32.xlu1 %v2384_v35, %s1964_s17  ;;  %830 = vrot.lane.b32.xlu0 %v2410_v63, %s1967_s20  ;;  %v1253_v35 = vsel %vm1247_vm7, %v1236_v56, %v1018_v54 }
 0x173   : > { %1835 = vmatprep.mubr.msk.f32.mxu0 %vm1307_vm10, %v1286_v4  ;;  %v1270_v63 = vsel %vm1264_vm8, %v1253_v35, %v1072_v23 }
 0x174   : > { %v919_v11 = vpop.permute.xlu1 %918  ;;  %v2772_v7 = vpop.permute.xlu0 %727 }
 0x175   : > { %v1171_v44 = vsel %vm1162_vm2, %v2507_v2, %v2772_v7 }
 0x176   : > { %1085 = vrot.lane.b32.xlu1 %v2426_v15, %s1970_s7  ;;  %1033 = vrot.lane.b32.xlu0 %v2382_v32, %s1965_s18 }
 0x178   : > { %v1125_v60 = vpop.permute.xlu1 %1124  ;;  %v970_v59 = vpop.permute.xlu0 %969 }
 0x179   : > { %v1287_v45 = vsel %vm1281_vm9, %v1270_v63, %v1125_v60 }
 0x17a   : > { %932 = vrot.lane.b32.xlu1 %v2426_v15, %s1968_s8  ;;  %880 = vrot.lane.b32.xlu0 %v2382_v32, %s1964_s17  ;;  %s1758_s17 = sshll.u32 %s1945_s21, 3  ;;  %s3045_s21 = smov (!%p292_p7, %s1945_s21), 1 }
 0x17b   : > { %1836 = vmatmul.mubr.msk.f32.gmra.mxu0 %vm1307_vm10, %v1287_v45  ;;  %p282_p6 = scmp.lt.s32.totalorder %s1758_s17, 15  ;;  %s295_s29 = sadd.s32 %s1762_s28, %s3045_s21 }
 0x17c   : > { %v817_v58 = vpop.permute.xlu1 %816  ;;  %v2788_v51 = vpop.permute.xlu0 %729  ;;  %s1763_s30 = sshll.u32 %s295_s29, 1 }
 0x17d   : > { %v1188_v16 = vsel %vm1179_vm3, %v1171_v44, %v817_v58  ;;  %v1172_v2 = vsel %vm1162_vm2, %v2261_v3, %v2788_v51  ;;  %s3043_s17 = smov (!%p282_p6, %s1758_s17), 15  ;;  %s297_s10 = scalar_lea.vmem %s3019_s6, %s1763_s30 }
 0x17e   : > { %1138 = vrot.lane.b32.xlu1 %v2429_v37, %s1971_s14  ;;  %1087 = vrot.lane.b32.xlu0 %v2446_v42, %s1970_s7 }
 0x180   : > { %v1020_v6 = vpop.permute.xlu1 %1019  ;;  %v972_v10 = vpop.permute.xlu0 %971 }
 0x182   : > { %985 = vrot.lane.b32.xlu1 %v2429_v37, %s1969_s13  ;;  %934 = vrot.lane.b32.xlu0 %v2446_v42, %s1968_s8  ;;  %v1186_v37 = vsel %vm1179_vm3, %v1169_v40, %v2721_v24 }
 0x183   : > { %v1203_v42 = vsel %vm1196_vm4, %v1186_v37, %v863_v49 }
 0x184   : > { %v867_v32 = vpop.permute.xlu1 %866  ;;  %v819_v15 = vpop.permute.xlu0 %818 }
 0x185   : > { %v1205_v5 = vsel %vm1196_vm4, %v1188_v16, %v867_v32  ;;  %v1189_v7 = vsel %vm1179_vm3, %v1172_v2, %v819_v15 }
 0x186   : > { %987 = vrot.lane.b32.xlu1 %v2449_v61, %s1969_s13  ;;  %1140 = vrot.lane.b32.xlu0 %v2449_v61, %s1971_s14  ;;  %v1220_v61 = vsel %vm1213_vm5, %v1203_v42, %v917_v30 }
 0x187   : > { %v1237_v48 = vsel %vm1230_vm6, %v1220_v61, %v970_v59 }
 0x188   : > { %v1074_v34 = vpop.permute.xlu1 %1073  ;;  %v1022_v41 = vpop.permute.xlu0 %1021  ;;  %v1254_v50 = vsel %vm1247_vm7, %v1237_v48, %v1020_v6 }
 0x18a   : > { %1037 = vrot.lane.b32.xlu1 %v2443_v20, %s1965_s18  ;;  %1035 = vrot.lane.b32.xlu0 %v2432_v26, %s1965_s18  ;;  %v1271_v20 = vsel %vm1264_vm8, %v1254_v50, %v1074_v34  ;;  %s1759_s18 = sshll.u32 %s3043_s17, 1 }
 0x18b   : > { %s286_s20 = sadd.s32 %s1760_s19, %s1759_s18 }
 0x18c   : > { %v921_v14 = vpop.permute.xlu1 %920  ;;  %v869_v62 = vpop.permute.xlu0 %868  ;;  %s1761_s8 = sshll.u32 %s286_s20, 3 }
 0x18d   : > { %v1222_v4 = vsel %vm1213_vm5, %v1205_v5, %v921_v14  ;;  %v1206_v60 = vsel %vm1196_vm4, %v1189_v7, %v869_v62  ;;  %s2916_s16 = scalar_lea.vmem %s3018_s5, %s1761_s8 }
 0x18e   : > { %1091 = vrot.lane.b32.xlu1 %v2463_v12, %s1970_s7  ;;  %1089 = vrot.lane.b32.xlu0 %v2466_v8, %s1970_s7  ;;  %v1187_v12 = vsel %vm1179_vm3, %v1170_v57, %v2734_v22 }
 0x18f   : > { %v1204_v8 = vsel %vm1196_vm4, %v1187_v12, %v2749_v31 }
 0x190   : > { %v1127_v26 = vpop.permute.xlu1 %1126  ;;  %v1076_v33 = vpop.permute.xlu0 %1075  ;;  %v1221_v52 = vsel %vm1213_vm5, %v1204_v8, %v919_v11 }
 0x191   : > { %v1288_v24 = vsel %vm1281_vm9, %v1271_v20, %v1127_v26  ;;  %v1238_v53 = vsel %vm1230_vm6, %v1221_v52, %v972_v10 }
 0x192   : > { %1144 = vrot.lane.b32.xlu1 %v2469_v17, %s1971_s14  ;;  %1142 = vrot.lane.b32.xlu0 %v2472_v29, %s1971_s14  ;;  %v1255_v28 = vsel %vm1247_vm7, %v1238_v53, %v1022_v41 }
 0x193   : > { %1838 = vmatprep.mubr.msk.f32.mxu0 %vm1307_vm10, %v1288_v24  ;;  %v1272_v17 = vsel %vm1264_vm8, %v1255_v28, %v1076_v33 }
 0x194   : > { %v923_v0 = vpop.permute.xlu1 %922  ;;  %v732_v49 = vpop.permute.xlu0 %731 }
 0x195   : > { %v1223_v58 = vsel %vm1213_vm5, %v1206_v60, %v923_v0  ;;  %v1173_v48 = vsel %vm1162_vm2, %v2545_v36, %v732_v49 }
 0x198   : > { %v1129_v47 = vpop.permute.xlu1 %1128  ;;  %v974_v29 = vpop.permute.xlu0 %973 }
 0x199   : > { %v1289_v54 = vsel %vm1281_vm9, %v1272_v17, %v1129_v47  ;;  %v1239_v18 = vsel %vm1230_vm6, %v1222_v4, %v974_v29 }
 0x19a   : > { %1839 = vmatmul.mubr.msk.f32.gmra.mxu0 %vm1307_vm10, %v1289_v54 }
 0x19c   : > { %v821_v22 = vpop.permute.xlu1 %820  ;;  %v734_v25 = vpop.permute.xlu0 %733 }
 0x19d   : > { %v1190_v50 = vsel %vm1179_vm3, %v1173_v48, %v821_v22  ;;  %v1174_v36 = vsel %vm1162_vm2, %v2283_v38, %v734_v25 }
 0x1a0   : > { %v1024_v13 = vpop.permute.xlu1 %1023  ;;  %v976_v30 = vpop.permute.xlu0 %975 }
 0x1a1   : > { %v1256_v11 = vsel %vm1247_vm7, %v1239_v18, %v1024_v13  ;;  %v1240_v6 = vsel %vm1230_vm6, %v1223_v58, %v976_v30 }
 0x1a4   : > { %v871_v31 = vpop.permute.xlu1 %870  ;;  %v823_v9 = vpop.permute.xlu0 %822 }
 0x1a5   : > { %v1207_v20 = vsel %vm1196_vm4, %v1190_v50, %v871_v31  ;;  %v1191_v49 = vsel %vm1179_vm3, %v1174_v36, %v823_v9 }
 0x1a8   : > { %v1078_v19 = vpop.permute.xlu1 %1077  ;;  %v1026_v43 = vpop.permute.xlu0 %1025 }
 0x1a9   : > { %v1273_v39 = vsel %vm1264_vm8, %v1256_v11, %v1078_v19  ;;  %v1257_v10 = vsel %vm1247_vm7, %v1240_v6, %v1026_v43 }
 0x1ac   : > { %v925_v23 = vpop.permute.xlu1 %924  ;;  %v873_v1 = vpop.permute.xlu0 %872 }
 0x1ad   : > { %v1224_v24 = vsel %vm1213_vm5, %v1207_v20, %v925_v23  ;;  %v1208_v28 = vsel %vm1196_vm4, %v1191_v49, %v873_v1 }
 0x1b0   : > { %v1131_v56 = vpop.permute.xlu1 %1130  ;;  %v1080_v35 = vpop.permute.xlu0 %1079 }
 0x1b1   : > { %v1290_v63 = vsel %vm1281_vm9, %v1273_v39, %v1131_v56  ;;  %v1274_v32 = vsel %vm1264_vm8, %v1257_v10, %v1080_v35 }
 0x1b2   : > { %1841 = vmatprep.mubr.msk.f32.mxu1 %vm1307_vm10, %v1290_v63 }
 0x1b4   : > { %v927_v59 = vpop.permute.xlu1 %926  ;;  %v736_v45 = vpop.permute.xlu0 %735 }
 0x1b5   : > { %v1225_v29 = vsel %vm1213_vm5, %v1208_v28, %v927_v59  ;;  %v1175_v1 = vsel %vm1162_vm2, %v2601_v27, %v736_v45 }
 0x1b8   : > { %v1133_v34 = vpop.permute.xlu1 %1132  ;;  %v978_v41 = vpop.permute.xlu0 %977 }
 0x1b9   : > { %v1291_v3 = vsel %vm1281_vm9, %v1274_v32, %v1133_v34  ;;  %v1241_v57 = vsel %vm1230_vm6, %v1224_v24, %v978_v41 }
 0x1ba   : > { %1842 = vmatmul.mubr.msk.f32.vlgmr.msra.gmra.mxu1 %vm1307_vm10, %v1291_v3 }
 0x1bc   : > { %v825_v51 = vpop.permute.xlu1 %824  ;;  %v738_v15 = vpop.permute.xlu0 %737 }
 0x1bd   : > { %v1192_v4 = vsel %vm1179_vm3, %v1175_v1, %v825_v51  ;;  %v1176_v59 = vsel %vm1162_vm2, %v2328_v55, %v738_v15 }
 0x1c0   : > { %v1028_v40 = vpop.permute.xlu1 %1027  ;;  %v980_v37 = vpop.permute.xlu0 %979 }
 0x1c1   : > { %v1258_v12 = vsel %vm1247_vm7, %v1241_v57, %v1028_v40  ;;  %v1242_v54 = vsel %vm1230_vm6, %v1225_v29, %v980_v37 }
 0x1c4   : > { %v875_v42 = vpop.permute.xlu1 %874  ;;  %v827_v14 = vpop.permute.xlu0 %826 }
 0x1c5   : > { %v1209_v18 = vsel %vm1196_vm4, %v1192_v4, %v875_v42  ;;  %v1193_v45 = vsel %vm1179_vm3, %v1176_v59, %v827_v14 }
 0x1c8   : > { %v1082_v62 = vpop.permute.xlu1 %1081  ;;  %v1030_v61 = vpop.permute.xlu0 %1029 }
 0x1c9   : > { %v1275_v8 = vsel %vm1264_vm8, %v1258_v12, %v1082_v62  ;;  %v1259_v22 = vsel %vm1247_vm7, %v1242_v54, %v1030_v61 }
 0x1cc   : > { %v929_v26 = vpop.permute.xlu1 %928  ;;  %v877_v33 = vpop.permute.xlu0 %876 }
 0x1cd   : > { %v1226_v56 = vsel %vm1213_vm5, %v1209_v18, %v929_v26  ;;  %v1210_v58 = vsel %vm1196_vm4, %v1193_v45, %v877_v33 }
 0x1d0   : > { %v1135_v0 = vpop.permute.xlu1 %1134  ;;  %v1084_v52 = vpop.permute.xlu0 %1083 }
 0x1d1   : > { %v1292_v53 = vsel %vm1281_vm9, %v1275_v8, %v1135_v0  ;;  %v1276_v13 = vsel %vm1264_vm8, %v1259_v22, %v1084_v52 }
 0x1d2   : > { %1844 = vmatprep.mubr.msk.f32.mxu1 %vm1307_vm10, %v1292_v53 }
 0x1d4   : > { %v931_v17 = vpop.permute.xlu1 %930  ;;  %v740_v47 = vpop.permute.xlu0 %739 }
 0x1d5   : > { %v1227_v32 = vsel %vm1213_vm5, %v1210_v58, %v931_v17  ;;  %v1177_v42 = vsel %vm1162_vm2, %v2677_v21, %v740_v47 }
 0x1d8   : > { %v1137_v30 = vpop.permute.xlu1 %1136  ;;  %v982_v31 = vpop.permute.xlu0 %981 }
 0x1d9   : > { %v1293_v38 = vsel %vm1281_vm9, %v1276_v13, %v1137_v30  ;;  %v1243_v35 = vsel %vm1230_vm6, %v1226_v56, %v982_v31 }
 0x1da   : > { %1845 = vmatmul.mubr.msk.f32.gmra.mxu1 %vm1307_vm10, %v1293_v38 }
 0x1dc   : > { %v829_v25 = vpop.permute.xlu1 %828  ;;  %v742_v9 = vpop.permute.xlu0 %741 }
 0x1dd   : > { %v1178_v14 = vsel %vm1162_vm2, %v2355_v46, %v742_v9  ;;  %v1194_v62 = vsel %vm1179_vm3, %v1177_v42, %v829_v25 }
 0x1e0   : > { %v1032_v19 = vpop.permute.xlu1 %1031  ;;  %v984_v43 = vpop.permute.xlu0 %983 }
 0x1e1   : > { %v1260_v63 = vsel %vm1247_vm7, %v1243_v35, %v1032_v19  ;;  %v1244_v34 = vsel %vm1230_vm6, %v1227_v32, %v984_v43 }
 0x1e4   : > { %v879_v44 = vpop.permute.xlu1 %878  ;;  %v831_v16 = vpop.permute.xlu0 %830 }
 0x1e5   : > { %v1195_v61 = vsel %vm1179_vm3, %v1178_v14, %v831_v16  ;;  %v1211_v48 = vsel %vm1196_vm4, %v1194_v62, %v879_v44 }
 0x1e8   : > { %v1086_v5 = vpop.permute.xlu1 %1085  ;;  %v1034_v23 = vpop.permute.xlu0 %1033 }
 0x1e9   : > { %v1277_v2 = vsel %vm1264_vm8, %v1260_v63, %v1086_v5  ;;  %v1261_v41 = vsel %vm1247_vm7, %v1244_v34, %v1034_v23 }
 0x1ec   : > { %v933_v11 = vpop.permute.xlu1 %932  ;;  %v881_v39 = vpop.permute.xlu0 %880 }
 0x1ed   : > { %v1212_v50 = vsel %vm1196_vm4, %v1195_v61, %v881_v39  ;;  %v1228_v33 = vsel %vm1213_vm5, %v1211_v48, %v933_v11 }
 0x1f0   : > { %v1139_v7 = vpop.permute.xlu1 %1138  ;;  %v1088_v60 = vpop.permute.xlu0 %1087 }
 0x1f1   : > { %v1294_v27 = vsel %vm1281_vm9, %v1277_v2, %v1139_v7  ;;  %v1278_v3 = vsel %vm1264_vm8, %v1261_v41, %v1088_v60 }
 0x1f2   : > { %1847 = vmatprep.mubr.msk.f32.mxu1 %vm1307_vm10, %v1294_v27 }
 0x1f4   : > { %v986_v6 = vpop.permute.xlu1 %985  ;;  %v935_v10 = vpop.permute.xlu0 %934 }
 0x1f5   : > { %v1229_v24 = vsel %vm1213_vm5, %v1212_v50, %v935_v10  ;;  %v1245_v46 = vsel %vm1230_vm6, %v1228_v33, %v986_v6 }
 0x1f8   : > { %v988_v51 = vpop.permute.xlu1 %987  ;;  %v1141_v40 = vpop.permute.xlu0 %1140 }
 0x1f9   : > { %v1295_v55 = vsel %vm1281_vm9, %v1278_v3, %v1141_v40  ;;  %v1246_v21 = vsel %vm1230_vm6, %v1229_v24, %v988_v51 }
 0x1fa   : > { %1848 = vmatmul.mubr.msk.f32.gmra.mxu1 %vm1307_vm10, %v1295_v55 }
 0x1fc   : > { %v1038_v15 = vpop.permute.xlu1 %1037  ;;  %v1036_v37 = vpop.permute.xlu0 %1035 }
 0x1fd   : > { %v1263_v57 = vsel %vm1247_vm7, %v1246_v21, %v1038_v15  ;;  %v1262_v12 = vsel %vm1247_vm7, %v1245_v46, %v1036_v37 }
 0x200   : > { %v1092_v20 = vpop.permute.xlu1 %1091  ;;  %v1090_v26 = vpop.permute.xlu0 %1089 }
 0x201   : > { %v1280_v0 = vsel %vm1264_vm8, %v1263_v57, %v1092_v20  ;;  %v1279_v52 = vsel %vm1264_vm8, %v1262_v12, %v1090_v26 }
 0x203   : > { %v1831_v8 = vpop.f32.mrf.mxu0 }
 0x204   : > { %1502 = vst.msk [vmem:[%s2916_s16 + $0x8] sm:$0xff] %vm1162_vm2, %v1831_v8  ;;  %v1555_v53 = vmul.f32 %v1831_v8, %v1831_v8  ;;  %v1145_v36 = vpop.permute.xlu1 %1144  ;;  %v1143_v49 = vpop.permute.xlu0 %1142  ;;  %v1518_v29 = vsel %vm1162_vm2, %v1831_v8, 0.0 }
 0x205   : > { %v1297_v28 = vsel %vm1281_vm9, %v1280_v0, %v1145_v36  ;;  %v1422_v17 = vpop.f32.mrf.mxu0  ;;  %v1296_v47 = vsel %vm1281_vm9, %v1279_v52, %v1143_v49 }
 0x206   : > { %1501 = vst.msk [vmem:[%s2916_s16] sm:$0xff] %vm1162_vm2, %v1422_v17  ;;  %v1517_v54 = vsel %vm1162_vm2, %v1422_v17, 0.0  ;;  %v1554_v22 = vmul.f32 %v1422_v17, %v1422_v17  ;;  %1850 = vmatprep.mubr.msk.f32.mxu1 %vm1307_vm10, %v1296_v47  ;;  %v1571_v30 = vsel %vm1162_vm2, %v1555_v53, 0.0 }
 0x207   : > { %v1519_v13 = vadd.f32 %v1518_v29, %v1517_v54  ;;  %1851 = vmatmul.mubr.msk.f32.gmra.mxu1 %vm1307_vm10, %v1297_v28 }
 0x208   : > { %v1570_v31 = vsel %vm1162_vm2, %v1554_v22, 0.0 }
 0x209   : > { %v1572_v38 = vadd.f32 %v1571_v30, %v1570_v31 }
 0x21b   : > { %v1834_v25 = vpop.f32.mrf.mxu0 }
 0x21c   : > { %1504 = vst.msk [vmem:[%s2916_s16 + $0x18] sm:$0xff] %vm1162_vm2, %v1834_v25  ;;  %v1557_v19 = vmul.f32 %v1834_v25, %v1834_v25  ;;  %v1522_v5 = vsel %vm1162_vm2, %v1834_v25, 0.0 }
 0x21d   : > { %v1432_v9 = vpop.f32.mrf.mxu0 }
 0x21e   : > { %1503 = vst.msk [vmem:[%s2916_s16 + $0x10] sm:$0xff] %vm1162_vm2, %v1432_v9  ;;  %v1520_v43 = vsel %vm1162_vm2, %v1432_v9, 0.0  ;;  %v1556_v44 = vmul.f32 %v1432_v9, %v1432_v9  ;;  %v1575_v18 = vsel %vm1162_vm2, %v1557_v19, 0.0 }
 0x21f   : > { %v1521_v16 = vadd.f32 %v1520_v43, %v1519_v13 }
 0x220   : > { %v1573_v23 = vsel %vm1162_vm2, %v1556_v44, 0.0 }
 0x221   : > { %v1574_v1 = vadd.f32 %v1573_v23, %v1572_v38  ;;  %v1523_v4 = vadd.f32 %v1522_v5, %v1521_v16 }
 0x223   : > { %v1576_v11 = vadd.f32 %v1575_v18, %v1574_v1 }
 0x23b   : > { %v1837_v39 = vpop.f32.mrf.mxu0 }
 0x23c   : > { %1506 = vst.msk [vmem:[%s2916_s16 + $0x28] sm:$0xff] %vm1162_vm2, %v1837_v39  ;;  %v1559_v35 = vmul.f32 %v1837_v39, %v1837_v39  ;;  %v1526_v60 = vsel %vm1162_vm2, %v1837_v39, 0.0 }
 0x23d   : > { %v1442_v56 = vpop.f32.mrf.mxu0 }
 0x23e   : > { %1505 = vst.msk [vmem:[%s2916_s16 + $0x20] sm:$0xff] %vm1162_vm2, %v1442_v56  ;;  %v1524_v63 = vsel %vm1162_vm2, %v1442_v56, 0.0  ;;  %v1558_v2 = vmul.f32 %v1442_v56, %v1442_v56  ;;  %v1579_v58 = vsel %vm1162_vm2, %v1559_v35, 0.0 }
 0x23f   : > { %v1525_v7 = vadd.f32 %v1524_v63, %v1523_v4 }
 0x240   : > { %v1577_v27 = vsel %vm1162_vm2, %v1558_v2, 0.0 }
 0x241   : > { %v1578_v59 = vadd.f32 %v1577_v27, %v1576_v11  ;;  %v1527_v45 = vadd.f32 %v1526_v60, %v1525_v7 }
 0x243   : > { %v1580_v6 = vadd.f32 %v1579_v58, %v1578_v59 }
 0x25a   : > { %v1840_v10 = vpop.f32.mrf.mxu0 }
 0x25b   : > { %1508 = vst.msk [vmem:[%s2916_s16 + $0x38] sm:$0xff] %vm1162_vm2, %v1840_v10  ;;  %v1561_v34 = vmul.f32 %v1840_v10, %v1840_v10  ;;  %v1530_v40 = vsel %vm1162_vm2, %v1840_v10, 0.0 }
 0x25c   : > { %v1452_v32 = vpop.f32.mrf.mxu0 }
 0x25d   : > { %1507 = vst.msk [vmem:[%s2916_s16 + $0x30] sm:$0xff] %vm1162_vm2, %v1452_v32  ;;  %v1528_v41 = vsel %vm1162_vm2, %v1452_v32, 0.0  ;;  %v1560_v3 = vmul.f32 %v1452_v32, %v1452_v32  ;;  %v1583_v42 = vsel %vm1162_vm2, %v1561_v34, 0.0 }
 0x25e   : > { %v1529_v51 = vadd.f32 %v1528_v41, %v1527_v45 }
 0x25f   : > { %v1581_v55 = vsel %vm1162_vm2, %v1560_v3, 0.0 }
 0x260   : > { %v1531_v15 = vadd.f32 %v1530_v40, %v1529_v51  ;;  %v1582_v37 = vadd.f32 %v1581_v55, %v1580_v6 }
 0x262   : > { %v1584_v14 = vadd.f32 %v1583_v42, %v1582_v37 }
 0x27a   : > { %v1843_v62 = vpop.f32.mrf.mxu1 }
 0x27b   : > { %1510 = vst.msk [vmem:[%s2916_s16 + $0x48] sm:$0xff] %vm1162_vm2, %v1843_v62  ;;  %v1563_v48 = vmul.f32 %v1843_v62, %v1843_v62  ;;  %v1534_v33 = vsel %vm1162_vm2, %v1843_v62, 0.0 }
 0x27c   : > { %v1462_v61 = vpop.f32.mrf.mxu1 }
 0x27d   : > { %1509 = vst.msk [vmem:[%s2916_s16 + $0x40] sm:$0xff] %vm1162_vm2, %v1462_v61  ;;  %v1532_v50 = vsel %vm1162_vm2, %v1462_v61, 0.0  ;;  %v1562_v20 = vmul.f32 %v1462_v61, %v1462_v61  ;;  %v1587_v57 = vsel %vm1162_vm2, %v1563_v48, 0.0 }
 0x27e   : > { %v1533_v26 = vadd.f32 %v1532_v50, %v1531_v15 }
 0x27f   : > { %v1585_v24 = vsel %vm1162_vm2, %v1562_v20, 0.0 }
 0x280   : > { %v1586_v46 = vadd.f32 %v1585_v24, %v1584_v14  ;;  %v1535_v21 = vadd.f32 %v1534_v33, %v1533_v26 }
 0x282   : > { %v1588_v12 = vadd.f32 %v1587_v57, %v1586_v46 }
 0x29a   : > { %v1846_v8 = vpop.f32.mrf.mxu1 }
 0x29b   : > { %1512 = vst.msk [vmem:[%s2916_s16 + $0x58] sm:$0xff] %vm1162_vm2, %v1846_v8  ;;  %v1565_v47 = vmul.f32 %v1846_v8, %v1846_v8  ;;  %v1538_v22 = vsel %vm1162_vm2, %v1846_v8, 0.0 }
 0x29c   : > { %v1472_v0 = vpop.f32.mrf.mxu1 }
 0x29d   : > { %1511 = vst.msk [vmem:[%s2916_s16 + $0x50] sm:$0xff] %vm1162_vm2, %v1472_v0  ;;  %v1564_v52 = vmul.f32 %v1472_v0, %v1472_v0  ;;  %v1536_v36 = vsel %vm1162_vm2, %v1472_v0, 0.0  ;;  %v1591_v31 = vsel %vm1162_vm2, %v1565_v47, 0.0 }
 0x29e   : > { %v1537_v17 = vadd.f32 %v1536_v36, %v1535_v21 }
 0x29f   : > { %v1589_v28 = vsel %vm1162_vm2, %v1564_v52, 0.0 }
 0x2a0   : > { %v1590_v54 = vadd.f32 %v1589_v28, %v1588_v12  ;;  %v1539_v30 = vadd.f32 %v1538_v22, %v1537_v17 }
 0x2a2   : > { %v1592_v9 = vadd.f32 %v1591_v31, %v1590_v54 }
 0x2ba   : > { %v1849_v53 = vpop.f32.mrf.mxu1 }
 0x2bb   : > { %1514 = vst.msk [vmem:[%s2916_s16 + $0x68] sm:$0xff] %vm1162_vm2, %v1849_v53  ;;  %v1567_v19 = vmul.f32 %v1849_v53, %v1849_v53  ;;  %v1542_v16 = vsel %vm1162_vm2, %v1849_v53, 0.0 }
 0x2bc   : > { %v1482_v49 = vpop.f32.mrf.mxu1 }
 0x2bd   : > { %1513 = vst.msk [vmem:[%s2916_s16 + $0x60] sm:$0xff] %vm1162_vm2, %v1482_v49  ;;  %v1566_v29 = vmul.f32 %v1482_v49, %v1482_v49  ;;  %v1540_v13 = vsel %vm1162_vm2, %v1482_v49, 0.0  ;;  %v1595_v1 = vsel %vm1162_vm2, %v1567_v19, 0.0 }
 0x2be   : > { %v1541_v25 = vadd.f32 %v1540_v13, %v1539_v30 }
 0x2bf   : > { %v1593_v38 = vsel %vm1162_vm2, %v1566_v29, 0.0 }
 0x2c0   : > { %v1594_v43 = vadd.f32 %v1593_v38, %v1592_v9  ;;  %v1543_v23 = vadd.f32 %v1542_v16, %v1541_v25 }
 0x2c2   : > { %v1596_v56 = vadd.f32 %v1595_v1, %v1594_v43 }
 0x2c7   : > { %v1852_v44 = vpop.f32.mrf.mxu1 }
 0x2c8   : > { %1516 = vst.msk [vmem:[%s2916_s16 + $0x78] sm:$0xff] %vm1162_vm2, %v1852_v44  ;;  %v1569_v4 = vmul.f32 %v1852_v44, %v1852_v44  ;;  %v1546_v35 = vsel %vm1162_vm2, %v1852_v44, 0.0 }
 0x2c9   : > { %v1492_v5 = vpop.f32.mrf.mxu1 }
 0x2ca   : > { %1515 = vst.msk [vmem:[%s2916_s16 + $0x70] sm:$0xff] %vm1162_vm2, %v1492_v5  ;;  %v1544_v18 = vsel %vm1162_vm2, %v1492_v5, 0.0  ;;  %v1568_v11 = vmul.f32 %v1492_v5, %v1492_v5  ;;  %v1599_v60 = vsel %vm1162_vm2, %v1569_v4, 0.0 }
 0x2cb   : > { %v1545_v39 = vadd.f32 %v1544_v18, %v1543_v23 }
 0x2cc   : > { %v1597_v63 = vsel %vm1162_vm2, %v1568_v11, 0.0 }
 0x2cd   : > { %v1547_v2 = vadd.f32 %v1546_v35, %v1545_v39  ;;  %v1598_v7 = vadd.f32 %v1597_v63, %v1596_v56 }
 0x2cf   : > { %v1548_v27 = vrot.slane %v1547_v2, 4  ;;  %v1600_v59 = vadd.f32 %v1599_v60, %v1598_v7 }
 0x2d1   : > { %v1549_v45 = vadd.f32 %v1548_v27, %v1547_v2  ;;  %v1601_v58 = vrot.slane %v1600_v59, 4 }
 0x2d3   : > { %v1550_v6 = vrot.slane %v1549_v45, 2  ;;  %v1602_v10 = vadd.f32 %v1601_v58, %v1600_v59 }
 0x2d5   : > { %v1551_v32 = vadd.f32 %v1550_v6, %v1549_v45  ;;  %v1603_v34 = vrot.slane %v1602_v10, 2 }
 0x2d7   : > { %v1552_v41 = vrot.slane %v1551_v32, 1  ;;  %v1604_v3 = vadd.f32 %v1603_v34, %v1602_v10 }
 0x2d9   : > { %v1605_v51 = vrot.slane %v1604_v3, 1  ;;  %v1553_v40 = vadd.f32 %v1552_v41, %v1551_v32 }
 0x2db   : > { %v1606_v55 = vadd.f32 %v1605_v51, %v1604_v3 }
 0x2dd   : > { %v1608_v15 = vsel %vm1607_vm11, %v1553_v40, %v1606_v55 }
 0x2de   : > { %1610 = vst.msk [vmem:[%s297_s10] sm:$0x3] %vm1609_vm12, %v1608_v15 }
 0x2df PF: > { %s17_s25 = sadd.s32 1, %s1961_s25   ;;  %s3030_s21 = smov %s1953_s23 }
 0x2e0   : > { %p14_p8 = scmp.ge.s32.totalorder %s17_s25, 6   ;;  %s3031_s22 = smov %s1957_s24 }
 0x2e1   : > { %s3032_s23 = smov %s3035_s26  ;;  %s3033_s24 = smov %s3039_s27 }
 0x2e2   :  { %16 = sbr.rel (!%p14_p8) target bundleno = 3 (0x3), region = 84 }

</bundles_post_ra>
